<compile_context>
chip_gen: v5e
topology: v5e:2x2
jax: 0.10.0
libtpu: 0.0.40
codegen_flags: <defaults>
</compile_context>

<pallas_src>
import numpy as np
import jax
import jax.numpy as jnp
from jax import lax
from jax.experimental import pallas as pl
from jax.experimental.pallas import tpu as pltpu

PATCH = 16                            # descriptor patch size
N_ORI = 8                             # orientation bins
N_CELL = 4                            # 4x4 spatial cells
DESC_DIM = N_CELL * N_CELL * N_ORI    # 128
PAD = 3                               # halo of the 7x7 taps


# ------------------ deterministic handcrafted "parameters" ------------------
def _gauss1d(sigma, size=5):
    ax = np.arange(size, dtype=np.float64) - (size - 1) / 2.0
    g = np.exp(-(ax ** 2) / (2.0 * sigma ** 2))
    return g / g.sum()


def build_separable_filters():
    """1-D factors (length 7) of the handcrafted 7x7 taps.

    kgx  = outer(a7, b7)                         (Gaussian-smoothed Sobel-x)
    kgy  = outer(b7, a7)                         (Gaussian-smoothed Sobel-y)
    kdog = outer(g2_7, g2_7) - outer(g1_7, g1_7) (5x5 DoG embedded in 7x7)
    """
    g1 = _gauss1d(1.6, 5)
    g2 = _gauss1d(1.6 * np.sqrt(2.0), 5)
    a7 = np.convolve(g1, np.array([1.0, 2.0, 1.0])) / 4.0    # smoothing factor
    b7 = np.convolve(g1, np.array([-1.0, 0.0, 1.0])) / 2.0   # derivative factor
    g1_7 = np.concatenate([[0.0], g1, [0.0]])
    g2_7 = np.concatenate([[0.0], g2, [0.0]])
    return a7, b7, g1_7, g2_7


def build_pool_matrix():
    """(N_ORI*PATCH*PATCH, DESC_DIM) block-diagonal pooling matrix.

    Per-pixel Gaussian window * 4x4 spatial-cell pooling; orientation o only
    feeds descriptor columns [o*16, (o+1)*16).  Stored bf16 for the MXU and
    consumed by ONE (TM, 2048) @ (2048, 128) matmul per tile."""
    p = np.zeros((PATCH * PATCH, N_CELL * N_CELL), np.float64)
    c = (PATCH - 1) / 2.0
    sig = PATCH / 2.0
    for y in range(PATCH):
        for x in range(PATCH):
            w = np.exp(-((y - c) ** 2 + (x - c) ** 2) / (2.0 * sig ** 2))
            p[y * PATCH + x, (y // 4) * N_CELL + (x // 4)] = w
    pool = np.zeros((N_ORI, PATCH * PATCH, DESC_DIM), np.float64)
    for o in range(N_ORI):
        pool[o, :, o * 16:(o + 1) * 16] = p
    return pool.reshape(N_ORI * PATCH * PATCH, DESC_DIM).astype(np.float32)


def _round_up(n, m):
    return ((n + m - 1) // m) * m


# ------ kernel A: fused grayscale + edge halo + separable grad/DoG ----------
def make_gray_grad_resp_call(B, C, H, W, a7, b7, g1_7, g2_7):
    def kernel(x_ref, gx_ref, gy_ref, resp_ref):
        # grayscale = channel mean, fused — never written back to HBM
        g = jnp.mean(x_ref[0], axis=0)                         # (H, W) f32

        # edge-replication halo of 3 px built in-kernel (replaces jnp.pad)
        lcol = jnp.broadcast_to(g[:, :1], (H, PAD))
        rcol = jnp.broadcast_to(g[:, W - 1:], (H, PAD))
        gp = jnp.concatenate([lcol, g, rcol], axis=1)          # (H, W+6)
        trow = jnp.broadcast_to(gp[:1, :], (PAD, W + 2 * PAD))
        brow = jnp.broadcast_to(gp[H - 1:, :], (PAD, W + 2 * PAD))
        gp = jnp.concatenate([trow, gp, brow], axis=0)         # (H+6, W+6)

        def conv_x(taps):   # horizontal (lane) pass: (H+6, W+6) -> (H+6, W)
            acc = None
            for dx in range(7):
                c = float(taps[dx])
                if abs(c) < 1e-12:
                    continue
                t = c * gp[:, dx:dx + W]
                acc = t if acc is None else acc + t
            return acc

        def conv_y(taps, h):  # vertical (sublane) pass: (H+6, W) -> (H, W)
            acc = None
            for dy in range(7):
                c = float(taps[dy])
                if abs(c) < 1e-12:
                    continue
                t = c * h[dy:dy + H, :]
                acc = t if acc is None else acc + t
            return acc

        hb = conv_x(b7)      # x-derivative factor
        ha = conv_x(a7)      # x-smoothing factor
        h1 = conv_x(g1_7)    # sigma1 Gaussian rows
        h2 = conv_x(g2_7)    # sigma2 Gaussian rows

        gx_ref[0] = conv_y(a7, hb)                              # d/dx of G
        gy_ref[0] = conv_y(b7, ha)                              # d/dy of G
        resp_ref[0] = jnp.abs(conv_y(g2_7, h2) - conv_y(g1_7, h1))  # |DoG|

    return pl.pallas_call(
        kernel,
        out_shape=(jax.ShapeDtypeStruct((B, H, W), jnp.float32),) * 3,
        grid=(B,),
        in_specs=[pl.BlockSpec((1, C, H, W), lambda b: (b, 0, 0, 0))],
        out_specs=(pl.BlockSpec((1, H, W), lambda b: (b, 0, 0)),) * 3,
        compiler_params=pltpu.CompilerParams(dimension_semantics=("parallel",)),
    )


# -------- kernel B: SIFT descriptor (tiled over B*K, single bf16 MXU matmul) -
def _desc_kernel(pgx_ref, pgy_ref, pool_ref, out_ref):
    gx = pgx_ref[...]                                   # (TM, 256) f32
    gy = pgy_ref[...]

    # Soft orientation binning on the VPU. Bins o and o+4 are antipodal, so
    # only 4 projections are needed; zero/unit cos/sin terms are skipped.
    parts = [None] * N_ORI
    for o in range(N_ORI // 2):
        ang = 2.0 * np.pi * o / N_ORI
        co, so = float(np.cos(ang)), float(np.sin(ang))
        terms = []
        if abs(co) > 1e-9:
            terms.append(gx if abs(co - 1.0) < 1e-9 else gx * co)
        if abs(so) > 1e-9:
            terms.append(gy if abs(so - 1.0) < 1e-9 else gy * so)
        proj = terms[0] if len(terms) == 1 else terms[0] + terms[1]
        parts[o] = jnp.maximum(proj, 0.0).astype(jnp.bfloat16)
        parts[o + N_ORI // 2] = jnp.maximum(-proj, 0.0).astype(jnp.bfloat16)

    # One MXU matmul: (TM, 8*256) bf16 @ (8*256, 128) bf16 -> (TM, 128) f32.
    r_all = jnp.concatenate(parts, axis=-1)
    acc = jnp.dot(r_all, pool_ref[...], preferred_element_type=jnp.float32)

    # SIFT-style normalization: L2 -> clip(0.2) -> L2 (EUP rsqrt, no divides)
    inv1 = lax.rsqrt(jnp.sum(acc * acc, axis=-1, keepdims=True) + 1e-12)
    d = jnp.minimum(acc * inv1, 0.2)
    inv2 = lax.rsqrt(jnp.sum(d * d, axis=-1, keepdims=True) + 1e-12)
    out_ref[...] = d * inv2


def sift_descriptors(pgx, pgy, pool):
    BK = pgx.shape[0]
    PP = PATCH * PATCH
    TM = min(256, _round_up(BK, 8))                 # keep per-tile VMEM small
    BK_pad = _round_up(BK, TM)
    if BK_pad != BK:
        padding = ((0, BK_pad - BK), (0, 0))
        pgx = jnp.pad(pgx, padding)
        pgy = jnp.pad(pgy, padding)
    out = pl.pallas_call(
        _desc_kernel,
        out_shape=jax.ShapeDtypeStruct((BK_pad, DESC_DIM), jnp.float32),
        grid=(BK_pad // TM,),
        in_specs=[
            pl.BlockSpec((TM, PP), lambda i: (i, 0)),
            pl.BlockSpec((TM, PP), lambda i: (i, 0)),
            # pool matrix stays resident across all BK tiles
            pl.BlockSpec((N_ORI * PP, DESC_DIM), lambda i: (0, 0)),
        ],
        out_specs=pl.BlockSpec((TM, DESC_DIM), lambda i: (i, 0)),
        compiler_params=pltpu.CompilerParams(
            dimension_semantics=("parallel",)),   # 2 TCs on v7x split BK tiles
    )(pgx, pgy, pool)
    return out[:BK]


# -------------------------------- module --------------------------------
class KorniaFeatureExtractorPallas:
    def __init__(self, num_features=64):
        self.num_features = num_features
        self.filters = build_separable_filters()
        self.pool = jnp.asarray(build_pool_matrix(), dtype=jnp.bfloat16)

    def __call__(self, x):
        assert x.ndim == 4
        B, C, H, W = x.shape
        K = self.num_features
        x = x.astype(jnp.float32)

        # 1) fused grayscale + halo + separable grad-of-Gaussian + |DoG|
        gx, gy, resp = make_gray_grad_resp_call(B, C, H, W, *self.filters)(x)

        # 2) keypoint selection: top-K |DoG| responses        [JAX glue]
        # TODO(synk): kornia's full ScaleSpaceDetector (multi-octave pyramid,
        # NMS, affine shape + orientation estimation) has no clean single
        # kernel equivalent; we use single-scale |DoG| top-K, upright patches.
        _, idx = lax.top_k(resp.reshape(B, H * W), K)
        ky = idx // W
        kx = idx % W
        y0 = jnp.clip(ky - PATCH // 2, 0, H - PATCH)
        x0 = jnp.clip(kx - PATCH // 2, 0, W - PATCH)

        # 3) data-dependent patch gather (single stacked gather) [JAX glue]
        # TODO(synk): could be fused into the descriptor kernel with
        # PrefetchScalarGridSpec + per-keypoint make_async_copy DMA gather.
        g_pair = jnp.stack([gx, gy], axis=1)                  # (B, 2, H, W)

        def take_patch(img, y, x):
            return lax.dynamic_slice(img, (0, y, x), (2, PATCH, PATCH))

        def per_image(img, ys, xs):
            return jax.vmap(lambda y, x: take_patch(img, y, x))(ys, xs)

        patches = jax.vmap(per_image)(g_pair, y0, x0)         # (B,K,2,16,16)
        pgx = patches[:, :, 0].reshape(B * K, PATCH * PATCH)
        pgy = patches[:, :, 1].reshape(B * K, PATCH * PATCH)

        # 4) SIFT descriptors                                 [Pallas, tiled]
        desc = sift_descriptors(pgx, pgy, self.pool)          # (B*K, 128)
        return desc.reshape(B, K, DESC_DIM)


if __name__ == "__main__":
    B, C, H, W = 2, 4, 32, 32
    NUM_FEATURES = 16
    key = jax.random.PRNGKey(0)
    x = jax.random.normal(key, (B, C, H, W), dtype=jnp.float32)

    model = KorniaFeatureExtractorPallas(num_features=NUM_FEATURES)
    forward = jax.jit(model.__call__)
    desc = forward(x)
    desc = jax.block_until_ready(desc)

    assert desc.shape == (B, NUM_FEATURES, DESC_DIM), desc.shape
    assert desc.dtype == jnp.float32
    assert bool(jnp.all(jnp.isfinite(desc)))
    print("KERNEL_OK")
</pallas_src>

<mosaic_0001>
module attributes {stable_mosaic.version = 11 : i64} {
  func.func @kernel(%arg0: i32, %arg1: memref<1x4x32x32xf32, #tpu.memory_space<vmem>>, %arg2: memref<1x32x32xf32, #tpu.memory_space<vmem>>, %arg3: memref<1x32x32xf32, #tpu.memory_space<vmem>>, %arg4: memref<1x32x32xf32, #tpu.memory_space<vmem>>) attributes {dimension_semantics = [#tpu.dimension_semantics<parallel>], iteration_bounds = array<i64: 2>, scalar_prefetch = 0 : i64, scratch_operands = 0 : i64, tpu.core_type = #tpu.core_type<tc>, window_params = [{transform_indices = @transform_0, window_bounds = array<i64: 1, 4, 32, 32>}, {transform_indices = @transform_1, window_bounds = array<i64: 1, 32, 32>}, {transform_indices = @transform_2, window_bounds = array<i64: 1, 32, 32>}, {transform_indices = @transform_3, window_bounds = array<i64: 1, 32, 32>}]} {
    %c0 = arith.constant 0 : index
    %c0_0 = arith.constant 0 : index
    %c0_1 = arith.constant 0 : index
    %c0_2 = arith.constant 0 : index
    %0 = vector.load %arg1[%c0, %c0_0, %c0_1, %c0_2] : memref<1x4x32x32xf32, #tpu.memory_space<vmem>>, vector<1x4x32x32xf32>
    %1 = vector.shape_cast %0 : vector<1x4x32x32xf32> to vector<4x32x32xf32>
    %cst = arith.constant dense<0.000000e+00> : vector<32x32xf32>
    %2 = vector.multi_reduction <add>, %1, %cst [0] : vector<4x32x32xf32> to vector<32x32xf32>
    %cst_3 = arith.constant 4.000000e+00 : f32
    %3 = vector.broadcast %cst_3 : f32 to vector<32x32xf32>
    %4 = arith.divf %2, %3 : vector<32x32xf32>
    %5 = vector.extract_strided_slice %4 {offsets = [0, 0], sizes = [32, 1], strides = [1, 1]} : vector<32x32xf32> to vector<32x1xf32>
    %6 = vector.shape_cast %5 : vector<32x1xf32> to vector<32x1xf32>
    %7 = vector.broadcast %6 : vector<32x1xf32> to vector<32x3xf32>
    %8 = vector.extract_strided_slice %4 {offsets = [0, 31], sizes = [32, 1], strides = [1, 1]} : vector<32x32xf32> to vector<32x1xf32>
    %9 = vector.shape_cast %8 : vector<32x1xf32> to vector<32x1xf32>
    %10 = vector.broadcast %9 : vector<32x1xf32> to vector<32x3xf32>
    %11 = tpu.concatenate %7, %4, %10 in 1 : vector<32x3xf32>, vector<32x32xf32>, vector<32x3xf32> -> vector<32x38xf32>
    %12 = vector.extract_strided_slice %11 {offsets = [0, 0], sizes = [1, 38], strides = [1, 1]} : vector<32x38xf32> to vector<1x38xf32>
    %13 = vector.shape_cast %12 : vector<1x38xf32> to vector<1x38xf32>
    %14 = vector.broadcast %13 : vector<1x38xf32> to vector<3x38xf32>
    %15 = vector.extract_strided_slice %11 {offsets = [31, 0], sizes = [1, 38], strides = [1, 1]} : vector<32x38xf32> to vector<1x38xf32>
    %16 = vector.shape_cast %15 : vector<1x38xf32> to vector<1x38xf32>
    %17 = vector.broadcast %16 : vector<1x38xf32> to vector<3x38xf32>
    %18 = tpu.concatenate %14, %11, %17 in 0 : vector<3x38xf32>, vector<32x38xf32>, vector<3x38xf32> -> vector<38x38xf32>
    %19 = vector.extract_strided_slice %18 {offsets = [0, 0], sizes = [38, 32], strides = [1, 1]} : vector<38x38xf32> to vector<38x32xf32>
    %cst_4 = arith.constant -0.0642875955 : f32
    %20 = vector.broadcast %cst_4 : f32 to vector<38x32xf32>
    %21 = arith.mulf %20, %19 : vector<38x32xf32>
    %22 = vector.extract_strided_slice %18 {offsets = [0, 1], sizes = [38, 32], strides = [1, 1]} : vector<38x38xf32> to vector<38x32xf32>
    %cst_5 = arith.constant -0.115503892 : f32
    %23 = vector.broadcast %cst_5 : f32 to vector<38x32xf32>
    %24 = arith.mulf %23, %22 : vector<38x32xf32>
    %25 = arith.addf %21, %24 : vector<38x32xf32>
    %26 = vector.extract_strided_slice %18 {offsets = [0, 2], sizes = [38, 32], strides = [1, 1]} : vector<38x38xf32> to vector<38x32xf32>
    %cst_6 = arith.constant -0.0761294216 : f32
    %27 = vector.broadcast %cst_6 : f32 to vector<38x32xf32>
    %28 = arith.mulf %27, %26 : vector<38x32xf32>
    %29 = arith.addf %25, %28 : vector<38x32xf32>
    %30 = vector.extract_strided_slice %18 {offsets = [0, 4], sizes = [38, 32], strides = [1, 1]} : vector<38x38xf32> to vector<38x32xf32>
    %cst_7 = arith.constant 0.0761294216 : f32
    %31 = vector.broadcast %cst_7 : f32 to vector<38x32xf32>
    %32 = arith.mulf %31, %30 : vector<38x32xf32>
    %33 = arith.addf %29, %32 : vector<38x32xf32>
    %34 = vector.extract_strided_slice %18 {offsets = [0, 5], sizes = [38, 32], strides = [1, 1]} : vector<38x38xf32> to vector<38x32xf32>
    %cst_8 = arith.constant 0.115503892 : f32
    %35 = vector.broadcast %cst_8 : f32 to vector<38x32xf32>
    %36 = arith.mulf %35, %34 : vector<38x32xf32>
    %37 = arith.addf %33, %36 : vector<38x32xf32>
    %38 = vector.extract_strided_slice %18 {offsets = [0, 6], sizes = [38, 32], strides = [1, 1]} : vector<38x38xf32> to vector<38x32xf32>
    %cst_9 = arith.constant 0.0642875955 : f32
    %39 = vector.broadcast %cst_9 : f32 to vector<38x32xf32>
    %40 = arith.mulf %39, %38 : vector<38x32xf32>
    %41 = arith.addf %37, %40 : vector<38x32xf32>
    %42 = vector.extract_strided_slice %18 {offsets = [0, 0], sizes = [38, 32], strides = [1, 1]} : vector<38x38xf32> to vector<38x32xf32>
    %cst_10 = arith.constant 0.0321437977 : f32
    %43 = vector.broadcast %cst_10 : f32 to vector<38x32xf32>
    %44 = arith.mulf %43, %42 : vector<38x32xf32>
    %45 = vector.extract_strided_slice %18 {offsets = [0, 1], sizes = [38, 32], strides = [1, 1]} : vector<38x38xf32> to vector<38x32xf32>
    %cst_11 = arith.constant 0.122039542 : f32
    %46 = vector.broadcast %cst_11 : f32 to vector<38x32xf32>
    %47 = arith.mulf %46, %45 : vector<38x32xf32>
    %48 = arith.addf %44, %47 : vector<38x32xf32>
    %49 = vector.extract_strided_slice %18 {offsets = [0, 2], sizes = [38, 32], strides = [1, 1]} : vector<38x38xf32> to vector<38x32xf32>
    %cst_12 = arith.constant 0.217856199 : f32
    %50 = vector.broadcast %cst_12 : f32 to vector<38x32xf32>
    %51 = arith.mulf %50, %49 : vector<38x32xf32>
    %52 = arith.addf %48, %51 : vector<38x32xf32>
    %53 = vector.extract_strided_slice %18 {offsets = [0, 3], sizes = [38, 32], strides = [1, 1]} : vector<38x38xf32> to vector<38x32xf32>
    %cst_13 = arith.constant 0.255920917 : f32
    %54 = vector.broadcast %cst_13 : f32 to vector<38x32xf32>
    %55 = arith.mulf %54, %53 : vector<38x32xf32>
    %56 = arith.addf %52, %55 : vector<38x32xf32>
    %57 = vector.extract_strided_slice %18 {offsets = [0, 4], sizes = [38, 32], strides = [1, 1]} : vector<38x38xf32> to vector<38x32xf32>
    %cst_14 = arith.constant 0.217856199 : f32
    %58 = vector.broadcast %cst_14 : f32 to vector<38x32xf32>
    %59 = arith.mulf %58, %57 : vector<38x32xf32>
    %60 = arith.addf %56, %59 : vector<38x32xf32>
    %61 = vector.extract_strided_slice %18 {offsets = [0, 5], sizes = [38, 32], strides = [1, 1]} : vector<38x38xf32> to vector<38x32xf32>
    %cst_15 = arith.constant 0.122039542 : f32
    %62 = vector.broadcast %cst_15 : f32 to vector<38x32xf32>
    %63 = arith.mulf %62, %61 : vector<38x32xf32>
    %64 = arith.addf %60, %63 : vector<38x32xf32>
    %65 = vector.extract_strided_slice %18 {offsets = [0, 6], sizes = [38, 32], strides = [1, 1]} : vector<38x38xf32> to vector<38x32xf32>
    %cst_16 = arith.constant 0.0321437977 : f32
    %66 = vector.broadcast %cst_16 : f32 to vector<38x32xf32>
    %67 = arith.mulf %66, %65 : vector<38x32xf32>
    %68 = arith.addf %64, %67 : vector<38x32xf32>
    %69 = vector.extract_strided_slice %18 {offsets = [0, 1], sizes = [38, 32], strides = [1, 1]} : vector<38x38xf32> to vector<38x32xf32>
    %cst_17 = arith.constant 0.128575191 : f32
    %70 = vector.broadcast %cst_17 : f32 to vector<38x32xf32>
    %71 = arith.mulf %70, %69 : vector<38x32xf32>
    %72 = vector.extract_strided_slice %18 {offsets = [0, 2], sizes = [38, 32], strides = [1, 1]} : vector<38x38xf32> to vector<38x32xf32>
    %cst_18 = arith.constant 0.231007785 : f32
    %73 = vector.broadcast %cst_18 : f32 to vector<38x32xf32>
    %74 = arith.mulf %73, %72 : vector<38x32xf32>
    %75 = arith.addf %71, %74 : vector<38x32xf32>
    %76 = vector.extract_strided_slice %18 {offsets = [0, 3], sizes = [38, 32], strides = [1, 1]} : vector<38x38xf32> to vector<38x32xf32>
    %cst_19 = arith.constant 0.280834049 : f32
    %77 = vector.broadcast %cst_19 : f32 to vector<38x32xf32>
    %78 = arith.mulf %77, %76 : vector<38x32xf32>
    %79 = arith.addf %75, %78 : vector<38x32xf32>
    %80 = vector.extract_strided_slice %18 {offsets = [0, 4], sizes = [38, 32], strides = [1, 1]} : vector<38x38xf32> to vector<38x32xf32>
    %cst_20 = arith.constant 0.231007785 : f32
    %81 = vector.broadcast %cst_20 : f32 to vector<38x32xf32>
    %82 = arith.mulf %81, %80 : vector<38x32xf32>
    %83 = arith.addf %79, %82 : vector<38x32xf32>
    %84 = vector.extract_strided_slice %18 {offsets = [0, 5], sizes = [38, 32], strides = [1, 1]} : vector<38x38xf32> to vector<38x32xf32>
    %cst_21 = arith.constant 0.128575191 : f32
    %85 = vector.broadcast %cst_21 : f32 to vector<38x32xf32>
    %86 = arith.mulf %85, %84 : vector<38x32xf32>
    %87 = arith.addf %83, %86 : vector<38x32xf32>
    %88 = vector.extract_strided_slice %18 {offsets = [0, 1], sizes = [38, 32], strides = [1, 1]} : vector<38x38xf32> to vector<38x32xf32>
    %cst_22 = arith.constant 0.16237177 : f32
    %89 = vector.broadcast %cst_22 : f32 to vector<38x32xf32>
    %90 = arith.mulf %89, %88 : vector<38x32xf32>
    %91 = vector.extract_strided_slice %18 {offsets = [0, 2], sizes = [38, 32], strides = [1, 1]} : vector<38x38xf32> to vector<38x32xf32>
    %cst_23 = arith.constant 0.217643261 : f32
    %92 = vector.broadcast %cst_23 : f32 to vector<38x32xf32>
    %93 = arith.mulf %92, %91 : vector<38x32xf32>
    %94 = arith.addf %90, %93 : vector<38x32xf32>
    %95 = vector.extract_strided_slice %18 {offsets = [0, 3], sizes = [38, 32], strides = [1, 1]} : vector<38x38xf32> to vector<38x32xf32>
    %cst_24 = arith.constant 0.239969924 : f32
    %96 = vector.broadcast %cst_24 : f32 to vector<38x32xf32>
    %97 = arith.mulf %96, %95 : vector<38x32xf32>
    %98 = arith.addf %94, %97 : vector<38x32xf32>
    %99 = vector.extract_strided_slice %18 {offsets = [0, 4], sizes = [38, 32], strides = [1, 1]} : vector<38x38xf32> to vector<38x32xf32>
    %cst_25 = arith.constant 0.217643261 : f32
    %100 = vector.broadcast %cst_25 : f32 to vector<38x32xf32>
    %101 = arith.mulf %100, %99 : vector<38x32xf32>
    %102 = arith.addf %98, %101 : vector<38x32xf32>
    %103 = vector.extract_strided_slice %18 {offsets = [0, 5], sizes = [38, 32], strides = [1, 1]} : vector<38x38xf32> to vector<38x32xf32>
    %cst_26 = arith.constant 0.16237177 : f32
    %104 = vector.broadcast %cst_26 : f32 to vector<38x32xf32>
    %105 = arith.mulf %104, %103 : vector<38x32xf32>
    %106 = arith.addf %102, %105 : vector<38x32xf32>
    %107 = vector.extract_strided_slice %41 {offsets = [0, 0], sizes = [32, 32], strides = [1, 1]} : vector<38x32xf32> to vector<32x32xf32>
    %cst_27 = arith.constant 0.0321437977 : f32
    %108 = vector.broadcast %cst_27 : f32 to vector<32x32xf32>
    %109 = arith.mulf %108, %107 : vector<32x32xf32>
    %110 = vector.extract_strided_slice %41 {offsets = [1, 0], sizes = [32, 32], strides = [1, 1]} : vector<38x32xf32> to vector<32x32xf32>
    %cst_28 = arith.constant 0.122039542 : f32
    %111 = vector.broadcast %cst_28 : f32 to vector<32x32xf32>
    %112 = arith.mulf %111, %110 : vector<32x32xf32>
    %113 = arith.addf %109, %112 : vector<32x32xf32>
    %114 = vector.extract_strided_slice %41 {offsets = [2, 0], sizes = [32, 32], strides = [1, 1]} : vector<38x32xf32> to vector<32x32xf32>
    %cst_29 = arith.constant 0.217856199 : f32
    %115 = vector.broadcast %cst_29 : f32 to vector<32x32xf32>
    %116 = arith.mulf %115, %114 : vector<32x32xf32>
    %117 = arith.addf %113, %116 : vector<32x32xf32>
    %118 = vector.extract_strided_slice %41 {offsets = [3, 0], sizes = [32, 32], strides = [1, 1]} : vector<38x32xf32> to vector<32x32xf32>
    %cst_30 = arith.constant 0.255920917 : f32
    %119 = vector.broadcast %cst_30 : f32 to vector<32x32xf32>
    %120 = arith.mulf %119, %118 : vector<32x32xf32>
    %121 = arith.addf %117, %120 : vector<32x32xf32>
    %122 = vector.extract_strided_slice %41 {offsets = [4, 0], sizes = [32, 32], strides = [1, 1]} : vector<38x32xf32> to vector<32x32xf32>
    %cst_31 = arith.constant 0.217856199 : f32
    %123 = vector.broadcast %cst_31 : f32 to vector<32x32xf32>
    %124 = arith.mulf %123, %122 : vector<32x32xf32>
    %125 = arith.addf %121, %124 : vector<32x32xf32>
    %126 = vector.extract_strided_slice %41 {offsets = [5, 0], sizes = [32, 32], strides = [1, 1]} : vector<38x32xf32> to vector<32x32xf32>
    %cst_32 = arith.constant 0.122039542 : f32
    %127 = vector.broadcast %cst_32 : f32 to vector<32x32xf32>
    %128 = arith.mulf %127, %126 : vector<32x32xf32>
    %129 = arith.addf %125, %128 : vector<32x32xf32>
    %130 = vector.extract_strided_slice %41 {offsets = [6, 0], sizes = [32, 32], strides = [1, 1]} : vector<38x32xf32> to vector<32x32xf32>
    %cst_33 = arith.constant 0.0321437977 : f32
    %131 = vector.broadcast %cst_33 : f32 to vector<32x32xf32>
    %132 = arith.mulf %131, %130 : vector<32x32xf32>
    %133 = arith.addf %129, %132 : vector<32x32xf32>
    %c0_34 = arith.constant 0 : index
    %c0_35 = arith.constant 0 : index
    %c0_36 = arith.constant 0 : index
    %134 = vector.load %arg2[%c0_34, %c0_35, %c0_36] : memref<1x32x32xf32, #tpu.memory_space<vmem>>, vector<1x32x32xf32>
    %135 = vector.shape_cast %134 : vector<1x32x32xf32> to vector<32x32xf32>
    %136 = vector.shape_cast %133 : vector<32x32xf32> to vector<1x32x32xf32>
    tpu.vector_store %arg2[%c0_34, %c0_35, %c0_36], %136 {strides = array<i32>} : memref<1x32x32xf32, #tpu.memory_space<vmem>>, vector<1x32x32xf32>,
    %137 = vector.extract_strided_slice %68 {offsets = [0, 0], sizes = [32, 32], strides = [1, 1]} : vector<38x32xf32> to vector<32x32xf32>
    %cst_37 = arith.constant -0.0642875955 : f32
    %138 = vector.broadcast %cst_37 : f32 to vector<32x32xf32>
    %139 = arith.mulf %138, %137 : vector<32x32xf32>
    %140 = vector.extract_strided_slice %68 {offsets = [1, 0], sizes = [32, 32], strides = [1, 1]} : vector<38x32xf32> to vector<32x32xf32>
    %cst_38 = arith.constant -0.115503892 : f32
    %141 = vector.broadcast %cst_38 : f32 to vector<32x32xf32>
    %142 = arith.mulf %141, %140 : vector<32x32xf32>
    %143 = arith.addf %139, %142 : vector<32x32xf32>
    %144 = vector.extract_strided_slice %68 {offsets = [2, 0], sizes = [32, 32], strides = [1, 1]} : vector<38x32xf32> to vector<32x32xf32>
    %cst_39 = arith.constant -0.0761294216 : f32
    %145 = vector.broadcast %cst_39 : f32 to vector<32x32xf32>
    %146 = arith.mulf %145, %144 : vector<32x32xf32>
    %147 = arith.addf %143, %146 : vector<32x32xf32>
    %148 = vector.extract_strided_slice %68 {offsets = [4, 0], sizes = [32, 32], strides = [1, 1]} : vector<38x32xf32> to vector<32x32xf32>
    %cst_40 = arith.constant 0.0761294216 : f32
    %149 = vector.broadcast %cst_40 : f32 to vector<32x32xf32>
    %150 = arith.mulf %149, %148 : vector<32x32xf32>
    %151 = arith.addf %147, %150 : vector<32x32xf32>
    %152 = vector.extract_strided_slice %68 {offsets = [5, 0], sizes = [32, 32], strides = [1, 1]} : vector<38x32xf32> to vector<32x32xf32>
    %cst_41 = arith.constant 0.115503892 : f32
    %153 = vector.broadcast %cst_41 : f32 to vector<32x32xf32>
    %154 = arith.mulf %153, %152 : vector<32x32xf32>
    %155 = arith.addf %151, %154 : vector<32x32xf32>
    %156 = vector.extract_strided_slice %68 {offsets = [6, 0], sizes = [32, 32], strides = [1, 1]} : vector<38x32xf32> to vector<32x32xf32>
    %cst_42 = arith.constant 0.0642875955 : f32
    %157 = vector.broadcast %cst_42 : f32 to vector<32x32xf32>
    %158 = arith.mulf %157, %156 : vector<32x32xf32>
    %159 = arith.addf %155, %158 : vector<32x32xf32>
    %c0_43 = arith.constant 0 : index
    %c0_44 = arith.constant 0 : index
    %c0_45 = arith.constant 0 : index
    %160 = vector.load %arg3[%c0_43, %c0_44, %c0_45] : memref<1x32x32xf32, #tpu.memory_space<vmem>>, vector<1x32x32xf32>
    %161 = vector.shape_cast %160 : vector<1x32x32xf32> to vector<32x32xf32>
    %162 = vector.shape_cast %159 : vector<32x32xf32> to vector<1x32x32xf32>
    tpu.vector_store %arg3[%c0_43, %c0_44, %c0_45], %162 {strides = array<i32>} : memref<1x32x32xf32, #tpu.memory_space<vmem>>, vector<1x32x32xf32>,
    %163 = vector.extract_strided_slice %106 {offsets = [1, 0], sizes = [32, 32], strides = [1, 1]} : vector<38x32xf32> to vector<32x32xf32>
    %cst_46 = arith.constant 0.16237177 : f32
    %164 = vector.broadcast %cst_46 : f32 to vector<32x32xf32>
    %165 = arith.mulf %164, %163 : vector<32x32xf32>
    %166 = vector.extract_strided_slice %106 {offsets = [2, 0], sizes = [32, 32], strides = [1, 1]} : vector<38x32xf32> to vector<32x32xf32>
    %cst_47 = arith.constant 0.217643261 : f32
    %167 = vector.broadcast %cst_47 : f32 to vector<32x32xf32>
    %168 = arith.mulf %167, %166 : vector<32x32xf32>
    %169 = arith.addf %165, %168 : vector<32x32xf32>
    %170 = vector.extract_strided_slice %106 {offsets = [3, 0], sizes = [32, 32], strides = [1, 1]} : vector<38x32xf32> to vector<32x32xf32>
    %cst_48 = arith.constant 0.239969924 : f32
    %171 = vector.broadcast %cst_48 : f32 to vector<32x32xf32>
    %172 = arith.mulf %171, %170 : vector<32x32xf32>
    %173 = arith.addf %169, %172 : vector<32x32xf32>
    %174 = vector.extract_strided_slice %106 {offsets = [4, 0], sizes = [32, 32], strides = [1, 1]} : vector<38x32xf32> to vector<32x32xf32>
    %cst_49 = arith.constant 0.217643261 : f32
    %175 = vector.broadcast %cst_49 : f32 to vector<32x32xf32>
    %176 = arith.mulf %175, %174 : vector<32x32xf32>
    %177 = arith.addf %173, %176 : vector<32x32xf32>
    %178 = vector.extract_strided_slice %106 {offsets = [5, 0], sizes = [32, 32], strides = [1, 1]} : vector<38x32xf32> to vector<32x32xf32>
    %cst_50 = arith.constant 0.16237177 : f32
    %179 = vector.broadcast %cst_50 : f32 to vector<32x32xf32>
    %180 = arith.mulf %179, %178 : vector<32x32xf32>
    %181 = arith.addf %177, %180 : vector<32x32xf32>
    %182 = vector.extract_strided_slice %87 {offsets = [1, 0], sizes = [32, 32], strides = [1, 1]} : vector<38x32xf32> to vector<32x32xf32>
    %cst_51 = arith.constant 0.128575191 : f32
    %183 = vector.broadcast %cst_51 : f32 to vector<32x32xf32>
    %184 = arith.mulf %183, %182 : vector<32x32xf32>
    %185 = vector.extract_strided_slice %87 {offsets = [2, 0], sizes = [32, 32], strides = [1, 1]} : vector<38x32xf32> to vector<32x32xf32>
    %cst_52 = arith.constant 0.231007785 : f32
    %186 = vector.broadcast %cst_52 : f32 to vector<32x32xf32>
    %187 = arith.mulf %186, %185 : vector<32x32xf32>
    %188 = arith.addf %184, %187 : vector<32x32xf32>
    %189 = vector.extract_strided_slice %87 {offsets = [3, 0], sizes = [32, 32], strides = [1, 1]} : vector<38x32xf32> to vector<32x32xf32>
    %cst_53 = arith.constant 0.280834049 : f32
    %190 = vector.broadcast %cst_53 : f32 to vector<32x32xf32>
    %191 = arith.mulf %190, %189 : vector<32x32xf32>
    %192 = arith.addf %188, %191 : vector<32x32xf32>
    %193 = vector.extract_strided_slice %87 {offsets = [4, 0], sizes = [32, 32], strides = [1, 1]} : vector<38x32xf32> to vector<32x32xf32>
    %cst_54 = arith.constant 0.231007785 : f32
    %194 = vector.broadcast %cst_54 : f32 to vector<32x32xf32>
    %195 = arith.mulf %194, %193 : vector<32x32xf32>
    %196 = arith.addf %192, %195 : vector<32x32xf32>
    %197 = vector.extract_strided_slice %87 {offsets = [5, 0], sizes = [32, 32], strides = [1, 1]} : vector<38x32xf32> to vector<32x32xf32>
    %cst_55 = arith.constant 0.128575191 : f32
    %198 = vector.broadcast %cst_55 : f32 to vector<32x32xf32>
    %199 = arith.mulf %198, %197 : vector<32x32xf32>
    %200 = arith.addf %196, %199 : vector<32x32xf32>
    %201 = arith.subf %181, %200 : vector<32x32xf32>
    %202 = math.absf %201 : vector<32x32xf32>
    %c0_56 = arith.constant 0 : index
    %c0_57 = arith.constant 0 : index
    %c0_58 = arith.constant 0 : index
    %203 = vector.load %arg4[%c0_56, %c0_57, %c0_58] : memref<1x32x32xf32, #tpu.memory_space<vmem>>, vector<1x32x32xf32>
    %204 = vector.shape_cast %203 : vector<1x32x32xf32> to vector<32x32xf32>
    %205 = vector.shape_cast %202 : vector<32x32xf32> to vector<1x32x32xf32>
    tpu.vector_store %arg4[%c0_56, %c0_57, %c0_58], %205 {strides = array<i32>} : memref<1x32x32xf32, #tpu.memory_space<vmem>>, vector<1x32x32xf32>,
    return
  }
  func.func @transform_0(%arg0: i32) -> (i32, i32, i32, i32) {
    %c0_i32 = arith.constant 0 : i32
    %c0_i32_0 = arith.constant 0 : i32
    %c0_i32_1 = arith.constant 0 : i32
    %c0_i32_2 = arith.constant 0 : i32
    return %arg0, %c0_i32, %c0_i32_0, %c0_i32_1 : i32, i32, i32, i32
  }
  func.func @transform_1(%arg0: i32) -> (i32, i32, i32) {
    %c0_i32 = arith.constant 0 : i32
    %c0_i32_0 = arith.constant 0 : i32
    %c0_i32_1 = arith.constant 0 : i32
    return %arg0, %c0_i32, %c0_i32_0 : i32, i32, i32
  }
  func.func @transform_2(%arg0: i32) -> (i32, i32, i32) {
    %c0_i32 = arith.constant 0 : i32
    %c0_i32_0 = arith.constant 0 : i32
    %c0_i32_1 = arith.constant 0 : i32
    return %arg0, %c0_i32, %c0_i32_0 : i32, i32, i32
  }
  func.func @transform_3(%arg0: i32) -> (i32, i32, i32) {
    %c0_i32 = arith.constant 0 : i32
    %c0_i32_0 = arith.constant 0 : i32
    %c0_i32_1 = arith.constant 0 : i32
    return %arg0, %c0_i32, %c0_i32_0 : i32, i32, i32
  }
}

module attributes {stable_mosaic.version = 11 : i64} {
  func.func @_desc_kernel(%arg0: i32, %arg1: memref<32x256xf32, #tpu.memory_space<vmem>>, %arg2: memref<32x256xf32, #tpu.memory_space<vmem>>, %arg3: memref<2048x128xbf16, #tpu.memory_space<vmem>>, %arg4: memref<32x128xf32, #tpu.memory_space<vmem>>) attributes {dimension_semantics = [#tpu.dimension_semantics<parallel>], iteration_bounds = array<i64: 1>, scalar_prefetch = 0 : i64, scratch_operands = 0 : i64, tpu.core_type = #tpu.core_type<tc>, window_params = [{transform_indices = @transform_0, window_bounds = array<i64: 32, 256>}, {transform_indices = @transform_1, window_bounds = array<i64: 32, 256>}, {pipeline_mode = #tpu.pipeline_mode<synchronous>, transform_indices = @transform_2, window_bounds = array<i64: 2048, 128>}, {transform_indices = @transform_3, window_bounds = array<i64: 32, 128>}]} {
    %c0 = arith.constant 0 : index
    %c0_0 = arith.constant 0 : index
    %0 = vector.load %arg1[%c0, %c0_0] : memref<32x256xf32, #tpu.memory_space<vmem>>, vector<32x256xf32>
    %c0_1 = arith.constant 0 : index
    %c0_2 = arith.constant 0 : index
    %1 = vector.load %arg2[%c0_1, %c0_2] : memref<32x256xf32, #tpu.memory_space<vmem>>, vector<32x256xf32>
    %cst = arith.constant 0.000000e+00 : f32
    %2 = vector.broadcast %cst : f32 to vector<32x256xf32>
    %3 = arith.maximumf %0, %2 : vector<32x256xf32>
    %4 = arith.truncf %3 : vector<32x256xf32> to vector<32x256xbf16>
    %cst_3 = arith.constant 0.000000e+00 : f32
    %5 = vector.broadcast %cst_3 : f32 to vector<32x256xf32>
    %6 = arith.subf %5, %0 : vector<32x256xf32>
    %cst_4 = arith.constant 0.000000e+00 : f32
    %7 = vector.broadcast %cst_4 : f32 to vector<32x256xf32>
    %8 = arith.maximumf %6, %7 : vector<32x256xf32>
    %9 = arith.truncf %8 : vector<32x256xf32> to vector<32x256xbf16>
    %cst_5 = arith.constant 0.707106769 : f32
    %10 = vector.broadcast %cst_5 : f32 to vector<32x256xf32>
    %11 = arith.mulf %0, %10 : vector<32x256xf32>
    %cst_6 = arith.constant 0.707106769 : f32
    %12 = vector.broadcast %cst_6 : f32 to vector<32x256xf32>
    %13 = arith.mulf %1, %12 : vector<32x256xf32>
    %14 = arith.addf %11, %13 : vector<32x256xf32>
    %cst_7 = arith.constant 0.000000e+00 : f32
    %15 = vector.broadcast %cst_7 : f32 to vector<32x256xf32>
    %16 = arith.maximumf %14, %15 : vector<32x256xf32>
    %17 = arith.truncf %16 : vector<32x256xf32> to vector<32x256xbf16>
    %cst_8 = arith.constant 0.000000e+00 : f32
    %18 = vector.broadcast %cst_8 : f32 to vector<32x256xf32>
    %19 = arith.subf %18, %14 : vector<32x256xf32>
    %cst_9 = arith.constant 0.000000e+00 : f32
    %20 = vector.broadcast %cst_9 : f32 to vector<32x256xf32>
    %21 = arith.maximumf %19, %20 : vector<32x256xf32>
    %22 = arith.truncf %21 : vector<32x256xf32> to vector<32x256xbf16>
    %cst_10 = arith.constant 0.000000e+00 : f32
    %23 = vector.broadcast %cst_10 : f32 to vector<32x256xf32>
    %24 = arith.maximumf %1, %23 : vector<32x256xf32>
    %25 = arith.truncf %24 : vector<32x256xf32> to vector<32x256xbf16>
    %cst_11 = arith.constant 0.000000e+00 : f32
    %26 = vector.broadcast %cst_11 : f32 to vector<32x256xf32>
    %27 = arith.subf %26, %1 : vector<32x256xf32>
    %cst_12 = arith.constant 0.000000e+00 : f32
    %28 = vector.broadcast %cst_12 : f32 to vector<32x256xf32>
    %29 = arith.maximumf %27, %28 : vector<32x256xf32>
    %30 = arith.truncf %29 : vector<32x256xf32> to vector<32x256xbf16>
    %cst_13 = arith.constant -0.707106769 : f32
    %31 = vector.broadcast %cst_13 : f32 to vector<32x256xf32>
    %32 = arith.mulf %0, %31 : vector<32x256xf32>
    %cst_14 = arith.constant 0.707106769 : f32
    %33 = vector.broadcast %cst_14 : f32 to vector<32x256xf32>
    %34 = arith.mulf %1, %33 : vector<32x256xf32>
    %35 = arith.addf %32, %34 : vector<32x256xf32>
    %cst_15 = arith.constant 0.000000e+00 : f32
    %36 = vector.broadcast %cst_15 : f32 to vector<32x256xf32>
    %37 = arith.maximumf %35, %36 : vector<32x256xf32>
    %38 = arith.truncf %37 : vector<32x256xf32> to vector<32x256xbf16>
    %cst_16 = arith.constant 0.000000e+00 : f32
    %39 = vector.broadcast %cst_16 : f32 to vector<32x256xf32>
    %40 = arith.subf %39, %35 : vector<32x256xf32>
    %cst_17 = arith.constant 0.000000e+00 : f32
    %41 = vector.broadcast %cst_17 : f32 to vector<32x256xf32>
    %42 = arith.maximumf %40, %41 : vector<32x256xf32>
    %43 = arith.truncf %42 : vector<32x256xf32> to vector<32x256xbf16>
    %44 = tpu.concatenate %4, %17, %25, %38, %9, %22, %30, %43 in 1 : vector<32x256xbf16>, vector<32x256xbf16>, vector<32x256xbf16>, vector<32x256xbf16>, vector<32x256xbf16>, vector<32x256xbf16>, vector<32x256xbf16>, vector<32x256xbf16> -> vector<32x2048xbf16>
    %c0_18 = arith.constant 0 : index
    %c0_19 = arith.constant 0 : index
    %45 = vector.load %arg3[%c0_18, %c0_19] : memref<2048x128xbf16, #tpu.memory_space<vmem>>, vector<2048x128xbf16>
    %cst_20 = arith.constant dense<0.000000e+00> : vector<32x128xf32>
    %46 = tpu.matmul %44, %45, %cst_20 {dimension_numbers = #tpu.dot_dimension_numbers<[1], [0], [0], [1], [0, 0, 1, 1], [], []>} : vector<32x2048xbf16>, vector<2048x128xbf16>, vector<32x128xf32> -> vector<32x128xf32>
    %47 = arith.mulf %46, %46 : vector<32x128xf32>
    %cst_21 = arith.constant dense<0.000000e+00> : vector<32xf32>
    %48 = vector.multi_reduction <add>, %47, %cst_21 [1] : vector<32x128xf32> to vector<32xf32>
    %49 = vector.shape_cast %48 : vector<32xf32> to vector<32x1xf32>
    %cst_22 = arith.constant 9.99999996E-13 : f32
    %50 = vector.broadcast %cst_22 : f32 to vector<32x1xf32>
    %51 = arith.addf %49, %50 : vector<32x1xf32>
    %52 = math.rsqrt %51 : vector<32x1xf32>
    %53 = vector.broadcast %52 : vector<32x1xf32> to vector<32x128xf32>
    %54 = arith.mulf %46, %53 : vector<32x128xf32>
    %cst_23 = arith.constant 2.000000e-01 : f32
    %55 = vector.broadcast %cst_23 : f32 to vector<32x128xf32>
    %56 = arith.minimumf %54, %55 : vector<32x128xf32>
    %57 = arith.mulf %56, %56 : vector<32x128xf32>
    %cst_24 = arith.constant dense<0.000000e+00> : vector<32xf32>
    %58 = vector.multi_reduction <add>, %57, %cst_24 [1] : vector<32x128xf32> to vector<32xf32>
    %59 = vector.shape_cast %58 : vector<32xf32> to vector<32x1xf32>
    %cst_25 = arith.constant 9.99999996E-13 : f32
    %60 = vector.broadcast %cst_25 : f32 to vector<32x1xf32>
    %61 = arith.addf %59, %60 : vector<32x1xf32>
    %62 = math.rsqrt %61 : vector<32x1xf32>
    %63 = vector.broadcast %62 : vector<32x1xf32> to vector<32x128xf32>
    %64 = arith.mulf %56, %63 : vector<32x128xf32>
    %c0_26 = arith.constant 0 : index
    %c0_27 = arith.constant 0 : index
    %65 = vector.load %arg4[%c0_26, %c0_27] : memref<32x128xf32, #tpu.memory_space<vmem>>, vector<32x128xf32>
    tpu.vector_store %arg4[%c0_26, %c0_27], %64 {strides = array<i32>} : memref<32x128xf32, #tpu.memory_space<vmem>>, vector<32x128xf32>,
    return
  }
  func.func @transform_0(%arg0: i32) -> (i32, i32) {
    %c0_i32 = arith.constant 0 : i32
    %c0_i32_0 = arith.constant 0 : i32
    return %arg0, %c0_i32 : i32, i32
  }
  func.func @transform_1(%arg0: i32) -> (i32, i32) {
    %c0_i32 = arith.constant 0 : i32
    %c0_i32_0 = arith.constant 0 : i32
    return %arg0, %c0_i32 : i32, i32
  }
  func.func @transform_2(%arg0: i32) -> (i32, i32) {
    %c0_i32 = arith.constant 0 : i32
    %c0_i32_0 = arith.constant 0 : i32
    %c0_i32_1 = arith.constant 0 : i32
    return %c0_i32, %c0_i32_0 : i32, i32
  }
  func.func @transform_3(%arg0: i32) -> (i32, i32) {
    %c0_i32 = arith.constant 0 : i32
    %c0_i32_0 = arith.constant 0 : i32
    return %arg0, %c0_i32 : i32, i32
  }
}

</mosaic_0001>

<bundles_post_ra>
// kernel: a_call__.2
= control target key start
LH: loop header
LB: loop body
LE: loop exit
PB: predicated region body
PF: predicated region fallthrough
CT: control target
= control target key end

     0   :  { %9 = vsyncpa [#allocation3], 0  ;;  %s2568_s0 = inlined_call_operand.hbm [shape: f32[2,4,32,32], index: 0, kind: input, shape index: {}]   ;;  %s2569_s1 = inlined_call_operand.vmem [shape: f32[2,32,32], index: 1, kind: output, shape index: {0}]   ;;  %s2570_s2 = inlined_call_operand.vmem [shape: f32[2,32,32], index: 2, kind: output, shape index: {1}]   ;;  %s2571_s3 = inlined_call_operand.vmem [shape: f32[2,32,32], index: 3, kind: output, shape index: {2}]  }
   0x1   :  { %11 = vsyncpa [#allocation3 + $0x1], 0  ;;  %s1740_s12 = smov 0   ;;  %s1742_s13 = smov 0  }
   0x2   :  { %s1744_s14 = smov 0   ;;  %s1746_s15 = smov 0  }
   0x3 LB: > { %s1759_s16 = sadd.s32 4294967295, %s1706_s15   ;;  %s1762_s17 = sadd.s32 1, %s1706_s15   ;;  %s1706_s15 = sphi %s1746_s15, %s2578_s15   ;;  %s1702_s14 = sphi %s1744_s14, %s2577_s14   ;;  %s1698_s13 = sphi %s1742_s13, %s2576_s13   ;;  %s1694_s12 = sphi %s1740_s12, %s2575_s12  }
   0x4   : > { %s21_s18 = ssub.s32 %s1706_s15, %s1762_s17  ;;  %s24_s19 = sadd.s32 1, %s1702_s14 }
   0x5   : > { %p22_p0 = scmp.eq.s32.totalorder %s21_s18, 0  ;;  %p31_p1 = scmp.ne.s32.totalorder %s1702_s14, %s1698_s13 }
   0x6   : > { %p32_p2 = scmp.eq.s32.totalorder %s1706_s15, 0  ;;  %p37_p3 = scmp.ne.s32.totalorder %s1698_s13, %s1694_s12 }
   0x7   : > { %s1772_s20 = scalar_select %p22_p0, %s1702_s14, %s24_s19  }
   0x8   : > { %p1774_p4 = por %p32_p2, %p31_p1  ;;  %p38_p5 = scmp.eq.s32.totalorder %s1759_s16, 0 }
   0x9   : > { %p1590_p6 = scmp.lt.s32.totalorder %s1706_s15, 2  ;;  %s139_s23 = sand.u32 1, %s1702_s14  }
   0xa   : > { %p1780_p7 = por %p38_p5, %p37_p3  ;;  %s1567_s24 = sshll.u32 %s139_s23, 7 }
   0xb   : > { %s1580_s25 = sshll.u32 %s1706_s15, 7  ;;  %s143_s29 = scalar_lea.vmem [#allocation2], %s1567_s24 }
   0xc   : > { %s148_s28 = scalar_lea.hbm %s2568_s0, %s1580_s25  ;;  %s151_s30 = sshll.u32 %s143_s29, 4  ;;  %s152_s30 = int_to_ptr.vmem [resolvable:$true] %s151_s30 }
   0xd   : > { %s149_s4 = sshll.u32 %s148_s28, 4  ;;  %p1791_p8 = pnand %p1590_p6, %p1774_p4  ;;  %s150_s4 = int_to_ptr.hbm [resolvable:$true] %s149_s4 }
   0xe   : > { %p1570_p9 = scmp.ge.s32.totalorder %s1706_s15, 1  ;;  %s140_s6 = scalar_lea.sflag [#allocation3], %s139_s23 }
   0xf   : > { %s1642_s7 = sshra.s32 %s150_s4, 4  ;;  %p1646_p11 = pneg %p1791_p8  ;;  %s1643_s7 = int_to_ptr.hbm [resolvable:$true] %s1642_s7 }
  0x10   : > { %s1644_s8 = scalar_lea.hbm %s1643_s7, 128  ;;  %s1649_s11 = scalar_lea.hbm %s2568_s0, 256 }
  0x11   : > { %p1645_p10 = scmp.ne.s32.totalorder %s1643_s7, %s1644_s8  ;;  %p1650_p0 = scmp.lt.s32.totalorder %s1643_s7, %s2568_s0 }
  0x12   : > { %p1651_p1 = scmp.lt.s32.totalorder %s1649_s11, %s1644_s8 }
  0x13   : > { %p1647_p12 = pnand %p1646_p11, %p1645_p10 }
  0x14   : > { %p1652_p2 = por %p1651_p1, %p1650_p0 }
  0x15   : > { %p1648_p13 = pneg %p1647_p12 }
  0x17   : > { %p1653_p3 = pnand %p1652_p2, %p1648_p13 }
  0x19   : > { %1656 = shalt.err (!%p1653_p3)
}
  0x1a   : > { %s1708_s19 = smov 128   ;;  %s1709_s21 = smov 8  }
  0x1b   : > { %1589 = dma.hbm_to_vmem [thread:$0]  (!%p1791_p8), %s150_s4, 2048, %s152_s30, %s140_s6, %s1708_s19, %s1708_s19, %s1709_s21  }
  0x1c   : > { %p159_p4 = scmp.lt.s32.totalorder %s1706_s15, 3 }
  0x1e   : > { %p160_p5 = pnand %p1570_p9, %p159_p4 }
  0x1f   : > { %s165_s23 = sand.u32 (!%p160_p5), 1, %s1698_s13  }
  0x20   : > { %163 = sbr.rel (%p160_p5) target bundleno = 706 (0x2c2), region = 24  ;;  %s1571_s24 = sshll.u32 (!%p160_p5), %s165_s23, 7 }
  0x21   : > { %s166_s25 = scalar_lea.sflag (!%p160_p5), [#allocation3], %s165_s23  ;;  %s1810_s26 = scalar_lea.vmem (!%p160_p5), [#allocation2], %s1571_s24 }
  0x25   : > { %1689 = dma.done.wait (%p1780_p7), %s166_s25, 2048  }
  0x26   : > { %1691 = vsyncadd (%p1780_p7), %s166_s25, 4294965248  ;;  %v1710_v0 = vmov 31   ;;  %v1711_v1 = vmov 0   ;;  %v1712_v2 = vmov 4.0   ;;  %vm234_vm0 = vcmask 261120   ;;  %v220_v4 = vld [vmem:[%s1810_s26 + $0x10] sm:$0xff] }
  0x27   : > { %1637 = vset.pattern.permute.xlu2 %v1710_v0  ;;  %1636 = vset.pattern.permute.xlu1 %v1711_v1  ;;  %1640 = vrcp.f32 %v1712_v2  ;;  %v224_v5 = vld [vmem:[%s1810_s26 + $0x30] sm:$0xff]  ;;  %v249_v8 = vsel %vm234_vm0, %v220_v4, 0.0  ;;  %v218_v12 = vld [vmem:[%s1810_s26] sm:$0xff]  ;;  %v221_v22 = vld [vmem:[%s1810_s26 + $0x18] sm:$0xff]  ;;  %s1713_s15 = smov 3   ;;  %vm322_vm2 = vcmask 23552  }
  0x28   : > { %1635 = vset.pattern.permute.xlu0 %v1711_v1  ;;  %v228_v6 = vld [vmem:[%s1810_s26 + $0x50] sm:$0xff]  ;;  %v250_v9 = vsel %vm234_vm0, %v224_v5, 0.0  ;;  %v222_v15 = vld [vmem:[%s1810_s26 + $0x20] sm:$0xff]  ;;  %v235_v18 = vsel %vm234_vm0, %v218_v12, 0.0  ;;  %v225_v23 = vld [vmem:[%s1810_s26 + $0x38] sm:$0xff]  ;;  %v256_v27 = vsel %vm234_vm0, %v221_v22, 0.0 }
  0x29   : > { %v232_v7 = vld [vmem:[%s1810_s26 + $0x70] sm:$0xff]  ;;  %v252_v10 = vsel %vm234_vm0, %v228_v6, 0.0  ;;  %v251_v13 = vadd.f32 %v250_v9, %v249_v8  ;;  %v226_v16 = vld [vmem:[%s1810_s26 + $0x40] sm:$0xff]  ;;  %v236_v20 = vsel %vm234_vm0, %v222_v15, 0.0  ;;  %v229_v26 = vld [vmem:[%s1810_s26 + $0x58] sm:$0xff]  ;;  %v257_v28 = vsel %vm234_vm0, %v225_v23, 0.0 }
  0x2a   : > { %v254_v14 = vsel %vm234_vm0, %v232_v7, 0.0  ;;  %v230_v17 = vld [vmem:[%s1810_s26 + $0x60] sm:$0xff]  ;;  %v238_v21 = vsel %vm234_vm0, %v226_v16, 0.0  ;;  %v237_v25 = vadd.f32 %v236_v20, %v235_v18  ;;  %v219_v29 = vld [vmem:[%s1810_s26 + $0x8] sm:$0xff]  ;;  %v258_v32 = vadd.f32 %v257_v28, %v256_v27  ;;  %v233_v38 = vld [vmem:[%s1810_s26 + $0x78] sm:$0xff]  ;;  %s1714_s22 = smov 127  }
  0x2b   : > { %v253_v24 = vadd.f32 %v252_v10, %v251_v13  ;;  %v240_v31 = vsel %vm234_vm0, %v230_v17, 0.0  ;;  %v259_v33 = vsel %vm234_vm0, %v229_v26, 0.0  ;;  %v223_v34 = vld [vmem:[%s1810_s26 + $0x28] sm:$0xff]  ;;  %v242_v40 = vsel %vm234_vm0, %v219_v29, 0.0  ;;  %s1715_s27 = smov 126   ;;  %s1716_s28 = smov 124  }
  0x2c   : > { %v227_v35 = vld [vmem:[%s1810_s26 + $0x48] sm:$0xff]  ;;  %v239_v37 = vadd.f32 %v238_v21, %v237_v25  ;;  %v243_v41 = vsel %vm234_vm0, %v223_v34, 0.0  ;;  %v260_v46 = vadd.f32 %v259_v33, %v258_v32  ;;  %v261_v48 = vsel %vm234_vm0, %v233_v38, 0.0  ;;  %s1717_s29 = smov 123   ;;  %s1718_s30 = smov 122  }
  0x2d   : > { %v1641_v3 = vpop.eup %1640  ;;  %v255_v36 = vadd.f32 %v254_v14, %v253_v24  ;;  %v231_v39 = vld [vmem:[%s1810_s26 + $0x68] sm:$0xff]  ;;  %v244_v43 = vadd.f32 %v243_v41, %v242_v40  ;;  %v245_v44 = vsel %vm234_vm0, %v227_v35, 0.0  ;;  %vm327_vm3 = vcmask 285696   ;;  %s1719_s4 = smov 125   ;;  %p203_p6 = scmp.lt.s32.totalorder %s1759_s16, 1 }
  0x2e   : > { %v264_v11 = vmul.f32 4.0, %v1641_v3  ;;  %vm268_vm1 = vweird.f32 %v1641_v3  ;;  %v241_v45 = vadd.f32 %v240_v31, %v239_v37  ;;  %v247_v50 = vsel %vm234_vm0, %v231_v39, 0.0 }
  0x2f   : > { %v246_v49 = vadd.f32 %v245_v44, %v244_v43  ;;  %v262_v53 = vadd.f32 %v261_v48, %v260_v46  ;;  %vm338_vm4 = vcmask 1042432   ;;  %vm902_vm5 = vcmask 1046528   ;;  %s2580_s16 = smov (!%p203_p6, %s1759_s16), 1 }
  0x30   : > { %v265_v19 = vsub.f32 1.0, %v264_v11  ;;  %vm930_vm6 = vcmask 1045504   ;;  %vm958_vm7 = vcmask 1044480   ;;  %vm976_vm8 = vcmask 1043456   ;;  %s2126_s5 = sshll.u32 %s2580_s16, 5 }
  0x31   : > { %v248_v54 = vadd.f32 %v247_v50, %v246_v49  ;;  %vm1017_vm9 = vcmask 1041408   ;;  %s2138_s7 = scalar_lea.vmem %s2569_s1, %s2126_s5  ;;  %s2315_s10 = scalar_lea.vmem %s2570_s2, %s2126_s5  ;;  %vm1424_vm10 = vcmask 261121   ;;  %vm1429_vm11 = vcmask 253952  }
  0x32   : > { %v266_v30 = vmul.f32 %v1641_v3, %v265_v19  ;;  %s217_s18 = scalar_lea.vmem %s2571_s3, %s2126_s5 }
  0x34   : > { %v267_v42 = vadd.f32 %v1641_v3, %v266_v30 }
  0x36   : > { %v269_v47 = vsel %vm268_vm1, %v1641_v3, %v267_v42 }
  0x37   : > { %v272_v51 = vmul.f32 %v269_v47, %v255_v36  ;;  %v270_v52 = vmul.f32 %v269_v47, %v241_v45  ;;  %v273_v55 = vmul.f32 %v269_v47, %v262_v53  ;;  %v271_v56 = vmul.f32 %v269_v47, %v248_v54 }
  0x39   : > { %286 = vperm.xlu1 %1636, %v272_v51   ;;  %295 = vperm.xlu2 %1637, %v270_v52  }
  0x3a   : > { %276 = vperm.xlu0 %1635, %v270_v52  }
  0x41   : > { %291 = vperm.xlu1 %1636, %v273_v55   ;;  %299 = vperm.xlu2 %1637, %v271_v56  }
  0x42   : > { %281 = vperm.xlu0 %1635, %v271_v56  }
  0x49   : > { %1639 = vset.pattern.permute.xlu1 %v1710_v0  ;;  %310 = vrot.lane.b32.xlu2 %v270_v52, %s1713_s15 }
  0x4a   : > { %1638 = vset.pattern.permute.xlu0 %v1710_v0  ;;  %307 = vperm.xlu1 %1639, %v273_v55  }
  0x4b   : > { %303 = vperm.xlu0 %1638, %v272_v51  }
  0x51   : > { %314 = vrot.lane.b32.xlu2 %v272_v51, %s1713_s15 }
  0x52   : > { %312 = vrot.lane.b32.xlu1 %v271_v56, %s1713_s15 }
  0x53   : > { %316 = vrot.lane.b32.xlu0 %v273_v55, %s1713_s15 }
  0x93   : > { %v296_v57 = vpop.permute.xlu2 %295 }
  0x9b   : > { %v300_v58 = vpop.permute.xlu2 %299 }
  0xa3   : > { %v311_v60 = vpop.permute.xlu2 %310 }
  0xab   : > { %v287_v59 = vpop.permute.xlu1 %286  ;;  %v315_v8 = vpop.permute.xlu2 %314 }
  0xac   : > { %v277_v61 = vpop.permute.xlu0 %276  ;;  %v325_v9 = vsel %vm322_vm2, %v287_v59, %v315_v8 }
  0xad   : > { %v323_v62 = vsel %vm322_vm2, %v277_v61, %v311_v60 }
  0xae   : > { %v328_v63 = vsel %vm327_vm3, %v323_v62, %v296_v57 }
  0xaf   : > { %v332_v1 = vperm.slane %v328_v63, 0  ;;  %v339_v2 = vrot.slane %v328_v63, 5 }
  0xb1   : > { %v1855_v0 = vsel %vm338_vm4, %v332_v1, %v339_v2 }
  0xb2   : > { %v358_v3 = vmul.f32 -0.11550389, %v1855_v0  ;;  %v388_v28 = vmul.f32 -0.07612942, %v1855_v0  ;;  %v418_v35 = vmul.f32 0.07612942, %v1855_v0 }
  0xb3   : > { %v292_v4 = vpop.permute.xlu1 %291  ;;  %v448_v39 = vmul.f32 0.11550389, %v1855_v0  ;;  %v478_v43 = vmul.f32 0.064287595, %v1855_v0  ;;  %v513_v50 = vmul.f32 0.12203954, %v1855_v0 }
  0xb4   : > { %368 = vrot.lane.b32.xlu1 %v358_v3, %s1714_s22  ;;  %v282_v5 = vpop.permute.xlu0 %281  ;;  %v543_v54 = vmul.f32 0.2178562, %v1855_v0 }
  0xbc   : > { %v308_v6 = vpop.permute.xlu1 %307 }
  0xbd   : > { %v304_v7 = vpop.permute.xlu0 %303 }
  0xbe   : > { %v330_v10 = vsel %vm327_vm3, %v325_v9, %v304_v7 }
  0xbf   : > { %v342_v16 = vrot.slane %v330_v10, 5 }
  0xc4   : > { %v313_v11 = vpop.permute.xlu1 %312 }
  0xc5   : > { %v324_v12 = vsel %vm322_vm2, %v282_v5, %v313_v11  ;;  %v317_v13 = vpop.permute.xlu0 %316  ;;  %v1973_v11 = vmul.f32 0.032143798, %v1855_v0 }
  0xc6   : > { %v329_v14 = vsel %vm327_vm3, %v324_v12, %v300_v58  ;;  %v326_v15 = vsel %vm322_vm2, %v292_v4, %v317_v13  ;;  %v573_v58 = vmul.f32 0.25592092, %v1855_v0 }
  0xc7   : > { %v340_v17 = vrot.slane %v329_v14, 5  ;;  %v331_v18 = vsel %vm327_vm3, %v326_v15, %v308_v6 }
  0xc8   : > { %v344_v19 = vrot.slane %v331_v18, 5  ;;  %v333_v25 = vperm.slane %v331_v18, 7 }
  0xc9   : > { %v1866_v20 = vsel %vm338_vm4, %v339_v2, %v340_v17  ;;  %v1869_v21 = vsel %vm338_vm4, %v340_v17, %v342_v16 }
  0xca   : > { %v1872_v22 = vsel %vm338_vm4, %v342_v16, %v344_v19  ;;  %v359_v23 = vmul.f32 -0.11550389, %v1866_v20  ;;  %v360_v24 = vmul.f32 -0.11550389, %v1869_v21  ;;  %v1881_v27 = vsel %vm338_vm4, %v344_v19, %v333_v25 }
  0xcb   : > { %v361_v26 = vmul.f32 -0.11550389, %v1872_v22  ;;  %v362_v29 = vmul.f32 -0.11550389, %v1881_v27  ;;  %v389_v30 = vmul.f32 -0.07612942, %v1866_v20 }
  0xcc   : > { %370 = vrot.lane.b32.xlu2 %v359_v23, %s1714_s22  ;;  %372 = vrot.lane.b32.xlu0 %v360_v24, %s1714_s22  ;;  %v391_v31 = vmul.f32 -0.07612942, %v1872_v22  ;;  %v390_v32 = vmul.f32 -0.07612942, %v1869_v21  ;;  %v392_v33 = vmul.f32 -0.07612942, %v1881_v27 }
  0xcd   : > { %374 = vrot.lane.b32.xlu1 %v361_v26, %s1714_s22  ;;  %v419_v34 = vmul.f32 0.07612942, %v1866_v20  ;;  %v420_v36 = vmul.f32 0.07612942, %v1869_v21  ;;  %v422_v37 = vmul.f32 0.07612942, %v1881_v27 }
  0xce   : > { %v421_v38 = vmul.f32 0.07612942, %v1872_v22  ;;  %v450_v40 = vmul.f32 0.11550389, %v1869_v21  ;;  %v449_v41 = vmul.f32 0.11550389, %v1866_v20 }
  0xcf   : > { %v451_v42 = vmul.f32 0.11550389, %v1872_v22  ;;  %v452_v44 = vmul.f32 0.11550389, %v1881_v27  ;;  %v479_v45 = vmul.f32 0.064287595, %v1866_v20 }
  0xd0   : > { %v481_v46 = vmul.f32 0.064287595, %v1872_v22  ;;  %v480_v47 = vmul.f32 0.064287595, %v1869_v21  ;;  %v482_v48 = vmul.f32 0.064287595, %v1881_v27 }
  0xd1   : > { %v514_v49 = vmul.f32 0.12203954, %v1866_v20  ;;  %v515_v51 = vmul.f32 0.12203954, %v1869_v21  ;;  %v517_v52 = vmul.f32 0.12203954, %v1881_v27 }
  0xd2   : > { %v516_v53 = vmul.f32 0.12203954, %v1872_v22  ;;  %v545_v55 = vmul.f32 0.2178562, %v1869_v21  ;;  %v544_v56 = vmul.f32 0.2178562, %v1866_v20 }
  0xd3   : > { %v546_v57 = vmul.f32 0.2178562, %v1872_v22  ;;  %v547_v59 = vmul.f32 0.2178562, %v1881_v27  ;;  %v574_v60 = vmul.f32 0.25592092, %v1866_v20 }
  0xd4   : > { %398 = vrot.lane.b32.xlu0 %v388_v28, %s1715_s27  ;;  %376 = vrot.lane.b32.xlu2 %v362_v29, %s1714_s22  ;;  %v576_v62 = vmul.f32 0.25592092, %v1872_v22  ;;  %v575_v63 = vmul.f32 0.25592092, %v1869_v21  ;;  %v577_v1 = vmul.f32 0.25592092, %v1881_v27 }
  0xd5   : > { %400 = vrot.lane.b32.xlu1 %v389_v30, %s1715_s27  ;;  %v1976_v12 = vmul.f32 0.032143798, %v1866_v20  ;;  %v1986_v16 = vmul.f32 0.032143798, %v1872_v22  ;;  %v1989_v17 = vmul.f32 0.032143798, %v1869_v21 }
  0xd6   : > { %v1992_v18 = vmul.f32 0.032143798, %v1881_v27  ;;  %v2003_v25 = vmul.f32 0.23100778, %v1866_v20  ;;  %v2006_v26 = vmul.f32 0.23100778, %v1855_v0 }
  0xd7   : > { %v2009_v28 = vmul.f32 0.23100778, %v1869_v21  ;;  %v355_v29 = vmul.f32 -0.064287595, %v1869_v21 }
  0xdc   : > { %404 = vrot.lane.b32.xlu0 %v391_v31, %s1715_s27  ;;  %402 = vrot.lane.b32.xlu2 %v390_v32, %s1715_s27 }
  0xdd   : > { %406 = vrot.lane.b32.xlu1 %v392_v33, %s1715_s27 }
  0xe4   : > { %430 = vrot.lane.b32.xlu0 %v419_v34, %s1716_s28  ;;  %428 = vrot.lane.b32.xlu2 %v418_v35, %s1716_s28  ;;  %v2019_v34 = vmul.f32 0.23100778, %v1881_v27  ;;  %v2022_v35 = vmul.f32 0.23100778, %v1872_v22 }
  0xe5   : > { %432 = vrot.lane.b32.xlu1 %v420_v36, %s1716_s28  ;;  %v353_v36 = vmul.f32 -0.064287595, %v1855_v0 }
  0xec   : > { %436 = vrot.lane.b32.xlu0 %v422_v37, %s1716_s28  ;;  %434 = vrot.lane.b32.xlu2 %v421_v38, %s1716_s28  ;;  %v703_v38 = vmul.f32 0.28083405, %v1855_v0 }
  0xed   : > { %458 = vrot.lane.b32.xlu1 %v448_v39, %s1717_s29  ;;  %v354_v39 = vmul.f32 -0.064287595, %v1866_v20 }
  0xf4   : > { %462 = vrot.lane.b32.xlu0 %v450_v40, %s1717_s29  ;;  %460 = vrot.lane.b32.xlu2 %v449_v41, %s1717_s29 }
  0xf5   : > { %464 = vrot.lane.b32.xlu1 %v451_v42, %s1717_s29 }
  0xfc   : > { %488 = vrot.lane.b32.xlu0 %v478_v43, %s1718_s30  ;;  %466 = vrot.lane.b32.xlu2 %v452_v44, %s1717_s29  ;;  %v356_v43 = vmul.f32 -0.064287595, %v1872_v22 }
  0xfd   : > { %490 = vrot.lane.b32.xlu1 %v479_v45, %s1718_s30 }
 0x104   : > { %494 = vrot.lane.b32.xlu0 %v481_v46, %s1718_s30  ;;  %492 = vrot.lane.b32.xlu2 %v480_v47, %s1718_s30  ;;  %v2037_v46 = vmul.f32 0.21764326, %v1855_v0  ;;  %v357_v47 = vmul.f32 -0.064287595, %v1881_v27 }
 0x105   : > { %496 = vrot.lane.b32.xlu1 %v482_v48, %s1718_s30 }
 0x10c   : > { %525 = vrot.lane.b32.xlu0 %v514_v49, %s1714_s22  ;;  %523 = vrot.lane.b32.xlu2 %v513_v50, %s1714_s22 }
 0x10d   : > { %527 = vrot.lane.b32.xlu1 %v515_v51, %s1714_s22 }
 0x114   : > { %531 = vrot.lane.b32.xlu0 %v517_v52, %s1714_s22  ;;  %529 = vrot.lane.b32.xlu2 %v516_v53, %s1714_s22 }
 0x115   : > { %553 = vrot.lane.b32.xlu1 %v543_v54, %s1715_s27 }
 0x11c   : > { %557 = vrot.lane.b32.xlu0 %v545_v55, %s1715_s27  ;;  %555 = vrot.lane.b32.xlu2 %v544_v56, %s1715_s27 }
 0x11d   : > { %559 = vrot.lane.b32.xlu1 %v546_v57, %s1715_s27 }
 0x124   : > { %583 = vrot.lane.b32.xlu0 %v573_v58, %s1719_s4  ;;  %561 = vrot.lane.b32.xlu2 %v547_v59, %s1715_s27  ;;  %v704_v58 = vmul.f32 0.28083405, %v1866_v20 }
 0x125   : > { %585 = vrot.lane.b32.xlu1 %v574_v60, %s1719_s4 }
 0x126   : > { %v1949_v61 = vpop.permute.xlu2 %370  ;;  %v369_v4 = vpop.permute.xlu1 %368 }
 0x127   : > { %v383_v40 = vadd.f32 %v369_v4, %v353_v36  ;;  %v384_v42 = vadd.f32 %v1949_v61, %v354_v39 }
 0x12c   : > { %589 = vrot.lane.b32.xlu0 %v576_v62, %s1719_s4  ;;  %587 = vrot.lane.b32.xlu2 %v575_v63, %s1719_s4  ;;  %v2049_v62 = vmul.f32 0.21764326, %v1869_v21  ;;  %v2052_v63 = vmul.f32 0.21764326, %v1872_v22 }
 0x12d   : > { %591 = vrot.lane.b32.xlu1 %v577_v1, %s1719_s4 }
 0x12e   : > { %v1957_v2 = vpop.permute.xlu2 %376 }
 0x134   : > { %605 = vrot.lane.b32.xlu0 %v544_v56, %s1716_s28  ;;  %603 = vrot.lane.b32.xlu2 %v543_v54, %s1716_s28  ;;  %v705_v54 = vmul.f32 0.28083405, %v1869_v21  ;;  %v387_v56 = vadd.f32 %v1957_v2, %v357_v47 }
 0x135   : > { %607 = vrot.lane.b32.xlu1 %v545_v55, %s1716_s28  ;;  %v706_v55 = vmul.f32 0.28083405, %v1872_v22 }
 0x136   : > { %v403_v3 = vpop.permute.xlu2 %402 }
 0x13c   : > { %611 = vrot.lane.b32.xlu0 %v547_v59, %s1716_s28  ;;  %609 = vrot.lane.b32.xlu2 %v546_v57, %s1716_s28  ;;  %v707_v59 = vmul.f32 0.28083405, %v1881_v27 }
 0x13d   : > { %623 = vrot.lane.b32.xlu1 %v513_v50, %s1717_s29 }
 0x13e   : > { %v1965_v5 = vpop.permute.xlu2 %428  ;;  %v373_v6 = vpop.permute.xlu0 %372 }
 0x13f   : > { %v375_v7 = vpop.permute.xlu1 %374  ;;  %v385_v32 = vadd.f32 %v373_v6, %v355_v29 }
 0x141   : > { %v415_v37 = vadd.f32 %v403_v3, %v385_v32 }
 0x144   : > { %627 = vrot.lane.b32.xlu0 %v515_v51, %s1717_s29  ;;  %625 = vrot.lane.b32.xlu2 %v514_v49, %s1717_s29  ;;  %v2041_v51 = vmul.f32 0.23996992, %v1855_v0 }
 0x145   : > { %629 = vrot.lane.b32.xlu1 %v516_v53, %s1717_s29 }
 0x146   : > { %v1970_v8 = vpop.permute.xlu2 %434  ;;  %v399_v9 = vpop.permute.xlu0 %398 }
 0x147   : > { %v401_v10 = vpop.permute.xlu1 %400  ;;  %v413_v48 = vadd.f32 %v399_v9, %v383_v40 }
 0x148   : > { %v414_v53 = vadd.f32 %v401_v10, %v384_v42 }
 0x149   : > { %v443_v3 = vadd.f32 %v1965_v5, %v413_v48 }
 0x14c   : > { %648 = vrot.lane.b32.xlu0 %v1973_v11, %s1718_s30  ;;  %631 = vrot.lane.b32.xlu2 %v517_v52, %s1717_s29  ;;  %v386_v52 = vadd.f32 %v375_v7, %v356_v43 }
 0x14d   : > { %650 = vrot.lane.b32.xlu1 %v1976_v12, %s1718_s30 }
 0x14e   : > { %v1983_v13 = vpop.permute.xlu2 %460  ;;  %v405_v14 = vpop.permute.xlu0 %404 }
 0x14f   : > { %v407_v15 = vpop.permute.xlu1 %406  ;;  %v416_v60 = vadd.f32 %v405_v14, %v386_v52 }
 0x150   : > { %v417_v1 = vadd.f32 %v407_v15, %v387_v56 }
 0x151   : > { %v446_v5 = vadd.f32 %v1970_v8, %v416_v60 }
 0x154   : > { %654 = vrot.lane.b32.xlu0 %v1986_v16, %s1718_s30  ;;  %652 = vrot.lane.b32.xlu2 %v1989_v17, %s1718_s30 }
 0x155   : > { %656 = vrot.lane.b32.xlu1 %v1992_v18, %s1718_s30 }
 0x156   : > { %v2000_v19 = vpop.permute.xlu2 %466  ;;  %v431_v23 = vpop.permute.xlu0 %430 }
 0x157   : > { %v433_v24 = vpop.permute.xlu1 %432  ;;  %v444_v61 = vadd.f32 %v431_v23, %v414_v53 }
 0x158   : > { %v445_v41 = vadd.f32 %v433_v24, %v415_v37 }
 0x159   : > { %v474_v15 = vadd.f32 %v1983_v13, %v444_v61 }
 0x15c   : > { %685 = vrot.lane.b32.xlu0 %v2003_v25, %s1714_s22  ;;  %683 = vrot.lane.b32.xlu2 %v2006_v26, %s1714_s22 }
 0x15d   : > { %687 = vrot.lane.b32.xlu1 %v2009_v28, %s1714_s22 }
 0x15e   : > { %v493_v30 = vpop.permute.xlu2 %492  ;;  %v437_v31 = vpop.permute.xlu0 %436 }
 0x15f   : > { %v459_v33 = vpop.permute.xlu1 %458  ;;  %v447_v10 = vadd.f32 %v437_v31, %v417_v1 }
 0x160   : > { %v473_v9 = vadd.f32 %v459_v33, %v443_v3 }
 0x164   : > { %691 = vrot.lane.b32.xlu0 %v2019_v34, %s1714_s22  ;;  %689 = vrot.lane.b32.xlu2 %v2022_v35, %s1714_s22 }
 0x165   : > { %713 = vrot.lane.b32.xlu1 %v703_v38, %s1715_s27 }
 0x166   : > { %v2034_v44 = vpop.permute.xlu2 %523  ;;  %v463_v45 = vpop.permute.xlu0 %462 }
 0x167   : > { %v465_v49 = vpop.permute.xlu1 %464  ;;  %v475_v50 = vadd.f32 %v463_v45, %v445_v41  ;;  %v477_v41 = vadd.f32 %v2000_v19, %v447_v10 }
 0x168   : > { %v476_v42 = vadd.f32 %v465_v49, %v446_v5 }
 0x169   : > { %v505_v57 = vadd.f32 %v493_v30, %v475_v50 }
 0x16b   : > { %v2055_v4 = vmul.f32 0.12203954, %v505_v57  ;;  %v2057_v6 = vmul.f32 0.2178562, %v505_v57  ;;  %v2059_v2 = vmul.f32 0.032143798, %v505_v57 }
 0x16c   : > { %v2061_v7 = vmul.f32 0.25592092, %v505_v57  ;;  %717 = vrot.lane.b32.xlu0 %v705_v54, %s1715_s27  ;;  %715 = vrot.lane.b32.xlu2 %v704_v58, %s1715_s27 }
 0x16d   : > { %719 = vrot.lane.b32.xlu1 %v706_v55, %s1715_s27  ;;  %v906_v14 = vrot.slane %v2055_v4, 1  ;;  %v934_v29 = vrot.slane %v2057_v6, 2  ;;  %v980_v30 = vrot.slane %v2057_v6, 4  ;;  %v997_v8 = vrot.slane %v2055_v4, 5 }
 0x16e   : > { %v530_v23 = vpop.permute.xlu2 %529  ;;  %v489_v24 = vpop.permute.xlu0 %488  ;;  %v962_v36 = vrot.slane %v2061_v7, 3  ;;  %v1021_v37 = vrot.slane %v2059_v2, 6 }
 0x16f   : > { %v491_v32 = vpop.permute.xlu1 %490  ;;  %v2072_v31 = vadd.f32 %v530_v23, %v1986_v16  ;;  %v503_v33 = vadd.f32 %v489_v24, %v473_v9 }
 0x170   : > { %v504_v38 = vadd.f32 %v491_v32, %v474_v15 }
 0x171   : > { %v888_v39 = vmul.f32 0.032143798, %v503_v33  ;;  %v892_v13 = vmul.f32 0.12203954, %v503_v33  ;;  %v920_v40 = vmul.f32 0.2178562, %v503_v33 }
 0x172   : > { %v889_v43 = vmul.f32 0.032143798, %v504_v38  ;;  %v893_v45 = vmul.f32 0.12203954, %v504_v38  ;;  %v921_v47 = vmul.f32 0.2178562, %v504_v38 }
 0x173   : > { %v949_v16 = vmul.f32 0.25592092, %v504_v38  ;;  %v903_v48 = vrot.slane %v892_v13, 1  ;;  %v931_v50 = vrot.slane %v920_v40, 2  ;;  %v948_v52 = vmul.f32 0.25592092, %v503_v33 }
 0x174   : > { %v904_v53 = vrot.slane %v893_v45, 1  ;;  %v932_v54 = vrot.slane %v921_v47, 2  ;;  %v978_v55 = vrot.slane %v921_v47, 4  ;;  %v995_v56 = vrot.slane %v893_v45, 5  ;;  %733 = vrot.lane.b32.xlu0 %v2006_v26, %s1719_s4  ;;  %721 = vrot.lane.b32.xlu2 %v707_v59, %s1715_s27 }
 0x175   : > { %v960_v57 = vrot.slane %v949_v16, 3  ;;  %v1019_v19 = vrot.slane %v889_v43, 6  ;;  %v959_v49 = vrot.slane %v948_v52, 3  ;;  %v977_v58 = vrot.slane %v920_v40, 4  ;;  %793 = vrot.lane.b32.xlu1 %v2037_v46, %s1714_s22 }
 0x176   : > { %v907_v60 = vsel %vm902_vm5, %v904_v53, %v906_v14  ;;  %v935_v61 = vsel %vm930_vm6, %v932_v54, %v934_v29  ;;  %v981_v26 = vsel %vm976_vm8, %v978_v55, %v980_v30  ;;  %v998_v59 = vsel %vm338_vm4, %v995_v56, %v997_v8  ;;  %v2096_v1 = vpop.permute.xlu2 %555  ;;  %v495_v3 = vpop.permute.xlu0 %494 }
 0x177   : > { %v917_v9 = vadd.f32 %v907_v60, %v889_v43  ;;  %v963_v10 = vsel %vm958_vm7, %v960_v57, %v962_v36  ;;  %v1022_v5 = vsel %vm1017_vm9, %v1019_v19, %v1021_v37  ;;  %v905_v15 = vsel %vm902_vm5, %v903_v48, %v904_v53  ;;  %v497_v23 = vpop.permute.xlu1 %496 }
 0x178   : > { %v916_v24 = vadd.f32 %v905_v15, %v888_v39  ;;  %v933_v32 = vsel %vm930_vm6, %v931_v50, %v932_v54  ;;  %v961_v33 = vsel %vm958_vm7, %v959_v49, %v960_v57  ;;  %v979_v38 = vsel %vm976_vm8, %v977_v58, %v978_v55 }
 0x179   : > { %v945_v40 = vadd.f32 %v935_v61, %v917_v9  ;;  %v994_v43 = vrot.slane %v892_v13, 5  ;;  %v1018_v45 = vrot.slane %v888_v39, 6  ;;  %v507_v47 = vadd.f32 %v497_v23, %v477_v41 }
 0x17a   : > { %v944_v16 = vadd.f32 %v933_v32, %v916_v24  ;;  %v506_v52 = vadd.f32 %v495_v3, %v476_v42  ;;  %v2112_v60 = vmul.f32 0.21764326, %v1866_v20  ;;  %v814_v48 = vmul.f32 0.23996992, %v1866_v20 }
 0x17b   : > { %v973_v53 = vadd.f32 %v963_v10, %v945_v40  ;;  %v996_v50 = vsel %vm338_vm4, %v994_v43, %v995_v56  ;;  %v1020_v54 = vsel %vm1017_vm9, %v1018_v45, %v1019_v19  ;;  %v896_v57 = vmul.f32 0.12203954, %v507_v47 }
 0x17c   : > { %v972_v55 = vadd.f32 %v961_v33, %v944_v16  ;;  %v924_v49 = vmul.f32 0.2178562, %v507_v47  ;;  %v952_v13 = vmul.f32 0.25592092, %v507_v47  ;;  %v1011_v39 = vmul.f32 0.032143798, %v507_v47  ;;  %797 = vrot.lane.b32.xlu0 %v2049_v62, %s1714_s22  ;;  %795 = vrot.lane.b32.xlu2 %v2112_v60, %s1714_s22 }
 0x17d   : > { %v991_v41 = vadd.f32 %v981_v26, %v973_v53  ;;  %v910_v42 = vrot.slane %v896_v57, 1  ;;  %v891_v58 = vmul.f32 0.032143798, %v506_v52  ;;  %799 = vrot.lane.b32.xlu1 %v2052_v63, %s1714_s22  ;;  %v2124_v56 = vmul.f32 0.21764326, %v1881_v27 }
 0x17e   : > { %v990_v19 = vadd.f32 %v979_v38, %v972_v55  ;;  %v938_v61 = vrot.slane %v924_v49, 2  ;;  %v966_v3 = vrot.slane %v952_v13, 3  ;;  %v1001_v9 = vrot.slane %v896_v57, 5  ;;  %v2128_v10 = vpop.permute.xlu2 %561  ;;  %v2130_v15 = vpop.permute.xlu0 %525 }
 0x17f   : > { %v1008_v26 = vadd.f32 %v998_v59, %v991_v41  ;;  %v984_v23 = vrot.slane %v924_v49, 4  ;;  %v895_v24 = vmul.f32 0.12203954, %v506_v52  ;;  %v923_v32 = vmul.f32 0.2178562, %v506_v52  ;;  %v2132_v33 = vpop.permute.xlu1 %527 }
 0x180   : > { %v1007_v40 = vadd.f32 %v996_v50, %v990_v19  ;;  %v1025_v43 = vrot.slane %v1011_v39, 6  ;;  %v951_v45 = vmul.f32 0.25592092, %v506_v52  ;;  %v1023_v47 = vrot.slane %v891_v58, 6 }
 0x181   : > { %v1032_v38 = vadd.f32 %v1022_v5, %v1008_v26  ;;  %v908_v16 = vrot.slane %v895_v24, 1  ;;  %v936_v53 = vrot.slane %v923_v32, 2  ;;  %v982_v57 = vrot.slane %v923_v32, 4 }
 0x182   : > { %v1031_v59 = vadd.f32 %v1020_v54, %v1007_v40  ;;  %v964_v55 = vrot.slane %v951_v45, 3  ;;  %v999_v49 = vrot.slane %v895_v24, 5  ;;  %v1024_v50 = vsel %vm1017_vm9, %v1021_v37, %v1023_v47 }
 0x183   : > { %v909_v52 = vsel %vm902_vm5, %v906_v14, %v908_v16  ;;  %v911_v13 = vsel %vm902_vm5, %v908_v16, %v910_v42  ;;  %v937_v5 = vsel %vm930_vm6, %v934_v29, %v936_v53  ;;  %v939_v39 = vsel %vm930_vm6, %v936_v53, %v938_v61  ;;  %1036 = vst.msk [vmem:[%s2138_s7 + $0x8] sm:$0xff] %vm234_vm0, %v1032_v38 }
 0x184   : > { %v918_v54 = vadd.f32 %v909_v52, %v2059_v2  ;;  %v919_v41 = vadd.f32 %v911_v13, %v891_v58  ;;  %v965_v37 = vsel %vm958_vm7, %v962_v36, %v964_v55  ;;  %v967_v14 = vsel %vm958_vm7, %v964_v55, %v966_v3  ;;  %823 = vrot.lane.b32.xlu0 %v2041_v51, %s1715_s27 }
 0x185   : > { %v983_v29 = vsel %vm976_vm8, %v980_v30, %v982_v57  ;;  %v985_v42 = vsel %vm976_vm8, %v982_v57, %v984_v23  ;;  %v1000_v2 = vsel %vm338_vm4, %v997_v8, %v999_v49  ;;  %v1002_v7 = vsel %vm338_vm4, %v999_v49, %v1001_v9  ;;  %825 = vrot.lane.b32.xlu1 %v814_v48, %s1715_s27 }
 0x186   : > { %v946_v36 = vadd.f32 %v937_v5, %v918_v54  ;;  %v947_v58 = vadd.f32 %v939_v39, %v919_v41  ;;  %v1026_v19 = vsel %vm1017_vm9, %v1023_v47, %v1025_v43  ;;  %801 = vrot.lane.b32.xlu2 %v2124_v56, %s1714_s22  ;;  %v588_v51 = vpop.permute.xlu2 %587  ;;  %v532_v6 = vpop.permute.xlu0 %531  ;;  %1035 = vst.msk [vmem:[%s2138_s7] sm:$0xff] %vm234_vm0, %v1031_v59  ;;  %v816_v48 = vmul.f32 0.23996992, %v1872_v22 }
 0x187   : > { %v554_v30 = vpop.permute.xlu1 %553  ;;  %v817_v9 = vmul.f32 0.23996992, %v1881_v27  ;;  %v815_v24 = vmul.f32 0.23996992, %v1869_v21  ;;  %v539_v52 = vadd.f32 %v2130_v15, %v1976_v12  ;;  %v2223_v13 = vmul.f32 0.12857519, %v1881_v27 }
 0x188   : > { %v974_v61 = vadd.f32 %v965_v37, %v946_v36  ;;  %v975_v4 = vadd.f32 %v967_v14, %v947_v58  ;;  %v538_v5 = vadd.f32 %v2034_v44, %v1973_v11  ;;  %v542_v12 = vadd.f32 %v532_v6, %v1992_v18 }
 0x189   : > { %v569_v15 = vadd.f32 %v2096_v1, %v539_v52  ;;  %v2247_v1 = vmul.f32 0.16237177, %v1872_v22  ;;  %v2250_v58 = vmul.f32 0.16237177, %v1866_v20 }
 0x18a   : > { %v992_v8 = vadd.f32 %v983_v29, %v974_v61  ;;  %v993_v3 = vadd.f32 %v985_v42, %v975_v4  ;;  %v568_v54 = vadd.f32 %v554_v30, %v538_v5  ;;  %v572_v36 = vadd.f32 %v2128_v10, %v542_v12 }
 0x18c   : > { %v1009_v26 = vadd.f32 %v1000_v2, %v992_v8  ;;  %v1010_v23 = vadd.f32 %v1002_v7, %v993_v3  ;;  %829 = vrot.lane.b32.xlu0 %v816_v48, %s1715_s27  ;;  %v2243_v7 = vmul.f32 0.16237177, %v1869_v21 }
 0x18d   : > { %831 = vrot.lane.b32.xlu1 %v817_v9, %s1715_s27  ;;  %v2275_v9 = vmul.f32 0.16237177, %v1881_v27 }
 0x18e   : > { %v1033_v32 = vadd.f32 %v1024_v50, %v1009_v26  ;;  %v1034_v40 = vadd.f32 %v1026_v19, %v1010_v23  ;;  %827 = vrot.lane.b32.xlu2 %v815_v24, %s1715_s27  ;;  %v604_v43 = vpop.permute.xlu2 %603  ;;  %v558_v45 = vpop.permute.xlu0 %557 }
 0x18f   : > { %v560_v47 = vpop.permute.xlu1 %559 }
 0x190   : > { %1037 = vst.msk [vmem:[%s2138_s7 + $0x10] sm:$0xff] %vm234_vm0, %v1033_v32  ;;  %v571_v19 = vadd.f32 %v560_v47, %v2072_v31 }
 0x191   : > { %1038 = vst.msk [vmem:[%s2138_s7 + $0x18] sm:$0xff] %vm234_vm0, %v1034_v40 }
 0x194   : > { %737 = vrot.lane.b32.xlu0 %v2009_v28, %s1719_s4 }
 0x195   : > { %739 = vrot.lane.b32.xlu1 %v2022_v35, %s1719_s4 }
 0x196   : > { %735 = vrot.lane.b32.xlu2 %v2003_v25, %s1719_s4  ;;  %v2190_v38 = vpop.permute.xlu2 %609  ;;  %v584_v16 = vpop.permute.xlu0 %583 }
 0x197   : > { %v586_v53 = vpop.permute.xlu1 %585 }
 0x198   : > { %v599_v42 = vadd.f32 %v586_v53, %v569_v15 }
 0x19c   : > { %843 = vrot.lane.b32.xlu0 %v2037_v46, %s1719_s4 }
 0x19d   : > { %845 = vrot.lane.b32.xlu1 %v2112_v60, %s1719_s4  ;;  %v2207_v60 = vmul.f32 0.12857519, %v1866_v20 }
 0x19e   : > { %741 = vrot.lane.b32.xlu2 %v2019_v34, %s1719_s4  ;;  %v626_v28 = vpop.permute.xlu2 %625  ;;  %v590_v57 = vpop.permute.xlu0 %589  ;;  %v2210_v34 = vmul.f32 0.12857519, %v1869_v21 }
 0x19f   : > { %v592_v59 = vpop.permute.xlu1 %591  ;;  %v601_v20 = vadd.f32 %v590_v57, %v571_v19 }
 0x1a0   : > { %v602_v21 = vadd.f32 %v592_v59, %v572_v36 }
 0x1a1   : > { %v621_v53 = vadd.f32 %v2190_v38, %v601_v20 }
 0x1a4   : > { %849 = vrot.lane.b32.xlu0 %v2052_v63, %s1719_s4  ;;  %v668_v63 = vmul.f32 0.12857519, %v1855_v0 }
 0x1a5   : > { %851 = vrot.lane.b32.xlu1 %v2124_v56, %s1719_s4  ;;  %v540_v56 = vadd.f32 %v2132_v33, %v1989_v17  ;;  %v2228_v17 = vmul.f32 0.16237177, %v1855_v0  ;;  %v671_v33 = vmul.f32 0.12857519, %v1872_v22  ;;  %v598_v0 = vadd.f32 %v584_v16, %v568_v54 }
 0x1a6   : > { %847 = vrot.lane.b32.xlu2 %v2049_v62, %s1719_s4  ;;  %v2204_v25 = vpop.permute.xlu2 %631  ;;  %v606_v35 = vpop.permute.xlu0 %605 }
 0x1a7   : > { %v608_v46 = vpop.permute.xlu1 %607  ;;  %v570_v49 = vadd.f32 %v558_v45, %v540_v56  ;;  %v619_v18 = vadd.f32 %v606_v35, %v599_v42 }
 0x1a9   : > { %v600_v39 = vadd.f32 %v588_v51, %v570_v49  ;;  %v618_v51 = vadd.f32 %v604_v43, %v598_v0  ;;  %v639_v8 = vadd.f32 %v626_v28, %v619_v18 }
 0x1ab   : > { %v620_v41 = vadd.f32 %v608_v46, %v600_v39 }
 0x1ac   : > { %760 = vrot.lane.b32.xlu0 %v2207_v60, %s1716_s28 }
 0x1ad   : > { %762 = vrot.lane.b32.xlu1 %v2210_v34, %s1716_s28 }
 0x1ae   : > { %758 = vrot.lane.b32.xlu2 %v668_v63, %s1716_s28  ;;  %v653_v62 = vpop.permute.xlu2 %652  ;;  %v612_v55 = vpop.permute.xlu0 %611 }
 0x1af   : > { %v624_v50 = vpop.permute.xlu1 %623  ;;  %v622_v4 = vadd.f32 %v612_v55, %v602_v21 }
 0x1b0   : > { %v638_v31 = vadd.f32 %v624_v50, %v618_v51 }
 0x1b4   : > { %766 = vrot.lane.b32.xlu0 %v2223_v13, %s1716_s28 }
 0x1b5   : > { %868 = vrot.lane.b32.xlu1 %v2228_v17, %s1716_s28 }
 0x1b6   : > { %764 = vrot.lane.b32.xlu2 %v671_v33, %s1716_s28  ;;  %v684_v11 = vpop.permute.xlu2 %683  ;;  %v628_v44 = vpop.permute.xlu0 %627 }
 0x1b7   : > { %v630_v37 = vpop.permute.xlu1 %629  ;;  %v2238_v14 = vadd.f32 %v684_v11, %v668_v63  ;;  %v640_v29 = vadd.f32 %v628_v44, %v620_v41  ;;  %v642_v63 = vadd.f32 %v2204_v25, %v622_v4 }
 0x1b8   : > { %v641_v56 = vadd.f32 %v630_v37, %v621_v53 }
 0x1b9   : > { %v2240_v2 = vadd.f32 %v653_v62, %v640_v29 }
 0x1bb   : > { %v2254_v6 = vmul.f32 -0.11550389, %v2240_v2  ;;  %v2257_v30 = vmul.f32 -0.07612942, %v2240_v2  ;;  %v2260_v61 = vmul.f32 0.07612942, %v2240_v2 }
 0x1bc   : > { %v2263_v10 = vmul.f32 0.11550389, %v2240_v2  ;;  %v2266_v22 = vmul.f32 0.064287595, %v2240_v2  ;;  %872 = vrot.lane.b32.xlu0 %v2243_v7, %s1716_s28 }
 0x1bd   : > { %874 = vrot.lane.b32.xlu1 %v2247_v1, %s1716_s28  ;;  %v1056_v26 = vrot.slane %v2254_v6, 1  ;;  %v1083_v23 = vrot.slane %v2257_v30, 2  ;;  %v1110_v43 = vrot.slane %v2260_v61, 4 }
 0x1be   : > { %870 = vrot.lane.b32.xlu2 %v2250_v58, %s1716_s28  ;;  %v690_v3 = vpop.permute.xlu2 %689  ;;  %v649_v48 = vpop.permute.xlu0 %648  ;;  %v1137_v45 = vrot.slane %v2263_v10, 5  ;;  %v1164_v47 = vrot.slane %v2266_v22, 6 }
 0x1bf   : > { %v651_v24 = vpop.permute.xlu1 %650  ;;  %v2279_v32 = vadd.f32 %v690_v3, %v671_v33  ;;  %v663_v40 = vadd.f32 %v649_v48, %v638_v31 }
 0x1c0   : > { %v664_v16 = vadd.f32 %v651_v24, %v639_v8 }
 0x1c1   : > { %v1039_v28 = vmul.f32 -0.064287595, %v663_v40  ;;  %v1043_v27 = vmul.f32 -0.11550389, %v663_v40  ;;  %v1070_v57 = vmul.f32 -0.07612942, %v663_v40 }
 0x1c2   : > { %v1040_v59 = vmul.f32 -0.064287595, %v664_v16  ;;  %v1044_v35 = vmul.f32 -0.11550389, %v664_v16  ;;  %v1071_v46 = vmul.f32 -0.07612942, %v664_v16 }
 0x1c3   : > { %v1098_v62 = vmul.f32 0.07612942, %v664_v16  ;;  %v1125_v55 = vmul.f32 0.11550389, %v664_v16  ;;  %v1152_v49 = vmul.f32 0.064287595, %v664_v16 }
 0x1c4   : > { %v1054_v50 = vrot.slane %v1044_v35, 1  ;;  %v1081_v52 = vrot.slane %v1071_v46, 2  ;;  %v1053_v5 = vrot.slane %v1043_v27, 1  ;;  %v1080_v39 = vrot.slane %v1070_v57, 2 }
 0x1c5   : > { %v1108_v33 = vrot.slane %v1098_v62, 4  ;;  %v1135_v54 = vrot.slane %v1125_v55, 5  ;;  %v1162_v41 = vrot.slane %v1152_v49, 6  ;;  %v1097_v38 = vmul.f32 0.07612942, %v663_v40 }
 0x1c6   : > { %v1057_v12 = vsel %vm902_vm5, %v1054_v50, %v1056_v26  ;;  %v1084_v25 = vsel %vm930_vm6, %v1081_v52, %v1083_v23  ;;  %v1055_v15 = vsel %vm902_vm5, %v1053_v5, %v1054_v50  ;;  %v1082_v11 = vsel %vm930_vm6, %v1080_v39, %v1081_v52  ;;  %876 = vrot.lane.b32.xlu2 %v2275_v9, %s1716_s28  ;;  %v2296_v44 = vpop.permute.xlu2 %715  ;;  %v655_v0 = vpop.permute.xlu0 %654 }
 0x1c7   : > { %v1067_v37 = vadd.f32 %v1057_v12, %v1040_v59  ;;  %v1111_v29 = vsel %vm976_vm8, %v1108_v33, %v1110_v43  ;;  %v1138_v42 = vsel %vm338_vm4, %v1135_v54, %v1137_v45  ;;  %v1165_v36 = vsel %vm1017_vm9, %v1162_v41, %v1164_v47  ;;  %v657_v18 = vpop.permute.xlu1 %656 }
 0x1c8   : > { %v1066_v19 = vadd.f32 %v1055_v15, %v1039_v28  ;;  %v1107_v51 = vrot.slane %v1097_v38, 4  ;;  %v1124_v21 = vmul.f32 0.11550389, %v663_v40  ;;  %v1151_v20 = vmul.f32 0.064287595, %v663_v40 }
 0x1c9   : > { %v1094_v31 = vadd.f32 %v1084_v25, %v1067_v37  ;;  %v667_v4 = vadd.f32 %v657_v18, %v642_v63  ;;  %v666_v8 = vadd.f32 %v655_v0, %v641_v56  ;;  %v1041_v40 = vmul.f32 -0.064287595, %v2240_v2 }
 0x1ca   : > { %v1093_v3 = vadd.f32 %v1082_v11, %v1066_v19  ;;  %v1109_v48 = vsel %vm976_vm8, %v1107_v51, %v1108_v33  ;;  %v1134_v24 = vrot.slane %v1124_v21, 5  ;;  %v1161_v16 = vrot.slane %v1151_v20, 6 }
 0x1cb   : > { %v1121_v53 = vadd.f32 %v1111_v29, %v1094_v31  ;;  %v1047_v27 = vmul.f32 -0.11550389, %v667_v4  ;;  %v1074_v57 = vmul.f32 -0.07612942, %v667_v4  ;;  %v1101_v59 = vmul.f32 0.07612942, %v667_v4 }
 0x1cc   : > { %v1120_v35 = vadd.f32 %v1109_v48, %v1093_v3  ;;  %v1136_v46 = vsel %vm338_vm4, %v1134_v24, %v1135_v54  ;;  %v1163_v28 = vsel %vm1017_vm9, %v1161_v16, %v1162_v41  ;;  %v1128_v62 = vmul.f32 0.11550389, %v667_v4 }
 0x1cd   : > { %v1148_v63 = vadd.f32 %v1138_v42, %v1121_v53  ;;  %v1060_v56 = vrot.slane %v1047_v27, 1  ;;  %v1087_v55 = vrot.slane %v1074_v57, 2  ;;  %v1114_v50 = vrot.slane %v1101_v59, 4 }
 0x1ce   : > { %v1147_v49 = vadd.f32 %v1136_v46, %v1120_v35  ;;  %v1141_v52 = vrot.slane %v1128_v62, 5  ;;  %v1155_v5 = vmul.f32 0.064287595, %v667_v4  ;;  %v722_v39 = vpop.permute.xlu2 %721  ;;  %v686_v33 = vpop.permute.xlu0 %685  ;;  %v1046_v41 = vmul.f32 -0.11550389, %v666_v8 }
 0x1cf   : > { %v1175_v54 = vadd.f32 %v1165_v36, %v1148_v63  ;;  %v1073_v38 = vmul.f32 -0.07612942, %v666_v8  ;;  %v1100_v2 = vmul.f32 0.07612942, %v666_v8  ;;  %v688_v12 = vpop.permute.xlu1 %687  ;;  %v1127_v11 = vmul.f32 0.11550389, %v666_v8 }
 0x1d0   : > { %v1174_v25 = vadd.f32 %v1163_v28, %v1147_v49  ;;  %v1168_v15 = vrot.slane %v1155_v5, 6  ;;  %v1154_v0 = vmul.f32 0.064287595, %v666_v8  ;;  %v1058_v37 = vrot.slane %v1046_v41, 1 }
 0x1d1   : > { %v1085_v29 = vrot.slane %v1073_v38, 2  ;;  %v1112_v42 = vrot.slane %v1100_v2, 4  ;;  %v700_v18 = vadd.f32 %v688_v12, %v2210_v34  ;;  %1179 = vst.msk [vmem:[%s2315_s10 + $0x8] sm:$0xff] %vm234_vm0, %v1175_v54  ;;  %v1042_v19 = vmul.f32 -0.064287595, %v666_v8 }
 0x1d2   : > { %v1139_v51 = vrot.slane %v1127_v11, 5  ;;  %v1166_v21 = vrot.slane %v1154_v0, 6  ;;  %v699_v36 = vadd.f32 %v686_v33, %v2207_v60  ;;  %1178 = vst.msk [vmem:[%s2315_s10] sm:$0xff] %vm234_vm0, %v1174_v25  ;;  %v1059_v20 = vsel %vm902_vm5, %v1056_v26, %v1058_v37 }
 0x1d3   : > { %v1061_v31 = vsel %vm902_vm5, %v1058_v37, %v1060_v56  ;;  %v1086_v4 = vsel %vm930_vm6, %v1083_v23, %v1085_v29  ;;  %v1088_v34 = vsel %vm930_vm6, %v1085_v29, %v1087_v55  ;;  %v1068_v3 = vadd.f32 %v1059_v20, %v1041_v40 }
 0x1d4   : > { %v1069_v8 = vadd.f32 %v1061_v31, %v1042_v19  ;;  %v1113_v60 = vsel %vm976_vm8, %v1110_v43, %v1112_v42  ;;  %v1115_v48 = vsel %vm976_vm8, %v1112_v42, %v1114_v50  ;;  %v1140_v6 = vsel %vm338_vm4, %v1137_v45, %v1139_v51 }
 0x1d5   : > { %v1142_v26 = vsel %vm338_vm4, %v1139_v51, %v1141_v52  ;;  %v1167_v30 = vsel %vm1017_vm9, %v1164_v47, %v1166_v21  ;;  %v1169_v23 = vsel %vm1017_vm9, %v1166_v21, %v1168_v15  ;;  %v1095_v24 = vadd.f32 %v1086_v4, %v1068_v3 }
 0x1d6   : > { %v1096_v16 = vadd.f32 %v1088_v34, %v1069_v8  ;;  %v796_v61 = vpop.permute.xlu2 %795  ;;  %v692_v53 = vpop.permute.xlu0 %691  ;;  %v729_v43 = vadd.f32 %v2296_v44, %v699_v36 }
 0x1d7   : > { %v714_v27 = vpop.permute.xlu1 %713  ;;  %v702_v10 = vadd.f32 %v692_v53, %v2223_v13  ;;  %v1122_v45 = vadd.f32 %v1113_v60, %v1095_v24 }
 0x1d8   : > { %v1123_v57 = vadd.f32 %v1115_v48, %v1096_v16  ;;  %v728_v59 = vadd.f32 %v714_v27, %v2238_v14 }
 0x1d9   : > { %v732_v22 = vadd.f32 %v722_v39, %v702_v10  ;;  %v1149_v35 = vadd.f32 %v1140_v6, %v1122_v45 }
 0x1da   : > { %v1150_v47 = vadd.f32 %v1142_v26, %v1123_v57 }
 0x1db   : > { %v1176_v46 = vadd.f32 %v1167_v30, %v1149_v35 }
 0x1dc   : > { %v1177_v28 = vadd.f32 %v1169_v23, %v1150_v47 }
 0x1dd   : > { %1180 = vst.msk [vmem:[%s2315_s10 + $0x10] sm:$0xff] %vm234_vm0, %v1176_v46 }
 0x1de   : > { %v718_v62 = vpop.permute.xlu0 %717  ;;  %1181 = vst.msk [vmem:[%s2315_s10 + $0x18] sm:$0xff] %vm234_vm0, %v1177_v28 }
 0x1df   : > { %v720_v40 = vpop.permute.xlu1 %719  ;;  %v730_v63 = vadd.f32 %v718_v62, %v700_v18 }
 0x1e0   : > { %v731_v44 = vadd.f32 %v720_v40, %v2279_v32  ;;  %v802_v56 = vpop.permute.xlu2 %801  ;;  %v809_v32 = vadd.f32 %v796_v61, %v2250_v58 }
 0x1e1   : > { %v812_v31 = vadd.f32 %v802_v56, %v2275_v9 }
 0x1e6   : > { %v734_v13 = vpop.permute.xlu0 %733 }
 0x1e7   : > { %v794_v55 = vpop.permute.xlu1 %793  ;;  %v748_v37 = vadd.f32 %v734_v13, %v728_v59 }
 0x1e8   : > { %v828_v49 = vpop.permute.xlu2 %827  ;;  %v808_v4 = vadd.f32 %v794_v55, %v2228_v17 }
 0x1ee   : > { %v798_v50 = vpop.permute.xlu0 %797 }
 0x1ef   : > { %v800_v14 = vpop.permute.xlu1 %799  ;;  %v810_v42 = vadd.f32 %v798_v50, %v2243_v7 }
 0x1f0   : > { %v736_v52 = vpop.permute.xlu2 %735  ;;  %v811_v34 = vadd.f32 %v800_v14, %v2247_v1 }
 0x1f1   : > { %v749_v3 = vadd.f32 %v736_v52, %v729_v43  ;;  %v840_v60 = vadd.f32 %v828_v49, %v810_v42 }
 0x1f6   : > { %v824_v5 = vpop.permute.xlu0 %823 }
 0x1f7   : > { %v826_v39 = vpop.permute.xlu1 %825  ;;  %v838_v6 = vadd.f32 %v824_v5, %v808_v4 }
 0x1f8   : > { %v742_v33 = vpop.permute.xlu2 %741  ;;  %v839_v18 = vadd.f32 %v826_v39, %v809_v32 }
 0x1f9   : > { %v2366_v9 = vadd.f32 %v742_v33, %v732_v22 }
 0x1fe   : > { %v830_v54 = vpop.permute.xlu0 %829 }
 0x1ff   : > { %v832_v41 = vpop.permute.xlu1 %831  ;;  %v841_v17 = vadd.f32 %v830_v54, %v811_v34 }
 0x200   : > { %v848_v38 = vpop.permute.xlu2 %847  ;;  %v842_v16 = vadd.f32 %v832_v41, %v812_v31 }
 0x201   : > { %v2372_v61 = vadd.f32 %v848_v38, %v840_v60 }
 0x206   : > { %v738_v2 = vpop.permute.xlu0 %737 }
 0x207   : > { %v740_v12 = vpop.permute.xlu1 %739  ;;  %v750_v57 = vadd.f32 %v738_v2, %v730_v63 }
 0x208   : > { %v759_v25 = vpop.permute.xlu2 %758  ;;  %v751_v29 = vadd.f32 %v740_v12, %v731_v44 }
 0x209   : > { %v773_v19 = vadd.f32 %v759_v25, %v748_v37 }
 0x20b   : > { %v2356_v58 = vmul.f32 0.23100778, %v773_v19  ;;  %v2358_v48 = vmul.f32 0.28083405, %v773_v19  ;;  %v2360_v26 = vmul.f32 0.12857519, %v773_v19 }
 0x20d   : > { %v1303_v27 = vrot.slane %v2356_v58, 1  ;;  %v1332_v10 = vrot.slane %v2358_v48, 2  ;;  %v1351_v45 = vrot.slane %v2356_v58, 3  ;;  %v1375_v59 = vrot.slane %v2360_v26, 4 }
 0x20e   : > { %v844_v15 = vpop.permute.xlu0 %843 }
 0x20f   : > { %v846_v11 = vpop.permute.xlu1 %845  ;;  %v858_v33 = vadd.f32 %v844_v15, %v838_v6 }
 0x210   : > { %v765_v0 = vpop.permute.xlu2 %764  ;;  %v859_v36 = vadd.f32 %v846_v11, %v839_v18 }
 0x211   : > { %v776_v51 = vadd.f32 %v765_v0, %v751_v29 }
 0x213   : > { %v2362_v30 = vmul.f32 0.23100778, %v776_v51  ;;  %v2364_v23 = vmul.f32 0.28083405, %v776_v51  ;;  %v2368_v24 = vmul.f32 0.12857519, %v776_v51 }
 0x215   : > { %v1308_v22 = vrot.slane %v2362_v30, 1  ;;  %v1337_v35 = vrot.slane %v2364_v23, 2  ;;  %v1356_v47 = vrot.slane %v2362_v30, 3  ;;  %v1380_v28 = vrot.slane %v2368_v24, 4 }
 0x216   : > { %v850_v21 = vpop.permute.xlu0 %849 }
 0x217   : > { %v852_v20 = vpop.permute.xlu1 %851  ;;  %v861_v2 = vadd.f32 %v850_v21, %v841_v17 }
 0x218   : > { %v871_v8 = vpop.permute.xlu2 %870  ;;  %v862_v62 = vadd.f32 %v852_v20, %v842_v16 }
 0x219   : > { %v884_v7 = vadd.f32 %v871_v8, %v859_v36 }
 0x21b   : > { %v2370_v1 = vmul.f32 0.21764326, %v884_v7  ;;  %v2374_v53 = vmul.f32 0.16237177, %v884_v7  ;;  %v2376_v43 = vmul.f32 0.23996992, %v884_v7 }
 0x21d   : > { %v1198_v40 = vrot.slane %v2370_v1, 1  ;;  %v1227_v13 = vrot.slane %v2376_v43, 2  ;;  %v1246_v63 = vrot.slane %v2370_v1, 3  ;;  %v1270_v55 = vrot.slane %v2374_v53, 4 }
 0x21e   : > { %v761_v46 = vpop.permute.xlu0 %760 }
 0x21f   : > { %v763_v44 = vpop.permute.xlu1 %762  ;;  %v774_v56 = vadd.f32 %v761_v46, %v749_v3 }
 0x220   : > { %v775_v49 = vadd.f32 %v763_v44, %v750_v57  ;;  %v877_v50 = vpop.permute.xlu2 %876 }
 0x221   : > { %v887_v14 = vadd.f32 %v877_v50, %v862_v62  ;;  %v2390_v52 = vmul.f32 0.12857519, %v774_v56  ;;  %v2392_v5 = vmul.f32 0.23100778, %v774_v56  ;;  %v1323_v39 = vmul.f32 0.28083405, %v774_v56 }
 0x222   : > { %v2394_v54 = vmul.f32 0.12857519, %v775_v49  ;;  %v2396_v41 = vmul.f32 0.23100778, %v775_v49  ;;  %v1324_v38 = vmul.f32 0.28083405, %v775_v49 }
 0x223   : > { %v2398_v12 = vmul.f32 0.16237177, %v887_v14  ;;  %v2400_v25 = vmul.f32 0.21764326, %v887_v14  ;;  %v2402_v11 = vmul.f32 0.23996992, %v887_v14 }
 0x224   : > { %v1306_v0 = vrot.slane %v2396_v41, 1  ;;  %v1335_v32 = vrot.slane %v1324_v38, 2  ;;  %v1354_v37 = vrot.slane %v2396_v41, 3  ;;  %v1378_v29 = vrot.slane %v2394_v54, 4 }
 0x225   : > { %v1204_v15 = vrot.slane %v2400_v25, 1  ;;  %v1233_v42 = vrot.slane %v2402_v11, 2  ;;  %v1252_v18 = vrot.slane %v2400_v25, 3  ;;  %v1276_v19 = vrot.slane %v2398_v12, 4 }
 0x226   : > { %v1309_v51 = vsel %vm902_vm5, %v1306_v0, %v1308_v22  ;;  %v1338_v21 = vsel %vm930_vm6, %v1335_v32, %v1337_v35  ;;  %v1304_v36 = vrot.slane %v2392_v5, 1  ;;  %v1333_v20 = vrot.slane %v1323_v39, 2  ;;  %v767_v31 = vpop.permute.xlu0 %766 }
 0x227   : > { %v1319_v4 = vadd.f32 %v1309_v51, %v2394_v54  ;;  %v1215_v34 = vadd.f32 %v1204_v15, %v2398_v12  ;;  %v1352_v3 = vrot.slane %v2392_v5, 3  ;;  %v1376_v8 = vrot.slane %v2390_v52, 4  ;;  %v869_v60 = vpop.permute.xlu1 %868 }
 0x228   : > { %v1305_v58 = vsel %vm902_vm5, %v1303_v27, %v1304_v36  ;;  %v1307_v48 = vsel %vm902_vm5, %v1304_v36, %v1306_v0  ;;  %v1334_v7 = vsel %vm930_vm6, %v1332_v10, %v1333_v20  ;;  %v1336_v6 = vsel %vm930_vm6, %v1333_v20, %v1335_v32 }
 0x229   : > { %v2428_v17 = vadd.f32 %v1338_v21, %v1319_v4  ;;  %v2432_v16 = vadd.f32 %v1233_v42, %v1215_v34  ;;  %v1318_v57 = vadd.f32 %v1307_v48, %v2390_v52  ;;  %v883_v46 = vadd.f32 %v869_v60, %v858_v33 }
 0x22a   : > { %v777_v62 = vadd.f32 %v767_v31, %v2366_v9  ;;  %v1317_v44 = vadd.f32 %v1305_v58, %v2360_v26  ;;  %v1353_v27 = vsel %vm958_vm7, %v1351_v45, %v1352_v3  ;;  %v1377_v10 = vsel %vm976_vm8, %v1375_v59, %v1376_v8 }
 0x22b   : > { %v2443_v56 = vadd.f32 %v1336_v6, %v1318_v57  ;;  %v1182_v49 = vmul.f32 0.16237177, %v883_v46  ;;  %v1187_v50 = vmul.f32 0.21764326, %v883_v46  ;;  %v1216_v14 = vmul.f32 0.23996992, %v883_v46 }
 0x22c   : > { %v2445_v39 = vmul.f32 0.12857519, %v777_v62  ;;  %v2447_v33 = vmul.f32 0.23100778, %v777_v62  ;;  %v1326_v9 = vmul.f32 0.28083405, %v777_v62  ;;  %v1346_v38 = vadd.f32 %v1334_v7, %v1317_v44 }
 0x22d   : > { %v1197_v26 = vrot.slane %v1187_v50, 1  ;;  %v1226_v0 = vrot.slane %v1216_v14, 2  ;;  %v1245_v32 = vrot.slane %v1187_v50, 3  ;;  %v1269_v51 = vrot.slane %v1182_v49, 4 }
 0x22e   : > { %v1310_v45 = vrot.slane %v2447_v33, 1  ;;  %v1339_v21 = vrot.slane %v1326_v9, 2  ;;  %v1358_v59 = vrot.slane %v2447_v33, 3  ;;  %v1382_v36 = vrot.slane %v2445_v39, 4  ;;  %v873_v20 = vpop.permute.xlu0 %872 }
 0x22f   : > { %v1199_v31 = vsel %vm902_vm5, %v1197_v26, %v1198_v40  ;;  %v1228_v4 = vsel %vm930_vm6, %v1226_v0, %v1227_v13  ;;  %v875_v34 = vpop.permute.xlu1 %874  ;;  %v885_v60 = vadd.f32 %v873_v20, %v2372_v61  ;;  %v1247_v58 = vsel %vm958_vm7, %v1245_v32, %v1246_v63 }
 0x230   : > { %v1211_v48 = vadd.f32 %v1199_v31, %v1182_v49  ;;  %v1311_v7 = vsel %vm902_vm5, %v1308_v22, %v1310_v45  ;;  %v1321_v6 = vadd.f32 %v1310_v45, %v2445_v39  ;;  %v1340_v57 = vsel %vm930_vm6, %v1337_v35, %v1339_v21 }
 0x231   : > { %v886_v46 = vadd.f32 %v875_v34, %v861_v2  ;;  %v1184_v62 = vmul.f32 0.16237177, %v885_v60  ;;  %v1189_v44 = vmul.f32 0.21764326, %v885_v60  ;;  %v1218_v50 = vmul.f32 0.23996992, %v885_v60 }
 0x232   : > { %v1240_v61 = vadd.f32 %v1228_v4, %v1211_v48  ;;  %v1350_v14 = vadd.f32 %v1339_v21, %v1321_v6  ;;  %v1271_v49 = vsel %vm976_vm8, %v1269_v51, %v1270_v55  ;;  %v1365_v9 = vadd.f32 %v1353_v27, %v1346_v38 }
 0x233   : > { %v1185_v26 = vmul.f32 0.16237177, %v886_v46  ;;  %v1190_v0 = vmul.f32 0.21764326, %v886_v46  ;;  %v1219_v22 = vmul.f32 0.23996992, %v886_v46  ;;  %v1320_v32 = vadd.f32 %v1311_v7, %v2368_v24 }
 0x234   : > { %v1200_v45 = vrot.slane %v1189_v44, 1  ;;  %v1229_v23 = vrot.slane %v1218_v50, 2  ;;  %v1248_v20 = vrot.slane %v1189_v44, 3  ;;  %v1272_v35 = vrot.slane %v1184_v62, 4 }
 0x235   : > { %v1202_v2 = vrot.slane %v1190_v0, 1  ;;  %v1231_v31 = vrot.slane %v1219_v22, 2  ;;  %v1250_v34 = vrot.slane %v1190_v0, 3  ;;  %v1274_v60 = vrot.slane %v1185_v26, 4 }
 0x236   : > { %v1201_v21 = vsel %vm902_vm5, %v1198_v40, %v1200_v45  ;;  %v1230_v27 = vsel %vm930_vm6, %v1227_v13, %v1229_v23  ;;  %v1259_v38 = vadd.f32 %v1247_v58, %v1240_v61  ;;  %v1389_v51 = vadd.f32 %v1377_v10, %v1365_v9 }
 0x237   : > { %v1205_v4 = vsel %vm902_vm5, %v1202_v2, %v1204_v15  ;;  %v1234_v48 = vsel %vm930_vm6, %v1231_v31, %v1233_v42  ;;  %v1203_v7 = vsel %vm902_vm5, %v1200_v45, %v1202_v2  ;;  %v1232_v6 = vsel %vm930_vm6, %v1229_v23, %v1231_v31 }
 0x238   : > { %v1214_v46 = vadd.f32 %v1205_v4, %v1185_v26  ;;  %v1213_v40 = vadd.f32 %v1203_v7, %v1184_v62  ;;  %v1283_v44 = vadd.f32 %v1271_v49, %v1259_v38  ;;  %v1253_v43 = vsel %vm958_vm7, %v1250_v34, %v1252_v18 }
 0x239   : > { %v1277_v13 = vsel %vm976_vm8, %v1274_v60, %v1276_v19  ;;  %v1349_v15 = vadd.f32 %v1340_v57, %v1320_v32  ;;  %v1359_v11 = vsel %vm958_vm7, %v1356_v47, %v1358_v59  ;;  %v1383_v42 = vsel %vm976_vm8, %v1380_v28, %v1382_v36 }
 0x23a   : > { %v1243_v10 = vadd.f32 %v1234_v48, %v1214_v46  ;;  %v1242_v58 = vadd.f32 %v1232_v6, %v1213_v40  ;;  %v1394_v62 = vsub.f32 %v1283_v44, %v1389_v51  ;;  %v1212_v50 = vadd.f32 %v1201_v21, %v2374_v53 }
 0x23b   : > { %v1368_v61 = vadd.f32 %v1359_v11, %v1349_v15  ;;  %v1249_v57 = vsel %vm958_vm7, %v1246_v63, %v1248_v20  ;;  %v1273_v49 = vsel %vm976_vm8, %v1270_v55, %v1272_v35  ;;  %v1355_v9 = vsel %vm958_vm7, %v1352_v3, %v1354_v37 }
 0x23c   : > { %v1399_v26 = vand.u32 2147483647, %v1394_v62  ;;  %v1262_v0 = vadd.f32 %v1253_v43, %v1243_v10  ;;  %v1241_v22 = vadd.f32 %v1230_v27, %v1212_v50  ;;  %v1366_v32 = vadd.f32 %v1355_v9, %v2443_v56 }
 0x23d   : > { %v1392_v45 = vadd.f32 %v1383_v42, %v1368_v61  ;;  %v1379_v1 = vsel %vm976_vm8, %v1376_v8, %v1378_v29  ;;  %v1251_v53 = vsel %vm958_vm7, %v1248_v20, %v1250_v34  ;;  %v1275_v63 = vsel %vm976_vm8, %v1272_v35, %v1274_v60 }
 0x23e   : > { %1409 = vrot.lane.b32.xlu0 %v1399_v26, %s1714_s22  ;;  %v1286_v55 = vadd.f32 %v1277_v13, %v1262_v0  ;;  %v1260_v5 = vadd.f32 %v1249_v57, %v1241_v22  ;;  %v1390_v3 = vadd.f32 %v1379_v1, %v1366_v32  ;;  %v1261_v23 = vadd.f32 %v1251_v53, %v1242_v58 }
 0x23f   : > { %v1357_v56 = vsel %vm958_vm7, %v1354_v37, %v1356_v47  ;;  %v1381_v52 = vsel %vm976_vm8, %v1378_v29, %v1380_v28  ;;  %v1263_v8 = vadd.f32 %v1252_v18, %v2432_v16  ;;  %v1369_v20 = vadd.f32 %v1358_v59, %v1350_v14 }
 0x240   : > { %v1397_v35 = vsub.f32 %v1286_v55, %v1392_v45  ;;  %v1284_v2 = vadd.f32 %v1273_v49, %v1260_v5  ;;  %v1285_v30 = vadd.f32 %v1275_v63, %v1261_v23  ;;  %v1367_v41 = vadd.f32 %v1357_v56, %v2428_v17 }
 0x241   : > { %v1287_v24 = vadd.f32 %v1276_v19, %v1263_v8  ;;  %v1393_v47 = vadd.f32 %v1382_v36, %v1369_v20 }
 0x242   : > { %v1402_v28 = vand.u32 2147483647, %v1397_v35  ;;  %v1395_v54 = vsub.f32 %v1284_v2, %v1390_v3  ;;  %v1391_v37 = vadd.f32 %v1381_v52, %v1367_v41 }
 0x243   : > { %v1398_v25 = vsub.f32 %v1287_v24, %v1393_v47 }
 0x244   : > { %v1400_v29 = vand.u32 2147483647, %v1395_v54  ;;  %v1396_v18 = vsub.f32 %v1285_v30, %v1391_v37 }
 0x245   : > { %v1403_v17 = vand.u32 2147483647, %v1398_v25 }
 0x246   : > { %1415 = vrot.lane.b32.xlu0 %v1402_v28, %s1714_s22  ;;  %1411 = vrot.lane.b32.xlu1 %v1400_v29, %s1714_s22  ;;  %v1401_v16 = vand.u32 2147483647, %v1396_v18 }
 0x248   : > { %1413 = vrot.lane.b32.xlu2 %v1401_v16, %s1714_s22 }
 0x24e   : > { %1417 = vrot.lane.b32.xlu1 %v1403_v17, %s1714_s22 }
 0x2a2   : > { %v1414_v12 = vpop.permute.xlu2 %1413 }
 0x2a3   : > { %1427 = vst.msk [vmem:[%s217_s18 + $0xf] sm:$0xff] %vm234_vm0, %v1414_v12 }
 0x2b0   : > { %v1410_v19 = vpop.permute.xlu0 %1409 }
 0x2b1   : > { %1425 = vst.msk [vmem:[%s217_s18 - $0x1] sm:$0xfe] %vm1424_vm10, %v1410_v19 }
 0x2b8   : > { %v1412_v39 = vpop.permute.xlu1 %1411  ;;  %v1416_v33 = vpop.permute.xlu0 %1415 }
 0x2b9   : > { %1426 = vst.msk [vmem:[%s217_s18 + $0x7] sm:$0xff] %vm234_vm0, %v1412_v39 }
 0x2ba   : > { %1428 = vst.msk [vmem:[%s217_s18 + $0x17] sm:$0xff] %vm234_vm0, %v1416_v33 }
 0x2c0   : > { %v1418_v59 = vpop.permute.xlu1 %1417 }
 0x2c1   : > { %1430 = vst.msk [vmem:[%s217_s18 + $0x1f] sm:$0x1] %vm1429_vm11, %v1418_v59 }
 0x2c2 PF: > { %p14_p7 = scmp.ge.s32.totalorder %s1762_s17, 4   ;;  %s2575_s12 = smov %s1698_s13 }
 0x2c3   : > { %s2576_s13 = smov %s1702_s14  ;;  %s2577_s14 = smov %s1772_s20 }
 0x2c4   : > { %s2578_s15 = smov %s1762_s17  ;;  %16 = sbr.rel (!%p14_p7) target bundleno = 3 (0x3), region = 88 }
 0x2c9   :  { %1484 = vsyncpa [#allocation3], 1 }
 0x2ca   :  { %1486 = vsyncpa [#allocation3 + $0x1], 1 }

// kernel: squeeze.3
= control target key start
LH: loop header
LB: loop body
LE: loop exit
PB: predicated region body
PF: predicated region fallthrough
CT: control target
= control target key end

     0   :  { %vm125_vm0 = vcmask 1043458   ;;  %s165_s6 = smov 3  ;;  %vm130_vm1 = vcmask 1045508   ;;  %vm135_vm2 = vcmask 1047558   ;;  %s168_s9 = smov 12  ;;  %vm4_vm3 = vcmask 1047556   ;;  %s3221_s0 = inlined_call_operand.vmem [shape: f32[2,16,1,16,16], index: 0, kind: input, shape index: {}]   ;;  %s3222_s1 = inlined_call_operand.vmem [shape: f32[32,256], index: 1, kind: output, shape index: {}]  }
   0x1   :  { %v1454_v0 = vld [vmem:[%s3221_s0 + $0xf] ss:$16 sm:%s165_s6]   ;;  %s173_s10 = smov 48  ;;  %s178_s15 = smov 192  ;;  %vm6_vm4 = vcmask 130048   ;;  %vm139_vm5 = vcmask 1048448  }
   0x2   :  { %v1455_v1 = vld [vmem:[%s3221_s0 + $0xf] ss:$16 sm:%s168_s9]   ;;  %s120_s16 = smov 3  ;;  %s123_s21 = smov 12  ;;  %vm322_vm6 = vcmask 917248   ;;  %vm505_vm7 = vcmask 786048  }
   0x3   :  { %v1456_v2 = vld [vmem:[%s3221_s0 + $0xf] ss:$16 sm:%s173_s10]   ;;  %v171_v3 = vsel %vm125_vm0, %v1455_v1, %v1454_v0  ;;  %v1445_v5 = vld [vmem:[%s3221_s0 + $0x7] ss:$16 sm:%s120_s16]   ;;  %s128_s22 = smov 48  ;;  %s133_s27 = smov 192 }
   0x4   :  { %v1457_v4 = vld [vmem:[%s3221_s0 + $0xf] ss:$16 sm:%s178_s15]   ;;  %v176_v6 = vsel %vm130_vm1, %v1456_v2, %v171_v3  ;;  %v1446_v7 = vld [vmem:[%s3221_s0 + $0x7] ss:$16 sm:%s123_s21]   ;;  %s188_s28 = smov 3  ;;  %s191_s4 = smov 12 }
   0x5   :  { %v1447_v8 = vld [vmem:[%s3221_s0 + $0x7] ss:$16 sm:%s128_s22]   ;;  %v181_v9 = vsel %vm135_vm2, %v1457_v4, %v176_v6  ;;  %v126_v10 = vsel %vm125_vm0, %v1446_v7, %v1445_v5  ;;  %v1459_v12 = vld [vmem:[%s3221_s0 + $0x10f] ss:$16 sm:%s188_s28]   ;;  %s196_s5 = smov 48  ;;  %s1725_s6 = smov 112  }
   0x6   :  { %v1448_v11 = vld [vmem:[%s3221_s0 + $0x7] ss:$16 sm:%s133_s27]   ;;  %182 = vrot.lane.b32.xlu1 %v181_v9, %s1725_s6  ;;  %v131_v13 = vsel %vm130_vm1, %v1447_v8, %v126_v10  ;;  %s201_s9 = smov 192  ;;  %s142_s10 = smov 3  ;;  %vm688_vm8 = vcmask 654848   ;;  %vm871_vm9 = vcmask 523648  }
   0x7   :  { %v1460_v14 = vld [vmem:[%s3221_s0 + $0x10f] ss:$16 sm:%s191_s4]   ;;  %v136_v15 = vsel %vm135_vm2, %v1448_v11, %v131_v13  ;;  %s145_s15 = smov 12  ;;  %s150_s16 = smov 48  ;;  %v1449_v20 = vld [vmem:[%s3221_s0 + $0x107] ss:$16 sm:%s142_s10]  }
   0x8   :  { %v194_v16 = vsel %vm125_vm0, %v1460_v14, %v1459_v12  ;;  %v1461_v17 = vld [vmem:[%s3221_s0 + $0x10f] ss:$16 sm:%s196_s5]   ;;  %137 = vrot.lane.b32.xlu0 %v136_v15, %s1725_s6  ;;  %s155_s19 = smov 192  ;;  %s280_s20 = smov 3  ;;  %vm1054_vm10 = vcmask 392448   ;;  %vm1237_vm11 = vcmask 261248  }
   0x9   :  { %v1462_v18 = vld [vmem:[%s3221_s0 + $0x10f] ss:$16 sm:%s201_s9]   ;;  %v199_v19 = vsel %vm130_vm1, %v1461_v17, %v194_v16  ;;  %v1450_v21 = vld [vmem:[%s3221_s0 + $0x107] ss:$16 sm:%s145_s15]   ;;  %s283_s25 = smov 12  ;;  %s288_s30 = smov 48 }
   0xa   :  { %v1451_v22 = vld [vmem:[%s3221_s0 + $0x107] ss:$16 sm:%s150_s16]   ;;  %v148_v23 = vsel %vm125_vm0, %v1450_v21, %v1449_v20  ;;  %v1479_v25 = vld [vmem:[%s3221_s0 + $0x18f] ss:$16 sm:%s280_s20]   ;;  %s257_s2 = smov 3  ;;  %v204_v26 = vsel %vm135_vm2, %v1462_v18, %v199_v19  ;;  %s260_s5 = smov 12 }
   0xb   :  { %v1452_v24 = vld [vmem:[%s3221_s0 + $0x107] ss:$16 sm:%s155_s19]   ;;  %v153_v27 = vsel %vm130_vm1, %v1451_v22, %v148_v23  ;;  %v1480_v28 = vld [vmem:[%s3221_s0 + $0x18f] ss:$16 sm:%s283_s25]   ;;  %s265_s9 = smov 48  ;;  %s293_s12 = smov 192 }
   0xc   :  { %v1474_v29 = vld [vmem:[%s3221_s0 + $0x8f] ss:$16 sm:%s257_s2]   ;;  %v158_v30 = vsel %vm135_vm2, %v1452_v24, %v153_v27  ;;  %v286_v31 = vsel %vm125_vm0, %v1480_v28, %v1479_v25  ;;  %s270_s15 = smov 192  ;;  %s348_s16 = smov 3 }
   0xd   :  { %v1481_v32 = vld [vmem:[%s3221_s0 + $0x18f] ss:$16 sm:%s288_s30]   ;;  %s351_s19 = smov 12  ;;  %s325_s20 = smov 3  ;;  %v1493_v39 = vld [vmem:[%s3221_s0 + $0xe] ss:$16 sm:%s348_s16]  }
   0xe   :  { %v1475_v33 = vld [vmem:[%s3221_s0 + $0x8f] ss:$16 sm:%s260_s5]   ;;  %205 = vrot.lane.b32.xlu1 %v204_v26, %s1725_s6  ;;  %v291_v36 = vsel %vm130_vm1, %v1481_v32, %v286_v31  ;;  %s356_s23 = smov 48  ;;  %s328_s24 = smov 12 }
   0xf   :  { %v263_v34 = vsel %vm125_vm0, %v1475_v33, %v1474_v29  ;;  %v1476_v35 = vld [vmem:[%s3221_s0 + $0x8f] ss:$16 sm:%s265_s9]   ;;  %s211_s29 = smov 3  ;;  %s214_s30 = smov 12  ;;  %v1494_v41 = vld [vmem:[%s3221_s0 + $0xe] ss:$16 sm:%s351_s19]  }
  0x10   :  { %159 = vrot.lane.b32.xlu0 %v158_v30, %s1725_s6  ;;  %v1482_v37 = vld [vmem:[%s3221_s0 + $0x18f] ss:$16 sm:%s293_s12]   ;;  %v268_v40 = vsel %vm130_vm1, %v1476_v35, %v263_v34  ;;  %s219_s7 = smov 48  ;;  %s224_s8 = smov 192  ;;  %v354_v49 = vsel %vm125_vm0, %v1494_v41, %v1493_v39 }
  0x11   :  { %v1477_v38 = vld [vmem:[%s3221_s0 + $0x8f] ss:$16 sm:%s270_s15]   ;;  %v1488_v42 = vld [vmem:[%s3221_s0 + $0x106] ss:$16 sm:%s325_s20]   ;;  %v296_v43 = vsel %vm135_vm2, %v1482_v37, %v291_v36  ;;  %s361_s13 = smov 192  ;;  %s333_s14 = smov 48 }
  0x12   :  { %v1489_v44 = vld [vmem:[%s3221_s0 + $0x106] ss:$16 sm:%s328_s24]   ;;  %v1464_v45 = vld [vmem:[%s3221_s0 + $0x87] ss:$16 sm:%s211_s29]   ;;  %v273_v48 = vsel %vm135_vm2, %v1477_v38, %v268_v40  ;;  %s338_s21 = smov 192  ;;  %s417_s24 = smov 3 }
  0x13   :  { %v1465_v46 = vld [vmem:[%s3221_s0 + $0x87] ss:$16 sm:%s214_s30]   ;;  %v1495_v50 = vld [vmem:[%s3221_s0 + $0xe] ss:$16 sm:%s356_s23]   ;;  %s420_s25 = smov 12  ;;  %v331_v55 = vsel %vm125_vm0, %v1489_v44, %v1488_v42  ;;  %s394_s30 = smov 3 }
  0x14   :  { %v1466_v47 = vld [vmem:[%s3221_s0 + $0x87] ss:$16 sm:%s219_s7]   ;;  %v217_v51 = vsel %vm125_vm0, %v1465_v46, %v1464_v45  ;;  %v1496_v54 = vld [vmem:[%s3221_s0 + $0xe] ss:$16 sm:%s361_s13]   ;;  %s234_s2 = smov 3  ;;  %v359_v58 = vsel %vm130_vm1, %v1495_v50, %v354_v49  ;;  %s237_s5 = smov 12 }
  0x15   :  { %v1467_v52 = vld [vmem:[%s3221_s0 + $0x87] ss:$16 sm:%s224_s8]   ;;  %v222_v53 = vsel %vm130_vm1, %v1466_v47, %v217_v51  ;;  %v1490_v56 = vld [vmem:[%s3221_s0 + $0x106] ss:$16 sm:%s333_s14]   ;;  %s242_s7 = smov 48  ;;  %s397_s12 = smov 12  ;;  %v364_v1 = vsel %vm135_vm2, %v1496_v54, %v359_v58 }
  0x16   :  { %297 = vrot.lane.b32.xlu1 %v296_v43, %s1725_s6  ;;  %v227_v57 = vsel %vm135_vm2, %v1467_v52, %v222_v53  ;;  %v1491_v59 = vld [vmem:[%s3221_s0 + $0x106] ss:$16 sm:%s338_s21]   ;;  %s247_s13 = smov 192  ;;  %v336_v62 = vsel %vm130_vm1, %v1490_v56, %v331_v55  ;;  %s425_s14 = smov 48 }
  0x17   :  { %228 = vrot.lane.b32.xlu2 %v227_v57, %s1725_s6  ;;  %v1508_v60 = vld [vmem:[%s3221_s0 + $0x186] ss:$16 sm:%s417_s24]   ;;  %s430_s23 = smov 192  ;;  %s402_s26 = smov 48  ;;  %v341_v7 = vsel %vm135_vm2, %v1491_v59, %v336_v62 }
  0x18   :  { %274 = vrot.lane.b32.xlu0 %v273_v48, %s1725_s6  ;;  %v1509_v61 = vld [vmem:[%s3221_s0 + $0x186] ss:$16 sm:%s420_s25]   ;;  %s486_s3 = smov 3  ;;  %s1726_s4 = smov 96  }
  0x19   :  { %v1503_v63 = vld [vmem:[%s3221_s0 + $0x86] ss:$16 sm:%s394_s30]   ;;  %v1469_v0 = vld [vmem:[%s3221_s0 + $0x187] ss:$16 sm:%s234_s2]   ;;  %v423_v8 = vsel %vm125_vm0, %v1509_v61, %v1508_v60  ;;  %s407_s2 = smov 192  ;;  %s316_s17 = smov 192 }
  0x1a   :  { %v1470_v2 = vld [vmem:[%s3221_s0 + $0x187] ss:$16 sm:%s237_s5]   ;;  %v1504_v4 = vld [vmem:[%s3221_s0 + $0x86] ss:$16 sm:%s397_s12]   ;;  %s489_s5 = smov 12  ;;  %s306_s12 = smov 12 }
  0x1b   :  { %v1471_v3 = vld [vmem:[%s3221_s0 + $0x187] ss:$16 sm:%s242_s7]   ;;  %v240_v5 = vsel %vm125_vm0, %v1470_v2, %v1469_v0  ;;  %v1510_v9 = vld [vmem:[%s3221_s0 + $0x186] ss:$16 sm:%s425_s14]   ;;  %s303_s7 = smov 3  ;;  %v400_v13 = vsel %vm125_vm0, %v1504_v4, %v1503_v63  ;;  %s463_s20 = smov 3 }
  0x1c   :  { %v1472_v6 = vld [vmem:[%s3221_s0 + $0x187] ss:$16 sm:%s247_s13]   ;;  %v245_v10 = vsel %vm130_vm1, %v1471_v3, %v240_v5  ;;  %v1511_v12 = vld [vmem:[%s3221_s0 + $0x186] ss:$16 sm:%s430_s23]   ;;  %s311_s13 = smov 48  ;;  %v428_v15 = vsel %vm130_vm1, %v1510_v9, %v423_v8  ;;  %s466_s21 = smov 12 }
  0x1d   :  { %v250_v11 = vsel %vm135_vm2, %v1472_v6, %v245_v10  ;;  %v1505_v14 = vld [vmem:[%s3221_s0 + $0x86] ss:$16 sm:%s402_s26]   ;;  %v1523_v17 = vld [vmem:[%s3221_s0 + $0x5] ss:$16 sm:%s486_s3]   ;;  %s494_s24 = smov 48  ;;  %v433_v23 = vsel %vm135_vm2, %v1511_v12, %v428_v15  ;;  %s499_s29 = smov 192 }
  0x1e   :  { %365 = vrot.lane.b32.xlu1 %v364_v1, %s1726_s4  ;;  %v1506_v16 = vld [vmem:[%s3221_s0 + $0x86] ss:$16 sm:%s407_s2]   ;;  %v405_v20 = vsel %vm130_vm1, %v1505_v14, %v400_v13  ;;  %s471_s9 = smov 48  ;;  %s476_s10 = smov 192 }
  0x1f   :  { %251 = vrot.lane.b32.xlu2 %v250_v11, %s1725_s6  ;;  %v1524_v18 = vld [vmem:[%s3221_s0 + $0x5] ss:$16 sm:%s489_s5]   ;;  %v410_v29 = vsel %vm135_vm2, %v1506_v16, %v405_v20  ;;  %s371_s14 = smov 3  ;;  %s374_s15 = smov 12 }
  0x20   :  { %342 = vrot.lane.b32.xlu0 %v341_v7, %s1726_s4  ;;  %v1484_v19 = vld [vmem:[%s3221_s0 + $0x6] ss:$16 sm:%s303_s7]   ;;  %v492_v30 = vsel %vm125_vm0, %v1524_v18, %v1523_v17  ;;  %s379_s6 = smov 48  ;;  %s531_s28 = smov 3 }
  0x21   :  { %v1485_v21 = vld [vmem:[%s3221_s0 + $0x6] ss:$16 sm:%s306_s12]   ;;  %v1518_v26 = vld [vmem:[%s3221_s0 + $0x18e] ss:$16 sm:%s463_s20]   ;;  %s557_s20 = smov 12  ;;  %s567_s12 = smov 192 }
  0x22   :  { %v1486_v22 = vld [vmem:[%s3221_s0 + $0x6] ss:$16 sm:%s311_s13]   ;;  %v309_v24 = vsel %vm125_vm0, %v1485_v21, %v1484_v19  ;;  %v1519_v27 = vld [vmem:[%s3221_s0 + $0x18e] ss:$16 sm:%s466_s21]   ;;  %s554_s13 = smov 3  ;;  %s384_s21 = smov 192 }
  0x23   :  { %v1487_v25 = vld [vmem:[%s3221_s0 + $0x6] ss:$16 sm:%s316_s17]   ;;  %v314_v28 = vsel %vm130_vm1, %v1486_v22, %v309_v24  ;;  %v1525_v31 = vld [vmem:[%s3221_s0 + $0x5] ss:$16 sm:%s494_s24]   ;;  %v469_v34 = vsel %vm125_vm0, %v1519_v27, %v1518_v26  ;;  %s440_s17 = smov 3  ;;  %s443_s18 = smov 12 }
  0x24   :  { %v319_v32 = vsel %vm135_vm2, %v1487_v25, %v314_v28  ;;  %v1526_v33 = vld [vmem:[%s3221_s0 + $0x5] ss:$16 sm:%s499_s29]   ;;  %v1520_v35 = vld [vmem:[%s3221_s0 + $0x18e] ss:$16 sm:%s471_s9]   ;;  %v497_v36 = vsel %vm130_vm1, %v1525_v31, %v492_v30  ;;  %s534_s29 = smov 12  ;;  %s562_s9 = smov 48 }
  0x25   :  { %v1521_v37 = vld [vmem:[%s3221_s0 + $0x18e] ss:$16 sm:%s476_s10]   ;;  %v1537_v38 = vld [vmem:[%s3221_s0 + $0x10d] ss:$16 sm:%s554_s13]   ;;  %v474_v42 = vsel %vm130_vm1, %v1520_v35, %v469_v34  ;;  %v502_v46 = vsel %vm135_vm2, %v1526_v33, %v497_v36  ;;  %s539_s13 = smov 48  ;;  %s1727_s22 = smov 80  }
  0x26   :  { %434 = vrot.lane.b32.xlu1 %v433_v23, %s1726_s4  ;;  %v1498_v39 = vld [vmem:[%s3221_s0 + $0x10e] ss:$16 sm:%s371_s14]   ;;  %v479_v50 = vsel %vm135_vm2, %v1521_v37, %v474_v42  ;;  %s544_s27 = smov 192  ;;  %s453_s7 = smov 192 }
  0x27   :  { %320 = vrot.lane.b32.xlu2 %v319_v32, %s1726_s4  ;;  %v1499_v40 = vld [vmem:[%s3221_s0 + $0x10e] ss:$16 sm:%s374_s15]   ;;  %s600_s14 = smov 3  ;;  %s603_s15 = smov 12 }
  0x28   :  { %411 = vrot.lane.b32.xlu0 %v410_v29, %s1726_s4  ;;  %v1500_v41 = vld [vmem:[%s3221_s0 + $0x10e] ss:$16 sm:%s379_s6]   ;;  %v377_v44 = vsel %vm125_vm0, %v1499_v40, %v1498_v39  ;;  %s636_s2 = smov 192  ;;  %s691_s8 = smov 3 }
  0x29   :  { %v1538_v43 = vld [vmem:[%s3221_s0 + $0x10d] ss:$16 sm:%s557_s20]   ;;  %v1501_v45 = vld [vmem:[%s3221_s0 + $0x10e] ss:$16 sm:%s384_s21]   ;;  %v382_v47 = vsel %vm130_vm1, %v1500_v41, %v377_v44  ;;  %s448_s21 = smov 48  ;;  %s508_s20 = smov 3 }
  0x2a   :  { %v1532_v48 = vld [vmem:[%s3221_s0 + $0xd] ss:$16 sm:%s531_s28]   ;;  %v560_v51 = vsel %vm125_vm0, %v1538_v43, %v1537_v38  ;;  %v387_v53 = vsel %vm135_vm2, %v1501_v45, %v382_v47  ;;  %s623_s28 = smov 3  ;;  %v1513_v57 = vld [vmem:[%s3221_s0 + $0x8e] ss:$16 sm:%s440_s17]   ;;  %s631_s17 = smov 48 }
  0x2b   :  { %v1533_v49 = vld [vmem:[%s3221_s0 + $0xd] ss:$16 sm:%s534_s29]   ;;  %s626_s29 = smov 12  ;;  %v1514_v58 = vld [vmem:[%s3221_s0 + $0x8e] ss:$16 sm:%s443_s18]   ;;  %s521_s6 = smov 192 }
  0x2c   :  { %v1539_v52 = vld [vmem:[%s3221_s0 + $0x10d] ss:$16 sm:%s562_s9]   ;;  %v537_v56 = vsel %vm125_vm0, %v1533_v49, %v1532_v48  ;;  %v446_v60 = vsel %vm125_vm0, %v1514_v58, %v1513_v57  ;;  %v1515_v61 = vld [vmem:[%s3221_s0 + $0x8e] ss:$16 sm:%s448_s21]   ;;  %s511_s21 = smov 12  ;;  %s672_s23 = smov 12 }
  0x2d   :  { %v1540_v54 = vld [vmem:[%s3221_s0 + $0x10d] ss:$16 sm:%s567_s12]   ;;  %v565_v59 = vsel %vm130_vm1, %v1539_v52, %v560_v51  ;;  %v451_v2 = vsel %vm130_vm1, %v1515_v61, %v446_v60  ;;  %v1516_v3 = vld [vmem:[%s3221_s0 + $0x8e] ss:$16 sm:%s453_s7]   ;;  %s613_s7 = smov 192  ;;  %s577_s24 = smov 3 }
  0x2e   :  { %503 = vrot.lane.b32.xlu1 %v502_v46, %s1727_s22  ;;  %v1534_v55 = vld [vmem:[%s3221_s0 + $0xd] ss:$16 sm:%s539_s13]   ;;  %v570_v4 = vsel %vm135_vm2, %v1540_v54, %v565_v59  ;;  %v456_v10 = vsel %vm135_vm2, %v1516_v3, %v451_v2  ;;  %s694_s13 = smov 12  ;;  %s580_s30 = smov 12 }
  0x2f   :  { %388 = vrot.lane.b32.xlu2 %v387_v53, %s1726_s4  ;;  %v1535_v62 = vld [vmem:[%s3221_s0 + $0xd] ss:$16 sm:%s544_s27]   ;;  %v542_v0 = vsel %vm130_vm1, %v1534_v55, %v537_v56  ;;  %s608_s27 = smov 48  ;;  %s585_s11 = smov 48 }
  0x30   :  { %480 = vrot.lane.b32.xlu0 %v479_v50, %s1726_s4  ;;  %v1552_v63 = vld [vmem:[%s3221_s0 + $0x8d] ss:$16 sm:%s623_s28]   ;;  %s516_s28 = smov 48  ;;  %v547_v7 = vsel %vm135_vm2, %v1535_v62, %v542_v0  ;;  %s682_s16 = smov 192 }
  0x31   :  { %v1553_v1 = vld [vmem:[%s3221_s0 + $0x8d] ss:$16 sm:%s626_s29]   ;;  %v1547_v5 = vld [vmem:[%s3221_s0 + $0x185] ss:$16 sm:%s600_s14]   ;;  %s704_s14 = smov 192  ;;  %s763_s19 = smov 12 }
  0x32   :  { %v1548_v6 = vld [vmem:[%s3221_s0 + $0x185] ss:$16 sm:%s603_s15]   ;;  %v629_v8 = vsel %vm125_vm0, %v1553_v1, %v1552_v63  ;;  %v1554_v9 = vld [vmem:[%s3221_s0 + $0x8d] ss:$16 sm:%s631_s17]   ;;  %s760_s17 = smov 3  ;;  %s737_s26 = smov 3 }
  0x33   :  { %v1527_v11 = vld [vmem:[%s3221_s0 + $0x105] ss:$16 sm:%s508_s20]   ;;  %v606_v13 = vsel %vm125_vm0, %v1548_v6, %v1547_v5  ;;  %v634_v17 = vsel %vm130_vm1, %v1554_v9, %v629_v8  ;;  %v1555_v18 = vld [vmem:[%s3221_s0 + $0x8d] ss:$16 sm:%s636_s2]   ;;  %s646_s3 = smov 3  ;;  %s649_s5 = smov 12 }
  0x34   :  { %v1528_v12 = vld [vmem:[%s3221_s0 + $0x105] ss:$16 sm:%s511_s21]   ;;  %v1566_v20 = vld [vmem:[%s3221_s0 + $0x104] ss:$16 sm:%s691_s8]   ;;  %v639_v25 = vsel %vm135_vm2, %v1555_v18, %v634_v17  ;;  %s677_s8 = smov 48  ;;  %s768_s9 = smov 48 }
  0x35   :  { %v1549_v14 = vld [vmem:[%s3221_s0 + $0x185] ss:$16 sm:%s608_s27]   ;;  %v514_v15 = vsel %vm125_vm0, %v1528_v12, %v1527_v11  ;;  %v1567_v22 = vld [vmem:[%s3221_s0 + $0x104] ss:$16 sm:%s694_s13]   ;;  %s699_s27 = smov 48  ;;  %s750_s25 = smov 192 }
  0x36   :  { %571 = vrot.lane.b32.xlu1 %v570_v4, %s1727_s22  ;;  %v1529_v16 = vld [vmem:[%s3221_s0 + $0x105] ss:$16 sm:%s516_s28]   ;;  %v611_v21 = vsel %vm130_vm1, %v1549_v14, %v606_v13  ;;  %v697_v30 = vsel %vm125_vm0, %v1567_v22, %v1566_v20  ;;  %s832_s29 = smov 12  ;;  %s717_s15 = smov 12 }
  0x37   :  { %457 = vrot.lane.b32.xlu2 %v456_v10, %s1726_s4  ;;  %s669_s4 = smov 3  ;;  %v1550_v19 = vld [vmem:[%s3221_s0 + $0x185] ss:$16 sm:%s613_s7]   ;;  %v519_v23 = vsel %vm130_vm1, %v1529_v16, %v514_v15  ;;  %s819_s7 = smov 192 }
  0x38   :  { %548 = vrot.lane.b32.xlu0 %v547_v7, %s1727_s22  ;;  %v1530_v24 = vld [vmem:[%s3221_s0 + $0x105] ss:$16 sm:%s521_s6]   ;;  %v616_v29 = vsel %vm135_vm2, %v1550_v19, %v611_v21  ;;  %s745_s6 = smov 48  ;;  %s783_s20 = smov 3 }
  0x39   :  { %v1562_v26 = vld [vmem:[%s3221_s0 + $0x4] ss:$16 sm:%s669_s4]   ;;  %v1542_v28 = vld [vmem:[%s3221_s0 + $0x85] ss:$16 sm:%s577_s24]   ;;  %v524_v32 = vsel %vm135_vm2, %v1530_v24, %v519_v23  ;;  %s1728_s24 = smov 64   ;;  %s786_s21 = smov 12 }
  0x3a   :  { %v1563_v27 = vld [vmem:[%s3221_s0 + $0x4] ss:$16 sm:%s672_s23]   ;;  %v1543_v33 = vld [vmem:[%s3221_s0 + $0x85] ss:$16 sm:%s580_s30]   ;;  %s590_s23 = smov 192  ;;  %s722_s30 = smov 48 }
  0x3b   :  { %v1568_v31 = vld [vmem:[%s3221_s0 + $0x104] ss:$16 sm:%s699_s27]   ;;  %v675_v34 = vsel %vm125_vm0, %v1563_v27, %v1562_v26  ;;  %v583_v36 = vsel %vm125_vm0, %v1543_v33, %v1542_v28  ;;  %v1544_v37 = vld [vmem:[%s3221_s0 + $0x85] ss:$16 sm:%s585_s11]   ;;  %s740_s27 = smov 12  ;;  %s900_s11 = smov 12 }
  0x3c   :  { %v1564_v35 = vld [vmem:[%s3221_s0 + $0x4] ss:$16 sm:%s677_s8]   ;;  %v702_v38 = vsel %vm130_vm1, %v1568_v31, %v697_v30  ;;  %v588_v44 = vsel %vm130_vm1, %v1544_v37, %v583_v36  ;;  %v1545_v45 = vld [vmem:[%s3221_s0 + $0x85] ss:$16 sm:%s590_s23]   ;;  %s773_s23 = smov 192  ;;  %s806_s8 = smov 3 }
  0x3d   :  { %v1569_v39 = vld [vmem:[%s3221_s0 + $0x104] ss:$16 sm:%s704_s14]   ;;  %v680_v42 = vsel %vm130_vm1, %v1564_v35, %v675_v34  ;;  %v1576_v47 = vld [vmem:[%s3221_s0 + $0x10c] ss:$16 sm:%s737_s26]   ;;  %v593_v54 = vsel %vm135_vm2, %v1545_v45, %v588_v44  ;;  %s829_s26 = smov 3  ;;  %s714_s14 = smov 3 }
  0x3e   :  { %640 = vrot.lane.b32.xlu1 %v639_v25, %s1727_s22  ;;  %v1565_v40 = vld [vmem:[%s3221_s0 + $0x4] ss:$16 sm:%s682_s16]   ;;  %v707_v46 = vsel %vm135_vm2, %v1569_v39, %v702_v38  ;;  %s877_s16 = smov 12  ;;  %s943_s4 = smov 3 }
  0x3f   :  { %525 = vrot.lane.b32.xlu2 %v524_v32, %s1727_s22  ;;  %v1581_v41 = vld [vmem:[%s3221_s0 + $0x84] ss:$16 sm:%s760_s17]   ;;  %v685_v51 = vsel %vm135_vm2, %v1565_v40, %v680_v42  ;;  %s837_s17 = smov 48  ;;  %s2297_s13 = smov 3 }
  0x40   :  { %617 = vrot.lane.b32.xlu0 %v616_v29, %s1727_s22  ;;  %v1582_v43 = vld [vmem:[%s3221_s0 + $0x84] ss:$16 sm:%s763_s19]   ;;  %s654_s19 = smov 48  ;;  %s2308_s18 = smov 48 }
  0x41   :  { %v1577_v48 = vld [vmem:[%s3221_s0 + $0x10c] ss:$16 sm:%s740_s27]   ;;  %v1557_v49 = vld [vmem:[%s3221_s0 + $0x18d] ss:$16 sm:%s646_s3]   ;;  %v766_v52 = vsel %vm125_vm0, %v1582_v43, %v1581_v41  ;;  %s659_s3 = smov 192  ;;  %s2234_s27 = smov 192 }
  0x42   :  { %v1558_v50 = vld [vmem:[%s3221_s0 + $0x18d] ss:$16 sm:%s649_s5]   ;;  %v1583_v53 = vld [vmem:[%s3221_s0 + $0x84] ss:$16 sm:%s768_s9]   ;;  %v743_v55 = vsel %vm125_vm0, %v1577_v48, %v1576_v47  ;;  %s809_s9 = smov 12  ;;  %s842_s5 = smov 192 }
  0x43   :  { %v1578_v56 = vld [vmem:[%s3221_s0 + $0x10c] ss:$16 sm:%s745_s6]   ;;  %v652_v57 = vsel %vm125_vm0, %v1558_v50, %v1557_v49  ;;  %v1559_v58 = vld [vmem:[%s3221_s0 + $0x18d] ss:$16 sm:%s654_s19]   ;;  %v771_v59 = vsel %vm130_vm1, %v1583_v53, %v766_v52  ;;  %s2310_s19 = smov 192  ;;  %s2327_s2 = smov 12 }
  0x44   :  { %v1584_v60 = vld [vmem:[%s3221_s0 + $0x84] ss:$16 sm:%s773_s23]   ;;  %v1579_v61 = vld [vmem:[%s3221_s0 + $0x10c] ss:$16 sm:%s750_s25]   ;;  %v748_v63 = vsel %vm130_vm1, %v1578_v56, %v743_v55  ;;  %v657_v1 = vsel %vm130_vm1, %v1559_v58, %v652_v57  ;;  %s814_s25 = smov 48  ;;  %s2343_s12 = smov 3 }
  0x45   :  { %v1596_v62 = vld [vmem:[%s3221_s0 + $0x18c] ss:$16 sm:%s829_s26]   ;;  %v1560_v2 = vld [vmem:[%s3221_s0 + $0x18d] ss:$16 sm:%s659_s3]   ;;  %v776_v3 = vsel %vm135_vm2, %v1584_v60, %v771_v59  ;;  %v753_v8 = vsel %vm135_vm2, %v1579_v61, %v748_v63  ;;  %s905_s26 = smov 48  ;;  %s1729_s3 = smov 48  }
  0x46   :  { %708 = vrot.lane.b32.xlu1 %v707_v46, %s1728_s24  ;;  %v1597_v0 = vld [vmem:[%s3221_s0 + $0x18c] ss:$16 sm:%s832_s29]   ;;  %v662_v11 = vsel %vm135_vm2, %v1560_v2, %v657_v1  ;;  %s2281_s29 = smov 192  ;;  %s2373_s28 = smov 192 }
  0x47   :  { %594 = vrot.lane.b32.xlu2 %v593_v54, %s1727_s22  ;;  %v1591_v4 = vld [vmem:[%s3221_s0 + $0x8c] ss:$16 sm:%s806_s8]   ;;  %v835_v9 = vsel %vm125_vm0, %v1597_v0, %v1596_v62  ;;  %s897_s8 = smov 3  ;;  %s2388_s10 = smov 48 }
  0x48   :  { %686 = vrot.lane.b32.xlu0 %v685_v51, %s1728_s24  ;;  %v1592_v5 = vld [vmem:[%s3221_s0 + $0x8c] ss:$16 sm:%s809_s9]   ;;  %s966_s9 = smov 3  ;;  %s2408_s23 = smov 12 }
  0x49   :  { %v1571_v6 = vld [vmem:[%s3221_s0 + $0xc] ss:$16 sm:%s714_s14]   ;;  %v812_v12 = vsel %vm125_vm0, %v1592_v5, %v1591_v4  ;;  %s727_s14 = smov 192  ;;  %v1610_v19 = vld [vmem:[%s3221_s0 + $0xb] ss:$16 sm:%s897_s8]   ;;  %s887_s8 = smov 192 }
  0x4a   :  { %v1572_v7 = vld [vmem:[%s3221_s0 + $0xc] ss:$16 sm:%s717_s15]   ;;  %v1611_v21 = vld [vmem:[%s3221_s0 + $0xb] ss:$16 sm:%s900_s11]   ;;  %s865_s11 = smov 192  ;;  %s2434_s6 = smov 48 }
  0x4b   :  { %v1598_v10 = vld [vmem:[%s3221_s0 + $0x18c] ss:$16 sm:%s837_s17]   ;;  %v720_v14 = vsel %vm125_vm0, %v1572_v7, %v1571_v6  ;;  %v1606_v26 = vld [vmem:[%s3221_s0 + $0x103] ss:$16 sm:%s877_s16]   ;;  %v903_v30 = vsel %vm125_vm0, %v1611_v21, %v1610_v19  ;;  %s2259_s16 = smov 48  ;;  %s2262_s17 = smov 192 }
  0x4c   :  { %v1593_v13 = vld [vmem:[%s3221_s0 + $0x8c] ss:$16 sm:%s814_s25]   ;;  %v840_v16 = vsel %vm130_vm1, %v1598_v10, %v835_v9  ;;  %v1586_v27 = vld [vmem:[%s3221_s0 + $0x184] ss:$16 sm:%s783_s20]   ;;  %s946_s20 = smov 12  ;;  %s796_s25 = smov 192 }
  0x4d   :  { %v1573_v15 = vld [vmem:[%s3221_s0 + $0xc] ss:$16 sm:%s722_s30]   ;;  %v817_v20 = vsel %vm130_vm1, %v1593_v13, %v812_v12  ;;  %v1587_v28 = vld [vmem:[%s3221_s0 + $0x184] ss:$16 sm:%s786_s21]   ;;  %s923_s21 = smov 12  ;;  %s2375_s30 = smov 3 }
  0x4e   :  { %777 = vrot.lane.b32.xlu1 %v776_v3, %s1728_s24  ;;  %v1599_v17 = vld [vmem:[%s3221_s0 + $0x18c] ss:$16 sm:%s842_s5]   ;;  %v725_v22 = vsel %vm130_vm1, %v1573_v15, %v720_v14  ;;  %v789_v35 = vsel %vm125_vm0, %v1587_v28, %v1586_v27  ;;  %s2330_s5 = smov 48  ;;  %s2524_s15 = smov 48 }
  0x4f   :  { %663 = vrot.lane.b32.xlu2 %v662_v11, %s1727_s22  ;;  %s874_s22 = smov 3  ;;  %v1594_v18 = vld [vmem:[%s3221_s0 + $0x8c] ss:$16 sm:%s819_s7]   ;;  %v845_v24 = vsel %vm135_vm2, %v1599_v17, %v840_v16  ;;  %s882_s7 = smov 48 }
  0x50   :  { %754 = vrot.lane.b32.xlu0 %v753_v8, %s1728_s24  ;;  %v1574_v23 = vld [vmem:[%s3221_s0 + $0xc] ss:$16 sm:%s727_s14]   ;;  %s791_s14 = smov 48  ;;  %v822_v29 = vsel %vm135_vm2, %v1594_v18, %v817_v20 }
  0x51   :  { %v1605_v25 = vld [vmem:[%s3221_s0 + $0x103] ss:$16 sm:%s874_s22]   ;;  %v1612_v31 = vld [vmem:[%s3221_s0 + $0xb] ss:$16 sm:%s905_s26]   ;;  %v730_v32 = vsel %vm135_vm2, %v1574_v23, %v725_v22  ;;  %s969_s22 = smov 12  ;;  %s860_s26 = smov 48 }
  0x52   :  { %v880_v33 = vsel %vm125_vm0, %v1606_v26, %v1605_v25  ;;  %v1607_v34 = vld [vmem:[%s3221_s0 + $0x103] ss:$16 sm:%s882_s7]   ;;  %v1588_v36 = vld [vmem:[%s3221_s0 + $0x184] ss:$16 sm:%s791_s14]   ;;  %v908_v37 = vsel %vm130_vm1, %v1612_v31, %v903_v30  ;;  %s852_s7 = smov 3  ;;  %s2299_s14 = smov 12 }
  0x53   :  { %v1613_v38 = vld [vmem:[%s3221_s0 + $0xb] ss:$16 sm:%s2234_s27]   ;;  %s2279_s27 = smov 48  ;;  %v1608_v39 = vld [vmem:[%s3221_s0 + $0x103] ss:$16 sm:%s887_s8]   ;;  %s855_s8 = smov 12  ;;  %v885_v41 = vsel %vm130_vm1, %v1607_v34, %v880_v33  ;;  %v794_v43 = vsel %vm130_vm1, %v1588_v36, %v789_v35 }
  0x54   :  { %v1625_v40 = vld [vmem:[%s3221_s0 + $0x183] ss:$16 sm:%s966_s9]   ;;  %v1589_v44 = vld [vmem:[%s3221_s0 + $0x184] ss:$16 sm:%s796_s25]   ;;  %v913_v45 = vsel %vm135_vm2, %v1613_v38, %v908_v37  ;;  %v890_v50 = vsel %vm135_vm2, %v1608_v39, %v885_v41  ;;  %s2410_s25 = smov 48  ;;  %s2421_s9 = smov 192 }
  0x55   :  { %v1626_v42 = vld [vmem:[%s3221_s0 + $0x183] ss:$16 sm:%s969_s22]   ;;  %v799_v53 = vsel %vm135_vm2, %v1589_v44, %v794_v43  ;;  %v1640_v61 = vld [vmem:[%s3221_s0 + $0x2] ss:$16 sm:%s2297_s13]   ;;  %s920_s13 = smov 3  ;;  %s2526_s22 = smov 192 }
  0x56   :  { %846 = vrot.lane.b32.xlu1 %v845_v24, %s1728_s24  ;;  %v1620_v46 = vld [vmem:[%s3221_s0 + $0x83] ss:$16 sm:%s943_s4]   ;;  %v972_v51 = vsel %vm125_vm0, %v1626_v42, %v1625_v40  ;;  %v2_v41 = vld [vmem:[%s3221_s0] ss:$8 sm:$0xf]   ;;  %s2583_s4 = smov 3 }
  0x57   :  { %731 = vrot.lane.b32.xlu2 %v730_v32, %s1728_s24  ;;  %v1621_v47 = vld [vmem:[%s3221_s0 + $0x83] ss:$16 sm:%s946_s20]   ;;  %s992_s20 = smov 12 }
  0x58   :  { %823 = vrot.lane.b32.xlu0 %v822_v29, %s1728_s24  ;;  %v1601_v48 = vld [vmem:[%s3221_s0 + $0x3] ss:$16 sm:%s852_s7]   ;;  %s2332_s7 = smov 192  ;;  %v949_v54 = vsel %vm125_vm0, %v1621_v47, %v1620_v46 }
  0x59   :  { %v1602_v49 = vld [vmem:[%s3221_s0 + $0x3] ss:$16 sm:%s855_s8]   ;;  %v1641_v63 = vld [vmem:[%s3221_s0 + $0x2] ss:$16 sm:%s2299_s14]   ;;  %s2552_s8 = smov 12  ;;  %s2601_s14 = smov 3 }
  0x5a   :  { %v1627_v52 = vld [vmem:[%s3221_s0 + $0x183] ss:$16 sm:%s2259_s16]   ;;  %s2325_s16 = smov 3  ;;  %v858_v56 = vsel %vm125_vm0, %v1602_v49, %v1601_v48  ;;  %v1636_v4 = vld [vmem:[%s3221_s0 + $0x18b] ss:$16 sm:%s2327_s2]   ;;  %s2386_s2 = smov 12  ;;  %v1041_v8 = vsel %vm125_vm0, %v1641_v63, %v1640_v61 }
  0x5b   :  { %v1622_v55 = vld [vmem:[%s3221_s0 + $0x83] ss:$16 sm:%s2279_s27]   ;;  %v977_v58 = vsel %vm130_vm1, %v1627_v52, %v972_v51  ;;  %v1635_v3 = vld [vmem:[%s3221_s0 + $0x18b] ss:$16 sm:%s2325_s16]   ;;  %s2423_s16 = smov 3  ;;  %s1060_s27 = smov 12 }
  0x5c   :  { %v1603_v57 = vld [vmem:[%s3221_s0 + $0x3] ss:$16 sm:%s860_s26]   ;;  %v954_v62 = vsel %vm130_vm1, %v1622_v55, %v949_v54  ;;  %v1615_v5 = vld [vmem:[%s3221_s0 + $0x10b] ss:$16 sm:%s920_s13]   ;;  %v1018_v11 = vsel %vm125_vm0, %v1636_v4, %v1635_v3  ;;  %s1730_s26 = smov 32   ;;  %s1345_s13 = smov 192 }
  0x5d   :  { %v1628_v59 = vld [vmem:[%s3221_s0 + $0x183] ss:$16 sm:%s2262_s17]   ;;  %s2354_s17 = smov 48  ;;  %v863_v0 = vsel %vm130_vm1, %v1603_v57, %v858_v56  ;;  %v1616_v6 = vld [vmem:[%s3221_s0 + $0x10b] ss:$16 sm:%s923_s21]   ;;  %s2405_s21 = smov 3 }
  0x5e   :  { %914 = vrot.lane.b32.xlu1 %v913_v45, %s1729_s3  ;;  %v1623_v60 = vld [vmem:[%s3221_s0 + $0x83] ss:$16 sm:%s2281_s29]   ;;  %v982_v2 = vsel %vm135_vm2, %v1628_v59, %v977_v58  ;;  %s928_s29 = smov 48  ;;  %v926_v13 = vsel %vm125_vm0, %v1616_v6, %v1615_v5  ;;  %v3_v52 = vld [vmem:[%s3221_s0] ss:$8 sm:$0xf0]  }
  0x5f   :  { %800 = vrot.lane.b32.xlu2 %v799_v53, %s1728_s24  ;;  %s2352_s24 = smov 12  ;;  %v1604_v1 = vld [vmem:[%s3221_s0 + $0x3] ss:$16 sm:%s865_s11]   ;;  %s2390_s11 = smov 192  ;;  %v959_v7 = vsel %vm135_vm2, %v1623_v60, %v954_v62  ;;  %v5_v53 = vsel %vm4_vm3, %v3_v52, %v2_v41 }
  0x60   :  { %891 = vrot.lane.b32.xlu0 %v890_v50, %s1729_s3  ;;  %v1642_v9 = vld [vmem:[%s3221_s0 + $0x2] ss:$16 sm:%s2308_s18]   ;;  %v868_v10 = vsel %vm135_vm2, %v1604_v1, %v863_v0  ;;  %s933_s18 = smov 192  ;;  %v1403_v54 = vld [vmem:[%s3221_s0 + $0x40] ss:$8 sm:$0xf]  }
  0x61   :  { %v1637_v12 = vld [vmem:[%s3221_s0 + $0x18b] ss:$16 sm:%s2330_s5]   ;;  %v1046_v15 = vsel %vm130_vm1, %v1642_v9, %v1041_v8  ;;  %v1643_v16 = vld [vmem:[%s3221_s0 + $0x2] ss:$16 sm:%s2310_s19]   ;;  %s2432_s19 = smov 12  ;;  %s997_s5 = smov 48 }
  0x62   :  { %v1617_v14 = vld [vmem:[%s3221_s0 + $0x10b] ss:$16 sm:%s928_s29]   ;;  %v1654_v18 = vld [vmem:[%s3221_s0 + $0x10a] ss:$16 sm:%s2343_s12]   ;;  %s989_s12 = smov 3  ;;  %v1023_v19 = vsel %vm130_vm1, %v1637_v12, %v1018_v11  ;;  %v1051_v23 = vsel %vm135_vm2, %v1643_v16, %v1046_v15 }
  0x63   :  { %v1638_v17 = vld [vmem:[%s3221_s0 + $0x18b] ss:$16 sm:%s2332_s7]   ;;  %v1655_v20 = vld [vmem:[%s3221_s0 + $0x10a] ss:$16 sm:%s2352_s24]   ;;  %v931_v21 = vsel %vm130_vm1, %v1617_v14, %v926_v13  ;;  %s2485_s24 = smov 192  ;;  %s1057_s7 = smov 3 }
  0x64   :  { %v1618_v22 = vld [vmem:[%s3221_s0 + $0x10b] ss:$16 sm:%s933_s18]   ;;  %s2453_s18 = smov 192  ;;  %v1649_v24 = vld [vmem:[%s3221_s0 + $0xa] ss:$16 sm:%s2375_s30]   ;;  %v1028_v28 = vsel %vm135_vm2, %v1638_v17, %v1023_v19  ;;  %v1109_v29 = vsel %vm125_vm0, %v1655_v20, %v1654_v18  ;;  %s2494_s30 = smov 12 }
  0x65   :  { %v1650_v25 = vld [vmem:[%s3221_s0 + $0xa] ss:$16 sm:%s2386_s2]   ;;  %s2464_s2 = smov 192  ;;  %v1630_v26 = vld [vmem:[%s3221_s0 + $0x8b] ss:$16 sm:%s989_s12]   ;;  %s2472_s12 = smov 3  ;;  %v936_v31 = vsel %vm135_vm2, %v1618_v22, %v931_v21 }
  0x66   :  { %983 = vrot.lane.b32.xlu1 %v982_v2, %s1729_s3  ;;  %v1631_v27 = vld [vmem:[%s3221_s0 + $0x8b] ss:$16 sm:%s992_s20]   ;;  %s2474_s20 = smov 12  ;;  %v1086_v33 = vsel %vm125_vm0, %v1650_v25, %v1649_v24  ;;  %v1404_v55 = vld [vmem:[%s3221_s0 + $0x40] ss:$8 sm:$0xf0]  }
  0x67   :  { %869 = vrot.lane.b32.xlu2 %v868_v10, %s1729_s3  ;;  %v1656_v30 = vld [vmem:[%s3221_s0 + $0x10a] ss:$16 sm:%s2354_s17]   ;;  %s2483_s17 = smov 48  ;;  %v995_v35 = vsel %vm125_vm0, %v1631_v27, %v1630_v26  ;;  %7 = vst.msk [vmem:[%s3222_s1] ss:$8 sm:$0x3] %vm6_vm4, %v5_v53   ;;  %v19_v61 = vsel %vm4_vm3, %v1404_v55, %v1403_v54 }
  0x68   :  { %960 = vrot.lane.b32.xlu0 %v959_v7, %s1729_s3  ;;  %v1657_v32 = vld [vmem:[%s3221_s0 + $0x10a] ss:$16 sm:%s2373_s28]   ;;  %s2492_s28 = smov 3  ;;  %v1114_v37 = vsel %vm130_vm1, %v1656_v30, %v1109_v29  ;;  %1400 = vst.msk [vmem:[%s3222_s1 - $0xf] ss:$8 sm:$0xc] %vm6_vm4, %v5_v53  }
  0x69   :  { %v1651_v34 = vld [vmem:[%s3221_s0 + $0xa] ss:$16 sm:%s2388_s10]   ;;  %v1632_v36 = vld [vmem:[%s3221_s0 + $0x8b] ss:$16 sm:%s997_s5]   ;;  %s2505_s5 = smov 48  ;;  %v1119_v49 = vsel %vm135_vm2, %v1657_v32, %v1114_v37  ;;  %s2713_s10 = smov 3 }
  0x6a   :  { %v1652_v38 = vld [vmem:[%s3221_s0 + $0xa] ss:$16 sm:%s2390_s11]   ;;  %v1091_v42 = vsel %vm130_vm1, %v1651_v34, %v1086_v33  ;;  %v1664_v43 = vld [vmem:[%s3221_s0 + $0x182] ss:$16 sm:%s2423_s16]   ;;  %v1000_v46 = vsel %vm130_vm1, %v1632_v36, %v995_v35  ;;  %s2743_s16 = smov 192 }
  0x6b   :  { %v1669_v39 = vld [vmem:[%s3221_s0 + $0x8a] ss:$16 sm:%s2405_s21]   ;;  %v1665_v44 = vld [vmem:[%s3221_s0 + $0x182] ss:$16 sm:%s2432_s19]   ;;  %v1096_v56 = vsel %vm135_vm2, %v1652_v38, %v1091_v42  ;;  %s2754_s19 = smov 3  ;;  %s2801_s21 = smov 48 }
  0x6c   :  { %v1670_v40 = vld [vmem:[%s3221_s0 + $0x8a] ss:$16 sm:%s2408_s23]   ;;  %s2522_s23 = smov 192  ;;  %v1633_v47 = vld [vmem:[%s3221_s0 + $0x8b] ss:$16 sm:%s2464_s2]   ;;  %v1155_v62 = vsel %vm125_vm0, %v1665_v44, %v1664_v43  ;;  %s1203_s2 = smov 48 }
  0x6d   :  { %v1644_v48 = vld [vmem:[%s3221_s0 + $0x102] ss:$16 sm:%s1057_s7]   ;;  %s2550_s7 = smov 3  ;;  %v1671_v50 = vld [vmem:[%s3221_s0 + $0x8a] ss:$16 sm:%s2410_s25]   ;;  %v1178_v57 = vsel %vm125_vm0, %v1670_v40, %v1669_v39  ;;  %v1005_v59 = vsel %vm135_vm2, %v1633_v47, %v1000_v46  ;;  %s1129_s25 = smov 12 }
  0x6e   :  { %1052 = vrot.lane.b32.xlu1 %v1051_v23, %s1730_s26  ;;  %v1645_v51 = vld [vmem:[%s3221_s0 + $0x102] ss:$16 sm:%s1060_s27]   ;;  %s2562_s27 = smov 48  ;;  %1401 = vst.msk [vmem:[%s3222_s1 - $0x1e] ss:$8 sm:$0x30] %vm6_vm4, %v5_v53   ;;  %v1183_v2 = vsel %vm130_vm1, %v1671_v50, %v1178_v57 }
  0x6f   :  { %937 = vrot.lane.b32.xlu2 %v936_v31, %s1729_s3  ;;  %v1666_v58 = vld [vmem:[%s3221_s0 + $0x182] ss:$16 sm:%s2434_s6]   ;;  %s2581_s6 = smov 192  ;;  %v1063_v63 = vsel %vm125_vm0, %v1645_v51, %v1644_v48  ;;  %1402 = vst.msk [vmem:[%s3222_s1 - $0x2d] ss:$8 sm:$0xc0] %vm6_vm4, %v5_v53  }
  0x70   :  { %1029 = vrot.lane.b32.xlu0 %v1028_v28, %s1729_s3  ;;  %v1672_v60 = vld [vmem:[%s3221_s0 + $0x8a] ss:$16 sm:%s2421_s9]   ;;  %s2594_s9 = smov 12  ;;  %v1421_v6 = vld [vmem:[%s3221_s0 + $0x100] ss:$8 sm:$0xf]   ;;  %v1160_v9 = vsel %vm130_vm1, %v1666_v58, %v1155_v62 }
  0x71   :  { %v2540_v45 = vpop.permute.xlu2 %228   ;;  %v1646_v0 = vld [vmem:[%s3221_s0 + $0x102] ss:$16 sm:%s2524_s15]   ;;  %v1683_v4 = vld [vmem:[%s3221_s0 + $0x101] ss:$16 sm:%s2472_s12]   ;;  %v1188_v15 = vsel %vm135_vm2, %v1672_v60, %v1183_v2  ;;  %s1139_s15 = smov 192  ;;  %s2741_s12 = smov 48 }
  0x72   :  { %v1667_v3 = vld [vmem:[%s3221_s0 + $0x182] ss:$16 sm:%s2453_s18]   ;;  %v1684_v5 = vld [vmem:[%s3221_s0 + $0x101] ss:$16 sm:%s2474_s20]   ;;  %v1068_v13 = vsel %vm130_vm1, %v1646_v0, %v1063_v63 }
  0x73   :  { %1405 = vst.msk [vmem:[%s3222_s1 + $0x4] ss:$8 sm:$0x3] %vm6_vm4, %v19_v61   ;;  %v1422_v7 = vld [vmem:[%s3221_s0 + $0x100] ss:$8 sm:$0xf0]   ;;  %v1165_v20 = vsel %vm135_vm2, %v1667_v3, %v1160_v9  ;;  %v1246_v21 = vsel %vm125_vm0, %v1684_v5, %v1683_v4 }
  0x74   :  { %v1679_v10 = vld [vmem:[%s3221_s0 + $0x1] ss:$16 sm:%s2492_s28]   ;;  %v1647_v14 = vld [vmem:[%s3221_s0 + $0x102] ss:$16 sm:%s2526_s22]   ;;  %s2658_s22 = smov 48  ;;  %v64_v18 = vsel %vm4_vm3, %v1422_v7, %v1421_v6 }
  0x75   :  { %v1680_v11 = vld [vmem:[%s3221_s0 + $0x1] ss:$16 sm:%s2494_s30]   ;;  %1406 = vst.msk [vmem:[%s3222_s1 - $0xb] ss:$8 sm:$0xc] %vm6_vm4, %v19_v61   ;;  %v1073_v23 = vsel %vm135_vm2, %v1647_v14, %v1068_v13 }
  0x76   :  { %1120 = vrot.lane.b32.xlu1 %v1119_v49, %s1730_s26  ;;  %v1685_v16 = vld [vmem:[%s3221_s0 + $0x101] ss:$16 sm:%s2483_s17]   ;;  %s2669_s17 = smov 192  ;;  %1407 = vst.msk [vmem:[%s3222_s1 - $0x1a] ss:$8 sm:$0x30] %vm6_vm4, %v19_v61   ;;  %v1224_v27 = vsel %vm125_vm0, %v1680_v11, %v1679_v10 }
  0x77   :  { %1006 = vrot.lane.b32.xlu2 %v1005_v59, %s1729_s3  ;;  %v1659_v17 = vld [vmem:[%s3221_s0 + $0x82] ss:$16 sm:%s2601_s14]   ;;  %1408 = vst.msk [vmem:[%s3222_s1 - $0x29] ss:$8 sm:$0xc0] %vm6_vm4, %v19_v61   ;;  %v1251_v31 = vsel %vm130_vm1, %v1685_v16, %v1246_v21  ;;  %s1195_s3 = smov 3 }
  0x78   :  { %1097 = vrot.lane.b32.xlu0 %v1096_v56, %s1730_s26  ;;  %v183_v1 = vpop.permute.xlu1 %182   ;;  %v1660_v19 = vld [vmem:[%s3221_s0 + $0x82] ss:$16 sm:%s1129_s25]   ;;  %s1134_s25 = smov 48  ;;  %v1427_v24 = vld [vmem:[%s3221_s0 + $0x140] ss:$8 sm:$0xf]  }
  0x79   :  { %v2651_v12 = vpop.permute.xlu2 %251   ;;  %v1681_v22 = vld [vmem:[%s3221_s0 + $0x1] ss:$16 sm:%s2505_s5]   ;;  %1458 = vst.msk [vmem:[%s3222_s1 + $0x8] sm:$0xff] %vm139_vm5, %v183_v1   ;;  %v1428_v26 = vld [vmem:[%s3221_s0 + $0x140] ss:$8 sm:$0xf0]   ;;  %v1132_v28 = vsel %vm125_vm0, %v1660_v19, %v1659_v17 }
  0x7a   :  { %v138_v8 = vpop.permute.xlu0 %137   ;;  %v1686_v25 = vld [vmem:[%s3221_s0 + $0x101] ss:$16 sm:%s2485_s24]   ;;  %1423 = vst.msk [vmem:[%s3222_s1 + $0x20] ss:$8 sm:$0x3] %vm6_vm4, %v64_v18   ;;  %v79_v35 = vsel %vm4_vm3, %v1428_v26, %v1427_v24  ;;  %v1229_v37 = vsel %vm130_vm1, %v1681_v22, %v1224_v27 }
  0x7b   :  { %140 = vst.msk [vmem:[%s3222_s1] sm:$0xff] %vm139_vm5, %v138_v8   ;;  %v1661_v29 = vld [vmem:[%s3221_s0 + $0x82] ss:$16 sm:%s1134_s25]   ;;  %s2724_s25 = smov 12  ;;  %v1256_v42 = vsel %vm135_vm2, %v1686_v25, %v1251_v31 }
  0x7c   :  { %v1682_v32 = vld [vmem:[%s3221_s0 + $0x1] ss:$16 sm:%s2522_s23]   ;;  %1424 = vst.msk [vmem:[%s3222_s1 + $0x11] ss:$8 sm:$0xc] %vm6_vm4, %v64_v18   ;;  %v1137_v40 = vsel %vm130_vm1, %v1661_v29, %v1132_v28  ;;  %s2821_s23 = smov 192 }
  0x7d   :  { %v1698_v33 = vld [vmem:[%s3221_s0 + $0x81] ss:$16 sm:%s2550_s7]   ;;  %1425 = vst.msk [vmem:[%s3222_s1 + $0x2] ss:$8 sm:$0x30] %vm6_vm4, %v64_v18   ;;  %v1234_v47 = vsel %vm135_vm2, %v1682_v32, %v1229_v37  ;;  %s1208_s7 = smov 192 }
  0x7e   :  { %1189 = vrot.lane.b32.xlu1 %v1188_v15, %s1730_s26  ;;  %v1699_v34 = vld [vmem:[%s3221_s0 + $0x81] ss:$16 sm:%s2552_s8]   ;;  %1426 = vst.msk [vmem:[%s3222_s1 - $0xd] ss:$8 sm:$0xc0] %vm6_vm4, %v64_v18   ;;  %s1263_s8 = smov 3 }
  0x7f   :  { %1074 = vrot.lane.b32.xlu2 %v1073_v23, %s1730_s26  ;;  %v1693_v38 = vld [vmem:[%s3221_s0 + $0x109] ss:$16 sm:%s2583_s4]   ;;  %v1433_v44 = vld [vmem:[%s3221_s0 + $0x180] ss:$8 sm:$0xf]   ;;  %v1315_v48 = vsel %vm125_vm0, %v1699_v34, %v1698_v33  ;;  %s1731_s4 = smov 16  }
  0x80   :  { %1166 = vrot.lane.b32.xlu0 %v1165_v20, %s1730_s26  ;;  %v206_v30 = vpop.permute.xlu1 %205   ;;  %v1662_v41 = vld [vmem:[%s3221_s0 + $0x82] ss:$16 sm:%s1139_s15]   ;;  %s2769_s15 = smov 12  ;;  %1429 = vst.msk [vmem:[%s3222_s1 + $0x24] ss:$8 sm:$0x3] %vm6_vm4, %v79_v35  }
  0x81   :  { %v321_v39 = vpop.permute.xlu2 %320   ;;  %v1694_v43 = vld [vmem:[%s3221_s0 + $0x109] ss:$16 sm:%s2594_s9]   ;;  %v1434_v46 = vld [vmem:[%s3221_s0 + $0x180] ss:$8 sm:$0xf0]   ;;  %v1142_v50 = vsel %vm135_vm2, %v1662_v41, %v1137_v40 }
  0x82   :  { %v160_v36 = vpop.permute.xlu0 %159   ;;  %323 = vst.msk [vmem:[%s3222_s1] sm:$0xff] %vm322_vm6, %v321_v39   ;;  %v1700_v49 = vld [vmem:[%s3221_s0 + $0x81] ss:$16 sm:%s2562_s27]   ;;  %v1292_v52 = vsel %vm125_vm0, %v1694_v43, %v1693_v38  ;;  %v94_v54 = vsel %vm4_vm3, %v1434_v46, %v1433_v44  ;;  %v1439_v60 = vld [vmem:[%s3221_s0 + $0x1c0] ss:$8 sm:$0xf]  }
  0x83   :  { %1430 = vst.msk [vmem:[%s3222_s1 + $0x15] ss:$8 sm:$0xc] %vm6_vm4, %v79_v35   ;;  %v1701_v51 = vld [vmem:[%s3221_s0 + $0x81] ss:$16 sm:%s2581_s6]   ;;  %v1320_v56 = vsel %vm130_vm1, %v1700_v49, %v1315_v48  ;;  %s1198_s27 = smov 12 }
  0x84   :  { %1431 = vst.msk [vmem:[%s3222_s1 + $0x6] ss:$8 sm:$0x30] %vm6_vm4, %v79_v35   ;;  %v1695_v53 = vld [vmem:[%s3221_s0 + $0x109] ss:$16 sm:%s2658_s22]   ;;  %v1325_v4 = vsel %vm135_vm2, %v1701_v51, %v1320_v56  ;;  %s1276_s22 = smov 192 }
  0x85   :  { %1432 = vst.msk [vmem:[%s3222_s1 - $0x9] ss:$8 sm:$0xc0] %vm6_vm4, %v79_v35   ;;  %v1696_v57 = vld [vmem:[%s3221_s0 + $0x109] ss:$16 sm:%s2669_s17]   ;;  %v1297_v0 = vsel %vm130_vm1, %v1695_v53, %v1292_v52  ;;  %s1332_s17 = smov 3 }
  0x86   :  { %1257 = vrot.lane.b32.xlu1 %v1256_v42, %s1731_s4  ;;  %1453 = vst.msk [vmem:[%s3222_s1 + $0x20] sm:$0xff] %vm139_vm5, %v160_v36   ;;  %v1713_v58 = vld [vmem:[%s3221_s0 + $0x189] ss:$16 sm:%s2713_s10]   ;;  %v1302_v10 = vsel %vm135_vm2, %v1696_v57, %v1297_v0  ;;  %s1335_s10 = smov 12 }
  0x87   :  { %1143 = vrot.lane.b32.xlu2 %v1142_v50, %s1730_s26  ;;  %v1714_v59 = vld [vmem:[%s3221_s0 + $0x189] ss:$16 sm:%s2724_s25]   ;;  %1463 = vst.msk [vmem:[%s3222_s1 + $0x28] sm:$0xff] %vm139_vm5, %v206_v30   ;;  %s1266_s25 = smov 12 }
  0x88   :  { %1235 = vrot.lane.b32.xlu0 %v1234_v47, %s1731_s4  ;;  %v2825_v55 = vpop.permute.xlu1 %297   ;;  %v1440_v61 = vld [vmem:[%s3221_s0 + $0x1c0] ss:$8 sm:$0xf0]   ;;  %v1674_v62 = vld [vmem:[%s3221_s0 + $0x18a] ss:$16 sm:%s1195_s3]   ;;  %v1384_v11 = vsel %vm125_vm0, %v1714_v59, %v1713_v58 }
  0x89   :  { %v1708_v1 = vld [vmem:[%s3221_s0 + $0x89] ss:$16 sm:%s2754_s19]   ;;  %v389_v3 = vpop.permute.xlu2 %388   ;;  %1435 = vst.msk [vmem:[%s3222_s1 + $0x30] ss:$8 sm:$0x3] %vm6_vm4, %v94_v54   ;;  %v109_v7 = vsel %vm4_vm3, %v1440_v61, %v1439_v60 }
  0x8a   :  { %v2858_v63 = vpop.permute.xlu0 %274   ;;  %v1709_v2 = vld [vmem:[%s3221_s0 + $0x89] ss:$16 sm:%s2769_s15]   ;;  %1502 = vst.msk [vmem:[%s3222_s1 + $0x28] sm:$0xff] %vm322_vm6, %v389_v3   ;;  %v1409_v24 = vld [vmem:[%s3221_s0 + $0x80] ss:$8 sm:$0xf]  }
  0x8b   :  { %v1715_v5 = vld [vmem:[%s3221_s0 + $0x189] ss:$16 sm:%s2741_s12]   ;;  %v1675_v6 = vld [vmem:[%s3221_s0 + $0x18a] ss:$16 sm:%s1198_s27]   ;;  %v1361_v19 = vsel %vm125_vm0, %v1709_v2, %v1708_v1  ;;  %s1340_s12 = smov 48 }
  0x8c   :  { %1436 = vst.msk [vmem:[%s3222_s1 + $0x21] ss:$8 sm:$0xc] %vm6_vm4, %v94_v54   ;;  %v1201_v8 = vsel %vm125_vm0, %v1675_v6, %v1674_v62  ;;  %v1676_v9 = vld [vmem:[%s3221_s0 + $0x18a] ss:$16 sm:%s1203_s2]   ;;  %s1271_s2 = smov 48  ;;  %v1389_v22 = vsel %vm130_vm1, %v1715_v5, %v1384_v11 }
  0x8d   :  { %v1710_v13 = vld [vmem:[%s3221_s0 + $0x89] ss:$16 sm:%s2801_s21]   ;;  %1437 = vst.msk [vmem:[%s3222_s1 + $0x12] ss:$8 sm:$0x30] %vm6_vm4, %v94_v54   ;;  %v1206_v14 = vsel %vm130_vm1, %v1676_v9, %v1201_v8 }
  0x8e   :  { %v1677_v15 = vld [vmem:[%s3221_s0 + $0x18a] ss:$16 sm:%s1208_s7]   ;;  %1326 = vrot.lane.b32.xlu1 %v1325_v4, %s1731_s4  ;;  %1438 = vst.msk [vmem:[%s3222_s1 + $0x3] ss:$8 sm:$0xc0] %vm6_vm4, %v94_v54   ;;  %v1366_v29 = vsel %vm130_vm1, %v1710_v13, %v1361_v19 }
  0x8f   :  { %v1716_v16 = vld [vmem:[%s3221_s0 + $0x189] ss:$16 sm:%s2743_s16]   ;;  %v1211_v17 = vsel %vm135_vm2, %v1677_v15, %v1206_v14  ;;  %1441 = vst.msk [vmem:[%s3222_s1 + $0x34] ss:$8 sm:$0x3] %vm6_vm4, %v109_v7  }
  0x90   :  { %v1688_v18 = vld [vmem:[%s3221_s0 + $0x9] ss:$16 sm:%s1263_s8]   ;;  %1303 = vrot.lane.b32.xlu0 %v1302_v10, %s1731_s4  ;;  %v366_v21 = vpop.permute.xlu1 %365   ;;  %1442 = vst.msk [vmem:[%s3222_s1 + $0x25] ss:$8 sm:$0xc] %vm6_vm4, %v109_v7   ;;  %v1394_v33 = vsel %vm135_vm2, %v1716_v16, %v1389_v22 }
  0x91   :  { %v1689_v20 = vld [vmem:[%s3221_s0 + $0x9] ss:$16 sm:%s1266_s25]   ;;  %1212 = vrot.lane.b32.xlu2 %v1211_v17, %s1730_s26  ;;  %1497 = vst.msk [vmem:[%s3222_s1 + $0x8] sm:$0xff] %vm322_vm6, %v366_v21   ;;  %v458_v30 = vpop.permute.xlu2 %457  }
  0x92   :  { %v1711_v23 = vld [vmem:[%s3221_s0 + $0x89] ss:$16 sm:%s2821_s23]   ;;  %v1269_v25 = vsel %vm125_vm0, %v1689_v20, %v1688_v18  ;;  %v1410_v26 = vld [vmem:[%s3221_s0 + $0x80] ss:$8 sm:$0xf0]   ;;  %v343_v28 = vpop.permute.xlu0 %342  }
  0x93   :  { %v1690_v27 = vld [vmem:[%s3221_s0 + $0x9] ss:$16 sm:%s1271_s2]   ;;  %1443 = vst.msk [vmem:[%s3222_s1 + $0x16] ss:$8 sm:$0x30] %vm6_vm4, %v109_v7   ;;  %v34_v35 = vsel %vm4_vm3, %v1410_v26, %v1409_v24  ;;  %v1371_v37 = vsel %vm135_vm2, %v1711_v23, %v1366_v29 }
  0x94   :  { %v1274_v31 = vsel %vm130_vm1, %v1690_v27, %v1269_v25  ;;  %v1691_v32 = vld [vmem:[%s3221_s0 + $0x9] ss:$16 sm:%s1276_s22]   ;;  %1492 = vst.msk [vmem:[%s3222_s1 + $0x20] sm:$0xff] %vm322_vm6, %v343_v28   ;;  %v1416_v39 = vld [vmem:[%s3221_s0 + $0xc0] ss:$8 sm:$0xf0]  }
  0x95   :  { %v1703_v34 = vld [vmem:[%s3221_s0 + $0x181] ss:$16 sm:%s1332_s17]   ;;  %1444 = vst.msk [vmem:[%s3222_s1 + $0x7] ss:$8 sm:$0xc0] %vm6_vm4, %v109_v7   ;;  %v1279_v38 = vsel %vm135_vm2, %v1691_v32, %v1274_v31 }
  0x96   :  { %v1704_v36 = vld [vmem:[%s3221_s0 + $0x181] ss:$16 sm:%s1335_s10]   ;;  %1473 = vst.msk [vmem:[%s3222_s1 + $0x30] sm:$0xff] %vm139_vm5, %v2651_v12   ;;  %v1415_v12 = vld [vmem:[%s3221_s0 + $0xc0] ss:$8 sm:$0xf]  }
  0x97   :  { %1395 = vrot.lane.b32.xlu1 %v1394_v33, %s1731_s4  ;;  %1483 = vst.msk [vmem:[%s3222_s1 + $0x38] sm:$0xff] %vm139_vm5, %v2825_v55   ;;  %v1338_v40 = vsel %vm125_vm0, %v1704_v36, %v1703_v34  ;;  %v1705_v41 = vld [vmem:[%s3221_s0 + $0x181] ss:$16 sm:%s1340_s12]   ;;  %v49_v43 = vsel %vm4_vm3, %v1416_v39, %v1415_v12 }
  0x98   :  { %1411 = vst.msk [vmem:[%s3222_s1 + $0x10] ss:$8 sm:$0x3] %vm6_vm4, %v34_v35   ;;  %1372 = vrot.lane.b32.xlu0 %v1371_v37, %s1731_s4  ;;  %v435_v42 = vpop.permute.xlu1 %434   ;;  %v1343_v47 = vsel %vm130_vm1, %v1705_v41, %v1338_v40  ;;  %v1706_v48 = vld [vmem:[%s3221_s0 + $0x181] ss:$16 sm:%s1345_s13]  }
  0x99   :  { %1412 = vst.msk [vmem:[%s3222_s1 + $0x1] ss:$8 sm:$0xc] %vm6_vm4, %v34_v35   ;;  %1280 = vrot.lane.b32.xlu2 %v1279_v38, %s1731_s4  ;;  %v526_v46 = vpop.permute.xlu2 %525   ;;  %v1348_v49 = vsel %vm135_vm2, %v1706_v48, %v1343_v47 }
  0x9a   :  { %1512 = vst.msk [vmem:[%s3222_s1 + $0x30] sm:$0xff] %vm322_vm6, %v435_v42   ;;  %v412_v44 = vpop.permute.xlu0 %411  }
  0x9b   :  { %1413 = vst.msk [vmem:[%s3222_s1 - $0xe] ss:$8 sm:$0x30] %vm6_vm4, %v34_v35  }
  0x9c   :  { %1414 = vst.msk [vmem:[%s3222_s1 - $0x1d] ss:$8 sm:$0xc0] %vm6_vm4, %v34_v35  }
  0x9d   :  { %1417 = vst.msk [vmem:[%s3222_s1 + $0x14] ss:$8 sm:$0x3] %vm6_vm4, %v49_v43  }
  0x9e   :  { %1418 = vst.msk [vmem:[%s3222_s1 + $0x5] ss:$8 sm:$0xc] %vm6_vm4, %v49_v43  }
  0x9f   :  { %1419 = vst.msk [vmem:[%s3222_s1 - $0xa] ss:$8 sm:$0x30] %vm6_vm4, %v49_v43  }
  0xa0   :  { %1420 = vst.msk [vmem:[%s3222_s1 - $0x19] ss:$8 sm:$0xc0] %vm6_vm4, %v49_v43  }
  0xa1   :  { %1468 = vst.msk [vmem:[%s3222_s1 + $0x10] sm:$0xff] %vm139_vm5, %v2540_v45   ;;  %v504_v45 = vpop.permute.xlu1 %503   ;;  %1349 = vrot.lane.b32.xlu2 %v1348_v49, %s1731_s4  ;;  %v595_v51 = vpop.permute.xlu2 %594  }
  0xa2   :  { %1507 = vst.msk [vmem:[%s3222_s1 + $0x10] sm:$0xff] %vm322_vm6, %v412_v44   ;;  %v481_v50 = vpop.permute.xlu0 %480  }
  0xa3   :  { %1478 = vst.msk [vmem:[%s3222_s1 + $0x18] sm:$0xff] %vm139_vm5, %v2858_v63  }
  0xa4   :  { %1517 = vst.msk [vmem:[%s3222_s1 + $0x18] sm:$0xff] %vm322_vm6, %v458_v30  }
  0xa5   :  { %506 = vst.msk [vmem:[%s3222_s1] sm:$0xff] %vm505_vm7, %v504_v45  }
  0xa6   :  { %1522 = vst.msk [vmem:[%s3222_s1 + $0x38] sm:$0xff] %vm322_vm6, %v481_v50  }
  0xa7   :  { %1531 = vst.msk [vmem:[%s3222_s1 + $0x20] sm:$0xff] %vm505_vm7, %v526_v46  }
  0xa8   :  { %1546 = vst.msk [vmem:[%s3222_s1 + $0x10] sm:$0xff] %vm505_vm7, %v595_v51  }
  0xa9   :  { %v572_v52 = vpop.permute.xlu1 %571   ;;  %v664_v54 = vpop.permute.xlu2 %663  }
  0xaa   :  { %1541 = vst.msk [vmem:[%s3222_s1 + $0x28] sm:$0xff] %vm505_vm7, %v572_v52   ;;  %v549_v53 = vpop.permute.xlu0 %548  }
  0xab   :  { %1536 = vst.msk [vmem:[%s3222_s1 + $0x8] sm:$0xff] %vm505_vm7, %v549_v53  }
  0xac   :  { %1561 = vst.msk [vmem:[%s3222_s1 + $0x38] sm:$0xff] %vm505_vm7, %v664_v54  }
  0xb1   :  { %v641_v55 = vpop.permute.xlu1 %640   ;;  %v732_v57 = vpop.permute.xlu2 %731  }
  0xb2   :  { %1556 = vst.msk [vmem:[%s3222_s1 + $0x18] sm:$0xff] %vm505_vm7, %v641_v55   ;;  %v618_v56 = vpop.permute.xlu0 %617  }
  0xb3   :  { %1551 = vst.msk [vmem:[%s3222_s1 + $0x30] sm:$0xff] %vm505_vm7, %v618_v56  }
  0xb4   :  { %1575 = vst.msk [vmem:[%s3222_s1 + $0x8] sm:$0xff] %vm688_vm8, %v732_v57  }
  0xb9   :  { %v709_v58 = vpop.permute.xlu1 %708   ;;  %v801_v60 = vpop.permute.xlu2 %800  }
  0xba   :  { %1570 = vst.msk [vmem:[%s3222_s1 + $0x20] sm:$0xff] %vm688_vm8, %v709_v58   ;;  %v687_v59 = vpop.permute.xlu0 %686  }
  0xbb   :  { %689 = vst.msk [vmem:[%s3222_s1] sm:$0xff] %vm688_vm8, %v687_v59  }
  0xbc   :  { %1590 = vst.msk [vmem:[%s3222_s1 + $0x30] sm:$0xff] %vm688_vm8, %v801_v60  }
  0xc1   :  { %v778_v61 = vpop.permute.xlu1 %777   ;;  %v870_v63 = vpop.permute.xlu2 %869  }
  0xc2   :  { %1585 = vst.msk [vmem:[%s3222_s1 + $0x10] sm:$0xff] %vm688_vm8, %v778_v61   ;;  %v755_v62 = vpop.permute.xlu0 %754  }
  0xc3   :  { %1580 = vst.msk [vmem:[%s3222_s1 + $0x28] sm:$0xff] %vm688_vm8, %v755_v62  }
  0xc4   :  { %872 = vst.msk [vmem:[%s3222_s1] sm:$0xff] %vm871_vm9, %v870_v63  }
  0xc9   :  { %v847_v0 = vpop.permute.xlu1 %846   ;;  %v938_v2 = vpop.permute.xlu2 %937  }
  0xca   :  { %1600 = vst.msk [vmem:[%s3222_s1 + $0x38] sm:$0xff] %vm688_vm8, %v847_v0   ;;  %v824_v1 = vpop.permute.xlu0 %823  }
  0xcb   :  { %1595 = vst.msk [vmem:[%s3222_s1 + $0x18] sm:$0xff] %vm688_vm8, %v824_v1  }
  0xcc   :  { %1619 = vst.msk [vmem:[%s3222_s1 + $0x28] sm:$0xff] %vm871_vm9, %v938_v2  }
  0xd1   :  { %v915_v3 = vpop.permute.xlu1 %914   ;;  %v1007_v5 = vpop.permute.xlu2 %1006  }
  0xd2   :  { %1614 = vst.msk [vmem:[%s3222_s1 + $0x8] sm:$0xff] %vm871_vm9, %v915_v3   ;;  %v892_v4 = vpop.permute.xlu0 %891  }
  0xd3   :  { %1609 = vst.msk [vmem:[%s3222_s1 + $0x20] sm:$0xff] %vm871_vm9, %v892_v4  }
  0xd4   :  { %1634 = vst.msk [vmem:[%s3222_s1 + $0x18] sm:$0xff] %vm871_vm9, %v1007_v5  }
  0xd9   :  { %v984_v6 = vpop.permute.xlu1 %983   ;;  %v1075_v8 = vpop.permute.xlu2 %1074  }
  0xda   :  { %1629 = vst.msk [vmem:[%s3222_s1 + $0x30] sm:$0xff] %vm871_vm9, %v984_v6   ;;  %v961_v7 = vpop.permute.xlu0 %960  }
  0xdb   :  { %1624 = vst.msk [vmem:[%s3222_s1 + $0x10] sm:$0xff] %vm871_vm9, %v961_v7  }
  0xdc   :  { %1648 = vst.msk [vmem:[%s3222_s1 + $0x20] sm:$0xff] %vm1054_vm10, %v1075_v8  }
  0xe1   :  { %v1053_v9 = vpop.permute.xlu1 %1052   ;;  %v1144_v11 = vpop.permute.xlu2 %1143  }
  0xe2   :  { %1055 = vst.msk [vmem:[%s3222_s1] sm:$0xff] %vm1054_vm10, %v1053_v9   ;;  %v1030_v10 = vpop.permute.xlu0 %1029  }
  0xe3   :  { %1639 = vst.msk [vmem:[%s3222_s1 + $0x38] sm:$0xff] %vm871_vm9, %v1030_v10  }
  0xe4   :  { %1663 = vst.msk [vmem:[%s3222_s1 + $0x10] sm:$0xff] %vm1054_vm10, %v1144_v11  }
  0xe9   :  { %v1121_v13 = vpop.permute.xlu1 %1120  }
  0xea   :  { %1658 = vst.msk [vmem:[%s3222_s1 + $0x28] sm:$0xff] %vm1054_vm10, %v1121_v13   ;;  %v1098_v14 = vpop.permute.xlu0 %1097  }
  0xeb   :  { %v1213_v15 = vpop.permute.xlu2 %1212   ;;  %1653 = vst.msk [vmem:[%s3222_s1 + $0x8] sm:$0xff] %vm1054_vm10, %v1098_v14  }
  0xec   :  { %1678 = vst.msk [vmem:[%s3222_s1 + $0x38] sm:$0xff] %vm1054_vm10, %v1213_v15  }
  0xf1   :  { %v1190_v16 = vpop.permute.xlu1 %1189  }
  0xf2   :  { %1673 = vst.msk [vmem:[%s3222_s1 + $0x18] sm:$0xff] %vm1054_vm10, %v1190_v16   ;;  %v1167_v17 = vpop.permute.xlu0 %1166  }
  0xf3   :  { %v1281_v18 = vpop.permute.xlu2 %1280   ;;  %1668 = vst.msk [vmem:[%s3222_s1 + $0x30] sm:$0xff] %vm1054_vm10, %v1167_v17  }
  0xf4   :  { %1692 = vst.msk [vmem:[%s3222_s1 + $0x8] sm:$0xff] %vm1237_vm11, %v1281_v18  }
  0xf9   :  { %v1258_v19 = vpop.permute.xlu1 %1257  }
  0xfa   :  { %1687 = vst.msk [vmem:[%s3222_s1 + $0x20] sm:$0xff] %vm1237_vm11, %v1258_v19   ;;  %v1236_v20 = vpop.permute.xlu0 %1235  }
  0xfb   :  { %v1350_v21 = vpop.permute.xlu2 %1349   ;;  %1238 = vst.msk [vmem:[%s3222_s1] sm:$0xff] %vm1237_vm11, %v1236_v20  }
  0xfc   :  { %1707 = vst.msk [vmem:[%s3222_s1 + $0x30] sm:$0xff] %vm1237_vm11, %v1350_v21  }
 0x101   :  { %v1327_v22 = vpop.permute.xlu1 %1326  }
 0x102   :  { %1702 = vst.msk [vmem:[%s3222_s1 + $0x10] sm:$0xff] %vm1237_vm11, %v1327_v22   ;;  %v1304_v23 = vpop.permute.xlu0 %1303  }
 0x103   :  { %1697 = vst.msk [vmem:[%s3222_s1 + $0x28] sm:$0xff] %vm1237_vm11, %v1304_v23  }
 0x109   :  { %v1396_v24 = vpop.permute.xlu1 %1395  }
 0x10a   :  { %1717 = vst.msk [vmem:[%s3222_s1 + $0x38] sm:$0xff] %vm1237_vm11, %v1396_v24   ;;  %v1373_v25 = vpop.permute.xlu0 %1372  }
 0x10b   :  { %1712 = vst.msk [vmem:[%s3222_s1 + $0x18] sm:$0xff] %vm1237_vm11, %v1373_v25  }

// kernel: a_call__.3
= control target key start
LH: loop header
LB: loop body
LE: loop exit
PB: predicated region body
PF: predicated region fallthrough
CT: control target
= control target key end

     0   :  { %s3202_s0 = inlined_call_operand.vmem [shape: f32[32,256], index: 0, kind: input, shape index: {}]   ;;  %s3203_s1 = inlined_call_operand.vmem [shape: f32[32,256], index: 1, kind: input, shape index: {}]   ;;  %s3204_s2 = inlined_call_operand.vmem [shape: bf16[2048,128], index: 2, kind: input, shape index: {}]   ;;  %s3205_s3 = inlined_call_operand.hbm [shape: f32[32,128], index: 3, kind: output, shape index: {}]  }
   0x1   :  { %v2352_v0 = vld [vmem:[%s3204_s2 + $0x38] sm:$0xff]  ;;  %v2351_v4 = vld [vmem:[%s3204_s2 + $0x30] sm:$0xff]  ;;  %v2350_v8 = vld [vmem:[%s3204_s2 + $0x28] sm:$0xff] }
   0x2   :  { %v2360_v1 = vld [vmem:[%s3204_s2 + $0x78] sm:$0xff]  ;;  %1383 = vmatpush.bf16.msra.mxu0 %v2352_v0  ;;  %v2359_v5 = vld [vmem:[%s3204_s2 + $0x70] sm:$0xff]  ;;  %v2358_v9 = vld [vmem:[%s3204_s2 + $0x68] sm:$0xff] }
   0x3   :  { %v2368_v2 = vld [vmem:[%s3204_s2 + $0xb8] sm:$0xff]  ;;  %1402 = vmatpush.bf16.msra.mxu1 %v2360_v1  ;;  %v2367_v6 = vld [vmem:[%s3204_s2 + $0xb0] sm:$0xff]  ;;  %v2366_v10 = vld [vmem:[%s3204_s2 + $0xa8] sm:$0xff] }
   0x4   :  { %v2376_v3 = vld [vmem:[%s3204_s2 + $0xf8] sm:$0xff]  ;;  %1421 = vmatpush.bf16.msra.mxu2 %v2368_v2  ;;  %v2375_v7 = vld [vmem:[%s3204_s2 + $0xf0] sm:$0xff]  ;;  %v2374_v11 = vld [vmem:[%s3204_s2 + $0xe8] sm:$0xff] }
   0x5   :  { %1440 = vmatpush.bf16.msra.mxu3 %v2376_v3  ;;  %v2349_v12 = vld [vmem:[%s3204_s2 + $0x20] sm:$0xff]  ;;  %v2597_v17 = vld [vmem:[%s3202_s0 + $0x8] sm:$0xff]  ;;  %v2602_v18 = vld [vmem:[%s3202_s0 + $0x10] sm:$0xff] }
   0x6   :  { %1384 = vmatpush.bf16.msra.mxu0 %v2351_v4  ;;  %v2357_v13 = vld [vmem:[%s3204_s2 + $0x60] sm:$0xff]  ;;  %v2607_v19 = vld [vmem:[%s3202_s0 + $0x18] sm:$0xff]  ;;  %v2623_v23 = vld [vmem:[%s3203_s1 + $0x8] sm:$0xff]  ;;  %v64_v29 = vmul.f32 0.70710677, %v2597_v17  ;;  %v32_v32 = vmax.f32 %v2597_v17, 0.0 }
   0x7   :  { %1403 = vmatpush.bf16.msra.mxu1 %v2359_v5  ;;  %v2365_v14 = vld [vmem:[%s3204_s2 + $0xa0] sm:$0xff]  ;;  %v2348_v20 = vld [vmem:[%s3204_s2 + $0x18] sm:$0xff]  ;;  %v2628_v24 = vld [vmem:[%s3203_s1 + $0x10] sm:$0xff]  ;;  %v65_v30 = vmul.f32 0.70710677, %v2602_v18  ;;  %v33_v38 = vmax.f32 %v2602_v18, 0.0 }
   0x8   :  { %1422 = vmatpush.bf16.msra.mxu2 %v2367_v6  ;;  %v2373_v15 = vld [vmem:[%s3204_s2 + $0xe0] sm:$0xff]  ;;  %v2356_v21 = vld [vmem:[%s3204_s2 + $0x58] sm:$0xff]  ;;  %v66_v33 = vmul.f32 0.70710677, %v2607_v19  ;;  %v2651_v35 = vmul.f32 0.70710677, %v2623_v23 }
   0x9   :  { %1441 = vmatpush.bf16.msra.mxu3 %v2375_v7  ;;  %v2592_v16 = vld [vmem:[%s3202_s0] sm:$0xff]  ;;  %v2364_v26 = vld [vmem:[%s3204_s2 + $0x98] sm:$0xff]  ;;  %v2654_v36 = vmul.f32 0.70710677, %v2628_v24  ;;  %v34_v39 = vmax.f32 %v2607_v19, 0.0  ;;  %v2347_v44 = vld [vmem:[%s3204_s2 + $0x10] sm:$0xff] }
   0xa   :  { %1385 = vmatpush.bf16.msra.mxu0 %v2350_v8  ;;  %v2618_v22 = vld [vmem:[%s3203_s1] sm:$0xff]  ;;  %v63_v25 = vmul.f32 0.70710677, %v2592_v16  ;;  %v2372_v27 = vld [vmem:[%s3204_s2 + $0xd8] sm:$0xff]  ;;  %v31_v31 = vmax.f32 %v2592_v16, 0.0  ;;  %v2665_v41 = vadd.f32 %v2651_v35, %v64_v29  ;;  %v2355_v45 = vld [vmem:[%s3204_s2 + $0x50] sm:$0xff] }
   0xb   :  { %1404 = vmatpush.bf16.msra.mxu1 %v2358_v9  ;;  %v2640_v28 = vld [vmem:[%s3203_s1 + $0x18] sm:$0xff]  ;;  %v2648_v34 = vmul.f32 0.70710677, %v2618_v22  ;;  %v2668_v42 = vadd.f32 %v2654_v36, %v65_v30  ;;  %v2363_v47 = vld [vmem:[%s3204_s2 + $0x90] sm:$0xff]  ;;  %v40_v53 = vpack.c.bf16 %v34_v39, %v33_v38  ;;  %v2346_v54 = vld [vmem:[%s3204_s2 + $0x8] sm:$0xff] }
   0xc   :  { %1423 = vmatpush.bf16.msra.mxu2 %v2366_v10  ;;  %v2657_v37 = vmul.f32 0.70710677, %v2640_v28  ;;  %v39_v46 = vpack.c.bf16 %v32_v32, %v31_v31  ;;  %v2371_v48 = vld [vmem:[%s3204_s2 + $0xd0] sm:$0xff]  ;;  %v88_v50 = vmax.f32 %v2665_v41, 0.0  ;;  %v2354_v55 = vld [vmem:[%s3204_s2 + $0x48] sm:$0xff]  ;;  %v2704_v60 = vld [vmem:[%s3202_s0 + $0x20] sm:$0xff] }
   0xd   :  { %1442 = vmatpush.bf16.msra.mxu3 %v2374_v11  ;;  %v2662_v40 = vadd.f32 %v2648_v34, %v63_v25  ;;  %v89_v51 = vmax.f32 %v2668_v42, 0.0  ;;  %v2362_v58 = vld [vmem:[%s3204_s2 + $0x88] sm:$0xff]  ;;  %v2714_v63 = vld [vmem:[%s3202_s0 + $0x30] sm:$0xff]  ;;  %v2719_v0 = vld [vmem:[%s3202_s0 + $0x38] sm:$0xff]  ;;  %v205_v3 = vunpack.c.l.b16 %v40_v53  ;;  %v206_v5 = vunpack.c.h.b16 %v40_v53 }
   0xe   :  { %1386 = vmatpush.bf16.msra.mxu0 %v2349_v12  ;;  %v2671_v43 = vadd.f32 %v2657_v37, %v66_v33  ;;  %v2370_v59 = vld [vmem:[%s3204_s2 + $0xc8] sm:$0xff]  ;;  %v203_v61 = vunpack.c.l.b16 %v39_v46  ;;  %v2345_v1 = vld [vmem:[%s3204_s2] sm:$0xff]  ;;  %v204_v4 = vunpack.c.h.b16 %v39_v46  ;;  %v2740_v9 = vld [vmem:[%s3203_s1 + $0x30] sm:$0xff]  ;;  %v69_v25 = vmul.f32 0.70710677, %v2714_v63 }
   0xf   :  { %1405 = vmatpush.bf16.msra.mxu1 %v2357_v13  ;;  %v87_v49 = vmax.f32 %v2662_v40, 0.0  ;;  %v2709_v62 = vld [vmem:[%s3202_s0 + $0x28] sm:$0xff]  ;;  %v2353_v2 = vld [vmem:[%s3204_s2 + $0x40] sm:$0xff]  ;;  %v2764_v30 = vmul.f32 0.70710677, %v2740_v9  ;;  %v2400_v32 = vld [vmem:[%s3204_s2 + $0x1b8] sm:$0xff] }
  0x10   :  { %1424 = vmatpush.bf16.msra.mxu2 %v2365_v14  ;;  %v90_v52 = vmax.f32 %v2671_v43, 0.0  ;;  %v2730_v7 = vld [vmem:[%s3203_s1 + $0x20] sm:$0xff]  ;;  %v2735_v8 = vld [vmem:[%s3203_s1 + $0x28] sm:$0xff]  ;;  %v211_v31 = vpack.c.b16 %v205_v3, %v203_v61  ;;  %v2384_v33 = vld [vmem:[%s3204_s2 + $0x138] sm:$0xff]  ;;  %v212_v38 = vpack.c.b16 %v206_v5, %v204_v4 }
  0x11   :  { %1443 = vmatpush.bf16.msra.mxu3 %v2373_v15  ;;  %v95_v56 = vpack.c.bf16 %v88_v50, %v87_v49  ;;  %v2361_v10 = vld [vmem:[%s3204_s2 + $0x80] sm:$0xff]  ;;  %v2751_v15 = vld [vmem:[%s3203_s1 + $0x38] sm:$0xff]  ;;  %v2761_v29 = vmul.f32 0.70710677, %v2735_v8 }
  0x12   :  { %1387 = vmatpush.bf16.msra.mxu0 %v2348_v20  ;;  %v96_v57 = vpack.c.bf16 %v90_v52, %v89_v51  ;;  %v2369_v11 = vld [vmem:[%s3204_s2 + $0xc0] sm:$0xff]  ;;  %v67_v20 = vmul.f32 0.70710677, %v2704_v60  ;;  %v2392_v49 = vld [vmem:[%s3204_s2 + $0x178] sm:$0xff] }
  0x13   :  { %1406 = vmatpush.bf16.msra.mxu1 %v2356_v21  ;;  %v223_v6 = vunpack.c.l.b16 %v95_v56  ;;  %v224_v13 = vunpack.c.h.b16 %v95_v56  ;;  %v68_v21 = vmul.f32 0.70710677, %v2709_v62  ;;  %v2408_v50 = vld [vmem:[%s3204_s2 + $0x1f8] sm:$0xff] }
  0x14   :  { %1425 = vmatpush.bf16.msra.mxu2 %v2364_v26  ;;  %v225_v12 = vunpack.c.l.b16 %v96_v57  ;;  %v226_v14 = vunpack.c.h.b16 %v96_v57  ;;  %v70_v26 = vmul.f32 0.70710677, %v2719_v0 }
  0x15   :  { %1444 = vmatpush.bf16.msra.mxu3 %v2372_v27  ;;  %v2758_v27 = vmul.f32 0.70710677, %v2730_v7 }
  0x16   :  { %1388 = vmatpush.bf16.msra.mxu0 %v2347_v44  ;;  %v231_v39 = vpack.c.b16 %v225_v12, %v223_v6  ;;  %v232_v44 = vpack.c.b16 %v226_v14, %v224_v13 }
  0x17   :  { %1407 = vmatpush.bf16.msra.mxu1 %v2355_v45  ;;  %v2773_v45 = vmul.f32 0.70710677, %v2751_v15  ;;  %v2776_v46 = vadd.f32 %v2758_v27, %v67_v20 }
  0x18   :  { %1426 = vmatpush.bf16.msra.mxu2 %v2363_v47  ;;  %v2779_v47 = vadd.f32 %v2761_v29, %v68_v21 }
  0x19   :  { %1445 = vmatpush.bf16.msra.mxu3 %v2371_v48  ;;  %v2782_v48 = vadd.f32 %v2764_v30, %v69_v25  ;;  %v2791_v51 = vadd.f32 %v2773_v45, %v70_v26 }
  0x1a   :  { %1389 = vmatpush.bf16.msra.mxu0 %v2346_v54 }
  0x1b   :  { %1408 = vmatpush.bf16.msra.mxu1 %v2354_v55 }
  0x1c   :  { %1427 = vmatpush.bf16.msra.mxu2 %v2362_v58 }
  0x1d   :  { %1446 = vmatpush.bf16.msra.mxu3 %v2370_v59 }
  0x1e   :  { %1390 = vmatpush.bf16.msra.mxu0 %v2345_v1 }
  0x1f   :  { %1409 = vmatpush.bf16.msra.mxu1 %v2353_v2 }
  0x20   :  { %1428 = vmatpush.bf16.msra.mxu2 %v2361_v10 }
  0x21   :  { %1447 = vmatpush.bf16.msra.mxu3 %v2369_v11 }
  0x22   :  { %8 = vsyncpa [#allocation3], 0  ;;  %1459 = vmatpush.bf16.msrb.mxu0 %v2384_v33  ;;  %v2399_v52 = vld [vmem:[%s3204_s2 + $0x1b0] sm:$0xff]  ;;  %v35_v54 = vmax.f32 %v2704_v60, 0.0  ;;  %v36_v55 = vmax.f32 %v2709_v62, 0.0  ;;  %v37_v56 = vmax.f32 %v2714_v63, 0.0  ;;  %1410 = vmatmul.bf16.vlgmr.msra.gmra.mxu1 %v212_v38 }
  0x23   :  { %v2383_v53 = vld [vmem:[%s3204_s2 + $0x130] sm:$0xff]  ;;  %v38_v57 = vmax.f32 %v2719_v0, 0.0  ;;  %1391 = vmatmul.bf16.vlgmr.msra.gmra.mxu0 %v211_v31  ;;  %1429 = vmatmul.bf16.vlgmr.msra.gmra.mxu2 %v231_v39  ;;  %v91_v58 = vmax.f32 %v2776_v46, 0.0  ;;  %v92_v59 = vmax.f32 %v2779_v47, 0.0  ;;  %v93_v61 = vmax.f32 %v2782_v48, 0.0  ;;  %v2398_v4 = vld [vmem:[%s3204_s2 + $0x1a8] sm:$0xff] }
  0x24   :  { %1497 = vmatpush.bf16.msrb.mxu2 %v2400_v32  ;;  %1448 = vmatmul.bf16.vlgmr.msra.gmra.mxu3 %v232_v44  ;;  %v94_v1 = vmax.f32 %v2791_v51, 0.0  ;;  %v2391_v2 = vld [vmem:[%s3204_s2 + $0x170] sm:$0xff]  ;;  %v2382_v5 = vld [vmem:[%s3204_s2 + $0x128] sm:$0xff]  ;;  %v41_v6 = vpack.c.bf16 %v36_v55, %v35_v54  ;;  %v2397_v20 = vld [vmem:[%s3204_s2 + $0x1a0] sm:$0xff]  ;;  %v151_v32 = vmul.f32 -0.70710677, %v2592_v16 }
  0x25   :  { %1478 = vmatpush.bf16.msrb.mxu1 %v2392_v49  ;;  %1516 = vmatpush.bf16.msrb.mxu3 %v2408_v50  ;;  %v2407_v3 = vld [vmem:[%s3204_s2 + $0x1f0] sm:$0xff]  ;;  %v42_v10 = vpack.c.bf16 %v38_v57, %v37_v56  ;;  %v97_v11 = vpack.c.bf16 %v92_v59, %v91_v58  ;;  %v2390_v13 = vld [vmem:[%s3204_s2 + $0x168] sm:$0xff]  ;;  %v2381_v21 = vld [vmem:[%s3204_s2 + $0x120] sm:$0xff]  ;;  %v152_v38 = vmul.f32 -0.70710677, %v2597_v17  ;;  %s1821_s18 = sshll.u32 %s3205_s3, 4  ;;  %s1822_s18 = int_to_ptr.hbm [resolvable:$true] %s1821_s18 }
  0x26   :  { %1460 = vmatpush.bf16.msrb.mxu0 %v2383_v53  ;;  %v98_v12 = vpack.c.bf16 %v94_v1, %v93_v61  ;;  %v2406_v14 = vld [vmem:[%s3204_s2 + $0x1e8] sm:$0xff]  ;;  %v207_v25 = vunpack.c.l.b16 %v41_v6  ;;  %v208_v31 = vunpack.c.h.b16 %v41_v6  ;;  %v153_v39 = vmul.f32 -0.70710677, %v2602_v18  ;;  %v2389_v54 = vld [vmem:[%s3204_s2 + $0x160] sm:$0xff]  ;;  %v2396_v56 = vld [vmem:[%s3204_s2 + $0x198] sm:$0xff]  ;;  %s2519_s19 = smov 128  }
  0x27   :  { %v209_v26 = vunpack.c.l.b16 %v42_v10  ;;  %v210_v33 = vunpack.c.h.b16 %v42_v10  ;;  %v154_v44 = vmul.f32 -0.70710677, %v2607_v19  ;;  %v227_v49 = vunpack.c.l.b16 %v97_v11  ;;  %v2405_v55 = vld [vmem:[%s3204_s2 + $0x1e0] sm:$0xff]  ;;  %v2380_v57 = vld [vmem:[%s3204_s2 + $0x118] sm:$0xff]  ;;  %s2520_s20 = smov 8  }
  0x28   :  { %1498 = vmatpush.bf16.msrb.mxu2 %v2399_v52  ;;  %v229_v50 = vunpack.c.l.b16 %v98_v12  ;;  %v228_v52 = vunpack.c.h.b16 %v97_v11  ;;  %v230_v53 = vunpack.c.h.b16 %v98_v12  ;;  %v2848_v61 = vadd.f32 %v151_v32, %v2648_v34  ;;  %v2388_v6 = vld [vmem:[%s3204_s2 + $0x158] sm:$0xff]  ;;  %v2379_v12 = vld [vmem:[%s3204_s2 + $0x110] sm:$0xff] }
  0x29   :  { %1479 = vmatpush.bf16.msrb.mxu1 %v2391_v2  ;;  %1517 = vmatpush.bf16.msrb.mxu3 %v2407_v3  ;;  %v213_v58 = vpack.c.b16 %v209_v26, %v207_v25  ;;  %v214_v59 = vpack.c.b16 %v210_v33, %v208_v31  ;;  %v2851_v1 = vadd.f32 %v152_v38, %v2651_v35  ;;  %v2404_v34 = vld [vmem:[%s3204_s2 + $0x1d8] sm:$0xff]  ;;  %v119_v35 = vmax.f32 %v2618_v22, 0.0  ;;  %v2387_v25 = vld [vmem:[%s3204_s2 + $0x150] sm:$0xff]  ;;  %v2394_v33 = vld [vmem:[%s3204_s2 + $0x188] sm:$0xff] }
  0x2a   :  { %1461 = vmatpush.bf16.msrb.mxu0 %v2382_v5  ;;  %v233_v2 = vpack.c.b16 %v229_v50, %v227_v49  ;;  %v234_v3 = vpack.c.b16 %v230_v53, %v228_v52  ;;  %v2857_v5 = vadd.f32 %v154_v44, %v2657_v37  ;;  %v120_v10 = vmax.f32 %v2623_v23, 0.0  ;;  %v2395_v37 = vld [vmem:[%s3204_s2 + $0x190] sm:$0xff]  ;;  %v2378_v38 = vld [vmem:[%s3204_s2 + $0x108] sm:$0xff]  ;;  %v2393_v52 = vld [vmem:[%s3204_s2 + $0x180] sm:$0xff] }
  0x2b   :  { %v122_v11 = vmax.f32 %v2640_v28, 0.0  ;;  %v2403_v26 = vld [vmem:[%s3204_s2 + $0x1d0] sm:$0xff]  ;;  %v2402_v50 = vld [vmem:[%s3204_s2 + $0x1c8] sm:$0xff]  ;;  %v2377_v53 = vld [vmem:[%s3204_s2 + $0x100] sm:$0xff] }
  0x2c   :  { %1499 = vmatpush.bf16.msrb.mxu2 %v2398_v4  ;;  %v2854_v4 = vadd.f32 %v153_v39, %v2654_v36  ;;  %v121_v36 = vmax.f32 %v2628_v24, 0.0  ;;  %v127_v31 = vpack.c.bf16 %v120_v10, %v119_v35  ;;  %v2386_v39 = vld [vmem:[%s3204_s2 + $0x148] sm:$0xff]  ;;  %v43_v35 = vsub.f32 0.0, %v2592_v16  ;;  %v2401_v16 = vld [vmem:[%s3204_s2 + $0x1c0] sm:$0xff] }
  0x2d   :  { %1480 = vmatpush.bf16.msrb.mxu1 %v2390_v13  ;;  %1518 = vmatpush.bf16.msrb.mxu3 %v2406_v14  ;;  %v167_v13 = vmax.f32 %v2848_v61, 0.0  ;;  %v168_v14 = vmax.f32 %v2851_v1, 0.0  ;;  %v44_v10 = vsub.f32 0.0, %v2597_v17 }
  0x2e   :  { %1462 = vmatpush.bf16.msrb.mxu0 %v2381_v21  ;;  %v170_v21 = vmax.f32 %v2857_v5, 0.0  ;;  %v128_v32 = vpack.c.bf16 %v122_v11, %v121_v36  ;;  %v45_v36 = vsub.f32 0.0, %v2602_v18  ;;  %v46_v11 = vsub.f32 0.0, %v2607_v19 }
  0x2f   :  { %v175_v44 = vpack.c.bf16 %v168_v14, %v167_v13  ;;  %v52_v17 = vmax.f32 %v44_v10, 0.0 }
  0x30   :  { %1500 = vmatpush.bf16.msrb.mxu2 %v2397_v20  ;;  %v169_v20 = vmax.f32 %v2854_v4, 0.0  ;;  %v54_v18 = vmax.f32 %v46_v11, 0.0 }
  0x31   :  { %1481 = vmatpush.bf16.msrb.mxu1 %v2389_v54  ;;  %1519 = vmatpush.bf16.msrb.mxu3 %v2405_v55  ;;  %v243_v54 = vunpack.c.l.b16 %v127_v31  ;;  %v245_v55 = vunpack.c.l.b16 %v128_v32  ;;  %v264_v13 = vunpack.c.h.b16 %v175_v44 }
  0x32   :  { %1463 = vmatpush.bf16.msrb.mxu0 %v2380_v57  ;;  %1415 = vmatmul.bf16.gmra.mxu1 %v214_v59  ;;  %v176_v49 = vpack.c.bf16 %v170_v21, %v169_v20  ;;  %v155_v57 = vmul.f32 -0.70710677, %v2704_v60  ;;  %v156_v59 = vmul.f32 -0.70710677, %v2709_v62  ;;  %v2385_v20 = vld [vmem:[%s3204_s2 + $0x140] sm:$0xff]  ;;  %v51_v21 = vmax.f32 %v43_v35, 0.0 }
  0x33   :  { %1396 = vmatmul.bf16.gmra.mxu0 %v213_v58  ;;  %1434 = vmatmul.bf16.gmra.mxu2 %v233_v2  ;;  %v246_v58 = vunpack.c.h.b16 %v128_v32  ;;  %v157_v2 = vmul.f32 -0.70710677, %v2714_v63  ;;  %v251_v19 = vpack.c.b16 %v245_v55, %v243_v54  ;;  %v2440_v32 = vld [vmem:[%s3204_s2 + $0x2f8] sm:$0xff] }
  0x34   :  { %1501 = vmatpush.bf16.msrb.mxu2 %v2396_v56  ;;  %1453 = vmatmul.bf16.gmra.mxu3 %v234_v3  ;;  %v244_v56 = vunpack.c.h.b16 %v127_v31  ;;  %v158_v3 = vmul.f32 -0.70710677, %v2719_v0  ;;  %v266_v14 = vunpack.c.h.b16 %v176_v49  ;;  %v2424_v31 = vld [vmem:[%s3204_s2 + $0x278] sm:$0xff] }
  0x35   :  { %1482 = vmatpush.bf16.msrb.mxu1 %v2388_v6  ;;  %1520 = vmatpush.bf16.msrb.mxu3 %v2404_v34  ;;  %v2432_v6 = vld [vmem:[%s3204_s2 + $0x2b8] sm:$0xff] }
  0x36   :  { %1464 = vmatpush.bf16.msrb.mxu0 %v2379_v12  ;;  %v2416_v34 = vld [vmem:[%s3204_s2 + $0x238] sm:$0xff]  ;;  %v265_v12 = vunpack.c.l.b16 %v176_v49  ;;  %v2942_v54 = vadd.f32 %v158_v3, %v2773_v45  ;;  %v2439_v45 = vld [vmem:[%s3204_s2 + $0x2f0] sm:$0xff]  ;;  %v126_v3 = vmax.f32 %v2751_v15, 0.0 }
  0x38   :  { %1502 = vmatpush.bf16.msrb.mxu2 %v2395_v37  ;;  %v263_v37 = vunpack.c.l.b16 %v175_v44  ;;  %v59_v44 = vpack.c.bf16 %v52_v17, %v51_v21  ;;  %v2429_v21 = vld [vmem:[%s3204_s2 + $0x2a0] sm:$0xff] }
  0x39   :  { %1483 = vmatpush.bf16.msrb.mxu1 %v2387_v25  ;;  %1521 = vmatpush.bf16.msrb.mxu3 %v2403_v26  ;;  %v53_v25 = vmax.f32 %v45_v36, 0.0  ;;  %v252_v26 = vpack.c.b16 %v246_v58, %v244_v56  ;;  %v123_v58 = vmax.f32 %v2730_v7, 0.0 }
  0x3a   :  { %1465 = vmatpush.bf16.msrb.mxu0 %v2378_v38  ;;  %v2431_v38 = vld [vmem:[%s3204_s2 + $0x2b0] sm:$0xff]  ;;  %v283_v55 = vunpack.c.l.b16 %v59_v44 }
  0x3b   :  { %v60_v49 = vpack.c.bf16 %v54_v18, %v53_v25  ;;  %v2413_v18 = vld [vmem:[%s3204_s2 + $0x220] sm:$0xff] }
  0x3c   :  { %1503 = vmatpush.bf16.msrb.mxu2 %v2394_v33  ;;  %v2930_v33 = vadd.f32 %v155_v57, %v2758_v27  ;;  %v2415_v27 = vld [vmem:[%s3204_s2 + $0x230] sm:$0xff] }
  0x3d   :  { %1484 = vmatpush.bf16.msrb.mxu1 %v2386_v39  ;;  %1522 = vmatpush.bf16.msrb.mxu3 %v2402_v50  ;;  %v2936_v39 = vadd.f32 %v156_v59, %v2761_v29  ;;  %v271_v50 = vpack.c.b16 %v265_v12, %v263_v37  ;;  %v285_v56 = vunpack.c.l.b16 %v60_v49  ;;  %v284_v29 = vunpack.c.h.b16 %v59_v44  ;;  %v2414_v12 = vld [vmem:[%s3204_s2 + $0x228] sm:$0xff] }
  0x3e   :  { %1466 = vmatpush.bf16.msrb.mxu0 %v2377_v53  ;;  %v2939_v53 = vadd.f32 %v157_v2, %v2764_v30  ;;  %v286_v57 = vunpack.c.h.b16 %v60_v49  ;;  %v2423_v30 = vld [vmem:[%s3204_s2 + $0x270] sm:$0xff]  ;;  %v124_v59 = vmax.f32 %v2735_v8, 0.0  ;;  %v125_v2 = vmax.f32 %v2740_v9, 0.0  ;;  %v2428_v49 = vld [vmem:[%s3204_s2 + $0x298] sm:$0xff] }
  0x3f   :  { %v171_v10 = vmax.f32 %v2930_v33, 0.0  ;;  %v172_v36 = vmax.f32 %v2936_v39, 0.0  ;;  %v174_v37 = vmax.f32 %v2942_v54, 0.0 }
  0x40   :  { %1504 = vmatpush.bf16.msrb.mxu2 %v2393_v52  ;;  %v272_v52 = vpack.c.b16 %v266_v14, %v264_v13  ;;  %v2962_v35 = vpack.c.b16 %v286_v57, %v284_v29  ;;  %v173_v11 = vmax.f32 %v2939_v53, 0.0  ;;  %v2422_v13 = vld [vmem:[%s3204_s2 + $0x268] sm:$0xff] }
  0x41   :  { %1485 = vmatpush.bf16.msrb.mxu1 %v2385_v20  ;;  %1523 = vmatpush.bf16.msrb.mxu3 %v2401_v16  ;;  %v2438_v14 = vld [vmem:[%s3204_s2 + $0x2e8] sm:$0xff]  ;;  %v129_v20 = vpack.c.bf16 %v124_v59, %v123_v58  ;;  %v130_v16 = vpack.c.bf16 %v126_v3, %v125_v2  ;;  %v177_v17 = vpack.c.bf16 %v172_v36, %v171_v10  ;;  %v102_v10 = vsub.f32 0.0, %v2671_v43 }
  0x42   :  { %1535 = vmatpush.bf16.msra.mxu0 %v2416_v34  ;;  %v2960_v34 = vpack.c.b16 %v285_v56, %v283_v55  ;;  %v178_v25 = vpack.c.bf16 %v174_v37, %v173_v11  ;;  %v50_v55 = vsub.f32 0.0, %v2719_v0  ;;  %v2420_v0 = vld [vmem:[%s3204_s2 + $0x258] sm:$0xff] }
  0x43   :  { %1467 = vmatmul.bf16.vlgmr.msrb.gmra.mxu0 %v251_v19  ;;  %1505 = vmatmul.bf16.vlgmr.msrb.gmra.mxu2 %v271_v50  ;;  %v2421_v19 = vld [vmem:[%s3204_s2 + $0x260] sm:$0xff]  ;;  %v250_v44 = vunpack.c.h.b16 %v130_v16  ;;  %v47_v50 = vsub.f32 0.0, %v2704_v60  ;;  %v267_v56 = vunpack.c.l.b16 %v177_v17  ;;  %v268_v57 = vunpack.c.h.b16 %v177_v17 }
  0x44   :  { %1573 = vmatpush.bf16.msra.mxu2 %v2432_v6  ;;  %v2430_v6 = vld [vmem:[%s3204_s2 + $0x2a8] sm:$0xff]  ;;  %1486 = vmatmul.bf16.vlgmr.msrb.gmra.mxu1 %v252_v26  ;;  %v2437_v26 = vld [vmem:[%s3204_s2 + $0x2e0] sm:$0xff]  ;;  %v269_v29 = vunpack.c.l.b16 %v178_v25  ;;  %v58_v3 = vmax.f32 %v50_v55, 0.0  ;;  %v99_v60 = vsub.f32 0.0, %v2662_v40  ;;  %v2427_v40 = vld [vmem:[%s3204_s2 + $0x290] sm:$0xff] }
  0x45   :  { %1554 = vmatpush.bf16.msra.mxu1 %v2424_v31  ;;  %1592 = vmatpush.bf16.msra.mxu3 %v2440_v32  ;;  %v247_v31 = vunpack.c.l.b16 %v129_v20  ;;  %v249_v32 = vunpack.c.l.b16 %v130_v16  ;;  %v55_v58 = vmax.f32 %v47_v50, 0.0  ;;  %v2434_v50 = vld [vmem:[%s3204_s2 + $0x2c8] sm:$0xff] }
  0x46   :  { %1524 = vmatmul.bf16.vlgmr.msrb.gmra.mxu3 %v272_v52  ;;  %1536 = vmatpush.bf16.msra.mxu0 %v2415_v27  ;;  %v48_v52 = vsub.f32 0.0, %v2709_v62  ;;  %v49_v27 = vsub.f32 0.0, %v2714_v63  ;;  %v100_v62 = vsub.f32 0.0, %v2665_v41  ;;  %v101_v63 = vsub.f32 0.0, %v2668_v42 }
  0x47   :  { %v253_v36 = vpack.c.b16 %v249_v32, %v247_v31  ;;  %v273_v37 = vpack.c.b16 %v269_v29, %v267_v56  ;;  %v2426_v31 = vld [vmem:[%s3204_s2 + $0x288] sm:$0xff]  ;;  %v2464_v56 = vld [vmem:[%s3204_s2 + $0x3b8] sm:$0xff]  ;;  %v2409_v29 = vld [vmem:[%s3204_s2 + $0x200] sm:$0xff] }
  0x48   :  { %1574 = vmatpush.bf16.msra.mxu2 %v2431_v38  ;;  %v248_v38 = vunpack.c.h.b16 %v129_v20  ;;  %v56_v59 = vmax.f32 %v48_v52, 0.0  ;;  %v57_v2 = vmax.f32 %v49_v27, 0.0  ;;  %v108_v17 = vmax.f32 %v100_v62, 0.0  ;;  %v2425_v52 = vld [vmem:[%s3204_s2 + $0x280] sm:$0xff] }
  0x49   :  { %1555 = vmatpush.bf16.msra.mxu1 %v2423_v30  ;;  %1593 = vmatpush.bf16.msra.mxu3 %v2439_v45  ;;  %v270_v30 = vunpack.c.h.b16 %v178_v25  ;;  %v2412_v45 = vld [vmem:[%s3204_s2 + $0x218] sm:$0xff]  ;;  %v2419_v25 = vld [vmem:[%s3204_s2 + $0x250] sm:$0xff] }
  0x4a   :  { %1537 = vmatpush.bf16.msra.mxu0 %v2414_v12  ;;  %v61_v41 = vpack.c.bf16 %v56_v59, %v55_v58  ;;  %v62_v42 = vpack.c.bf16 %v58_v3, %v57_v2  ;;  %v254_v11 = vpack.c.b16 %v250_v44, %v248_v38  ;;  %v2410_v44 = vld [vmem:[%s3204_s2 + $0x208] sm:$0xff]  ;;  %v2448_v59 = vld [vmem:[%s3204_s2 + $0x338] sm:$0xff] }
  0x4b   :  { %v274_v12 = vpack.c.b16 %v270_v30, %v268_v57  ;;  %v2417_v57 = vld [vmem:[%s3204_s2 + $0x240] sm:$0xff]  ;;  %v2456_v2 = vld [vmem:[%s3204_s2 + $0x378] sm:$0xff] }
  0x4c   :  { %1575 = vmatpush.bf16.msra.mxu2 %v2430_v6  ;;  %v2436_v6 = vld [vmem:[%s3204_s2 + $0x2d8] sm:$0xff]  ;;  %v289_v20 = vunpack.c.l.b16 %v62_v42  ;;  %v288_v16 = vunpack.c.h.b16 %v61_v41  ;;  %v290_v43 = vunpack.c.h.b16 %v62_v42  ;;  %v2433_v30 = vld [vmem:[%s3204_s2 + $0x2c0] sm:$0xff] }
  0x4d   :  { %1556 = vmatpush.bf16.msra.mxu1 %v2422_v13  ;;  %1594 = vmatpush.bf16.msra.mxu3 %v2438_v14  ;;  %v2411_v13 = vld [vmem:[%s3204_s2 + $0x210] sm:$0xff]  ;;  %v287_v14 = vunpack.c.l.b16 %v61_v41  ;;  %v2472_v3 = vld [vmem:[%s3204_s2 + $0x3f8] sm:$0xff]  ;;  %v106_v41 = vsub.f32 0.0, %v2791_v51 }
  0x4e   :  { %1538 = vmatpush.bf16.msra.mxu0 %v2413_v18  ;;  %v2435_v18 = vld [vmem:[%s3204_s2 + $0x2d0] sm:$0xff]  ;;  %v3026_v38 = vpack.c.b16 %v290_v43, %v288_v16 }
  0x4f   :  { %v3024_v32 = vpack.c.b16 %v289_v20, %v287_v14  ;;  %v2446_v14 = vld [vmem:[%s3204_s2 + $0x328] sm:$0xff]  ;;  %v2453_v20 = vld [vmem:[%s3204_s2 + $0x360] sm:$0xff] }
  0x50   :  { %1576 = vmatpush.bf16.msra.mxu2 %v2429_v21  ;;  %v107_v21 = vmax.f32 %v99_v60, 0.0  ;;  %v2463_v60 = vld [vmem:[%s3204_s2 + $0x3b0] sm:$0xff] }
  0x51   :  { %1557 = vmatpush.bf16.msra.mxu1 %v2421_v19  ;;  %1595 = vmatpush.bf16.msra.mxu3 %v2437_v26  ;;  %v109_v19 = vmax.f32 %v101_v63, 0.0  ;;  %v110_v26 = vmax.f32 %v102_v10, 0.0  ;;  %v103_v10 = vsub.f32 0.0, %v2776_v46  ;;  %v2454_v46 = vld [vmem:[%s3204_s2 + $0x368] sm:$0xff] }
  0x52   :  { %1539 = vmatpush.bf16.msra.mxu0 %v2412_v45  ;;  %v115_v27 = vpack.c.bf16 %v108_v17, %v107_v21  ;;  %v2445_v21 = vld [vmem:[%s3204_s2 + $0x320] sm:$0xff] }
  0x53   :  { %1472 = vmatmul.bf16.gmra.mxu0 %v253_v36  ;;  %1510 = vmatmul.bf16.gmra.mxu2 %v273_v37  ;;  %v116_v55 = vpack.c.bf16 %v110_v26, %v109_v19  ;;  %v104_v36 = vsub.f32 0.0, %v2779_v47  ;;  %v2471_v37 = vld [vmem:[%s3204_s2 + $0x3f0] sm:$0xff]  ;;  %v111_v47 = vmax.f32 %v103_v10, 0.0  ;;  %v2469_v17 = vld [vmem:[%s3204_s2 + $0x3e0] sm:$0xff] }
  0x54   :  { %1577 = vmatpush.bf16.msra.mxu2 %v2428_v49  ;;  %1491 = vmatmul.bf16.gmra.mxu1 %v254_v11  ;;  %v2418_v49 = vld [vmem:[%s3204_s2 + $0x248] sm:$0xff]  ;;  %v303_v45 = vunpack.c.l.b16 %v115_v27  ;;  %v304_v62 = vunpack.c.h.b16 %v115_v27  ;;  %v2447_v11 = vld [vmem:[%s3204_s2 + $0x330] sm:$0xff]  ;;  %v133_v27 = vsub.f32 0.0, %v2628_v24  ;;  %v182_v24 = vsub.f32 0.0, %v2857_v5 }
  0x55   :  { %1558 = vmatpush.bf16.msra.mxu1 %v2420_v0  ;;  %1596 = vmatpush.bf16.msra.mxu3 %v2436_v6  ;;  %v305_v58 = vunpack.c.l.b16 %v116_v55  ;;  %v306_v63 = vunpack.c.h.b16 %v116_v55  ;;  %v2455_v6 = vld [vmem:[%s3204_s2 + $0x370] sm:$0xff]  ;;  %v134_v55 = vsub.f32 0.0, %v2640_v28  ;;  %v2458_v5 = vld [vmem:[%s3204_s2 + $0x388] sm:$0xff] }
  0x56   :  { %1529 = vmatmul.bf16.gmra.mxu3 %v274_v12  ;;  %1540 = vmatpush.bf16.msra.mxu0 %v2411_v13  ;;  %v2462_v12 = vld [vmem:[%s3204_s2 + $0x3a8] sm:$0xff]  ;;  %v114_v13 = vmax.f32 %v106_v41, 0.0  ;;  %v2451_v28 = vld [vmem:[%s3204_s2 + $0x350] sm:$0xff] }
  0x57   :  { %v311_v0 = vpack.c.b16 %v305_v58, %v303_v45  ;;  %v312_v42 = vpack.c.b16 %v306_v63, %v304_v62  ;;  %v2443_v58 = vld [vmem:[%s3204_s2 + $0x310] sm:$0xff]  ;;  %v190_v63 = vmax.f32 %v182_v24, 0.0 }
  0x58   :  { %1578 = vmatpush.bf16.msra.mxu2 %v2427_v40  ;;  %v105_v40 = vsub.f32 0.0, %v2782_v48  ;;  %v112_v48 = vmax.f32 %v104_v36, 0.0 }
  0x59   :  { %1559 = vmatpush.bf16.msra.mxu1 %v2419_v25  ;;  %1597 = vmatpush.bf16.msra.mxu3 %v2435_v18  ;;  %v2460_v25 = vld [vmem:[%s3204_s2 + $0x398] sm:$0xff] }
  0x5a   :  { %1541 = vmatpush.bf16.msra.mxu0 %v2410_v44  ;;  %v113_v51 = vmax.f32 %v105_v40, 0.0  ;;  %v117_v16 = vpack.c.bf16 %v112_v48, %v111_v47  ;;  %v2452_v18 = vld [vmem:[%s3204_s2 + $0x358] sm:$0xff]  ;;  %v2457_v40 = vld [vmem:[%s3204_s2 + $0x380] sm:$0xff] }
  0x5c   :  { %1579 = vmatpush.bf16.msra.mxu2 %v2426_v31  ;;  %v118_v43 = vpack.c.bf16 %v114_v13, %v113_v51  ;;  %v307_v19 = vunpack.c.l.b16 %v117_v16  ;;  %v308_v31 = vunpack.c.h.b16 %v117_v16 }
  0x5d   :  { %1560 = vmatpush.bf16.msra.mxu1 %v2418_v49  ;;  %1598 = vmatpush.bf16.msra.mxu3 %v2434_v50  ;;  %v2444_v49 = vld [vmem:[%s3204_s2 + $0x318] sm:$0xff]  ;;  %v131_v50 = vsub.f32 0.0, %v2618_v22  ;;  %v180_v22 = vsub.f32 0.0, %v2851_v1  ;;  %v142_v1 = vmax.f32 %v134_v55, 0.0 }
  0x5e   :  { %1542 = vmatpush.bf16.msra.mxu0 %v2409_v29  ;;  %v309_v26 = vunpack.c.l.b16 %v118_v43  ;;  %v310_v44 = vunpack.c.h.b16 %v118_v43  ;;  %v2459_v29 = vld [vmem:[%s3204_s2 + $0x390] sm:$0xff]  ;;  %v135_v43 = vsub.f32 0.0, %v2730_v7 }
  0x60   :  { %1580 = vmatpush.bf16.msra.mxu2 %v2425_v52  ;;  %v132_v52 = vsub.f32 0.0, %v2623_v23  ;;  %v181_v23 = vsub.f32 0.0, %v2854_v4  ;;  %v314_v45 = vpack.c.b16 %v310_v44, %v308_v31  ;;  %v2467_v4 = vld [vmem:[%s3204_s2 + $0x3d0] sm:$0xff]  ;;  %v186_v31 = vsub.f32 0.0, %v2942_v54 }
  0x61   :  { %1561 = vmatpush.bf16.msra.mxu1 %v2417_v57  ;;  %1599 = vmatpush.bf16.msra.mxu3 %v2433_v30  ;;  %v179_v57 = vsub.f32 0.0, %v2848_v61  ;;  %v313_v30 = vpack.c.b16 %v309_v26, %v307_v19  ;;  %v184_v19 = vsub.f32 0.0, %v2936_v39  ;;  %v185_v26 = vsub.f32 0.0, %v2939_v53 }
  0x62   :  { %1611 = vmatpush.bf16.msrb.mxu0 %v2448_v59  ;;  %v139_v59 = vmax.f32 %v131_v50, 0.0  ;;  %v140_v61 = vmax.f32 %v132_v52, 0.0  ;;  %v189_v62 = vmax.f32 %v181_v23, 0.0 }
  0x63   :  { %1543 = vmatmul.bf16.vlgmr.msra.gmra.mxu0 %v2960_v34  ;;  %1581 = vmatmul.bf16.vlgmr.msra.gmra.mxu2 %v311_v0  ;;  %v2470_v34 = vld [vmem:[%s3204_s2 + $0x3e8] sm:$0xff] }
  0x64   :  { %1649 = vmatpush.bf16.msrb.mxu2 %v2464_v56  ;;  %1562 = vmatmul.bf16.vlgmr.msra.gmra.mxu1 %v2962_v35  ;;  %v2461_v35 = vld [vmem:[%s3204_s2 + $0x3a0] sm:$0xff]  ;;  %v2468_v56 = vld [vmem:[%s3204_s2 + $0x3d8] sm:$0xff]  ;;  %v2450_v0 = vld [vmem:[%s3204_s2 + $0x348] sm:$0xff]  ;;  %v147_v10 = vpack.c.bf16 %v140_v61, %v139_v59  ;;  %v196_v41 = vpack.c.bf16 %v190_v63, %v189_v62 }
  0x65   :  { %1630 = vmatpush.bf16.msrb.mxu1 %v2456_v2  ;;  %1668 = vmatpush.bf16.msrb.mxu3 %v2472_v3  ;;  %v141_v2 = vmax.f32 %v133_v27, 0.0  ;;  %v187_v3 = vmax.f32 %v179_v57, 0.0  ;;  %v193_v27 = vmax.f32 %v185_v26, 0.0 }
  0x66   :  { %1600 = vmatmul.bf16.vlgmr.msra.gmra.mxu3 %v312_v42  ;;  %1612 = vmatpush.bf16.msrb.mxu0 %v2447_v11  ;;  %v2449_v42 = vld [vmem:[%s3204_s2 + $0x340] sm:$0xff]  ;;  %v324_v47 = vunpack.c.h.b16 %v147_v10  ;;  %v345_v13 = vunpack.c.l.b16 %v196_v41 }
  0x67   :  { %v148_v36 = vpack.c.bf16 %v142_v1, %v141_v2  ;;  %v2441_v11 = vld [vmem:[%s3204_s2 + $0x300] sm:$0xff] }
  0x68   :  { %1650 = vmatpush.bf16.msrb.mxu2 %v2463_v60  ;;  %v188_v60 = vmax.f32 %v180_v22, 0.0 }
  0x69   :  { %1631 = vmatpush.bf16.msrb.mxu1 %v2455_v6  ;;  %1669 = vmatpush.bf16.msrb.mxu3 %v2471_v37  ;;  %v2442_v6 = vld [vmem:[%s3204_s2 + $0x308] sm:$0xff]  ;;  %v323_v37 = vunpack.c.l.b16 %v147_v10  ;;  %v326_v48 = vunpack.c.h.b16 %v148_v36 }
  0x6a   :  { %1613 = vmatpush.bf16.msrb.mxu0 %v2446_v14 }
  0x6c   :  { %1651 = vmatpush.bf16.msrb.mxu2 %v2462_v12  ;;  %v325_v12 = vunpack.c.l.b16 %v148_v36 }
  0x6d   :  { %1632 = vmatpush.bf16.msrb.mxu1 %v2454_v46  ;;  %1670 = vmatpush.bf16.msrb.mxu3 %v2470_v34  ;;  %v2465_v46 = vld [vmem:[%s3204_s2 + $0x3c0] sm:$0xff]  ;;  %v346_v34 = vunpack.c.h.b16 %v196_v41 }
  0x6e   :  { %1614 = vmatpush.bf16.msrb.mxu0 %v2445_v21  ;;  %v136_v21 = vsub.f32 0.0, %v2735_v8 }
  0x70   :  { %1652 = vmatpush.bf16.msrb.mxu2 %v2461_v35  ;;  %v331_v35 = vpack.c.b16 %v325_v12, %v323_v37  ;;  %v144_v50 = vmax.f32 %v136_v21, 0.0 }
  0x71   :  { %1633 = vmatpush.bf16.msrb.mxu1 %v2453_v20  ;;  %1671 = vmatpush.bf16.msrb.mxu3 %v2469_v17  ;;  %v332_v20 = vpack.c.b16 %v326_v48, %v324_v47  ;;  %v137_v17 = vsub.f32 0.0, %v2740_v9  ;;  %v192_v9 = vmax.f32 %v184_v19, 0.0 }
  0x72   :  { %1615 = vmatpush.bf16.msrb.mxu0 %v2444_v49  ;;  %v143_v49 = vmax.f32 %v135_v43, 0.0 }
  0x73   :  { %1548 = vmatmul.bf16.gmra.mxu0 %v3024_v32  ;;  %1586 = vmatmul.bf16.gmra.mxu2 %v313_v30  ;;  %v2466_v32 = vld [vmem:[%s3204_s2 + $0x3c8] sm:$0xff]  ;;  %v145_v52 = vmax.f32 %v137_v17, 0.0  ;;  %s2518_s2 = smov [#allocation2]  }
  0x74   :  { %1653 = vmatpush.bf16.msrb.mxu2 %v2460_v25  ;;  %1567 = vmatmul.bf16.gmra.mxu1 %v3026_v38  ;;  %v195_v38 = vpack.c.bf16 %v188_v60, %v187_v3  ;;  %v138_v25 = vsub.f32 0.0, %v2751_v15  ;;  %v194_v15 = vmax.f32 %v186_v31, 0.0  ;;  %s1819_s16 = sshll.u32 %s2518_s2, 4  ;;  %s1820_s16 = int_to_ptr.vmem [resolvable:$true] %s1819_s16 }
  0x75   :  { %1634 = vmatpush.bf16.msrb.mxu1 %v2452_v18  ;;  %1672 = vmatpush.bf16.msrb.mxu3 %v2468_v56  ;;  %v183_v18 = vsub.f32 0.0, %v2930_v33  ;;  %v149_v33 = vpack.c.bf16 %v144_v50, %v143_v49 }
  0x76   :  { %1605 = vmatmul.bf16.gmra.mxu3 %v314_v45  ;;  %1616 = vmatpush.bf16.msrb.mxu0 %v2443_v58  ;;  %v343_v51 = vunpack.c.l.b16 %v195_v38  ;;  %v344_v14 = vunpack.c.h.b16 %v195_v38  ;;  %v146_v7 = vmax.f32 %v138_v25, 0.0  ;;  %v198_v56 = vpack.c.bf16 %v194_v15, %v193_v27 }
  0x77   :  { %v191_v8 = vmax.f32 %v183_v18, 0.0  ;;  %v327_v53 = vunpack.c.l.b16 %v149_v33  ;;  %v328_v54 = vunpack.c.h.b16 %v149_v33 }
  0x78   :  { %1654 = vmatpush.bf16.msrb.mxu2 %v2459_v29  ;;  %v351_v16 = vpack.c.b16 %v345_v13, %v343_v51  ;;  %v352_v44 = vpack.c.b16 %v346_v34, %v344_v14  ;;  %v150_v55 = vpack.c.bf16 %v146_v7, %v145_v52  ;;  %v349_v23 = vunpack.c.l.b16 %v198_v56 }
  0x79   :  { %1635 = vmatpush.bf16.msrb.mxu1 %v2451_v28  ;;  %1673 = vmatpush.bf16.msrb.mxu3 %v2467_v4  ;;  %v197_v39 = vpack.c.bf16 %v192_v9, %v191_v8  ;;  %v350_v28 = vunpack.c.h.b16 %v198_v56 }
  0x7a   :  { %1617 = vmatpush.bf16.msrb.mxu0 %v2442_v6  ;;  %v329_v29 = vunpack.c.l.b16 %v150_v55  ;;  %v330_v57 = vunpack.c.h.b16 %v150_v55 }
  0x7b   :  { %v347_v22 = vunpack.c.l.b16 %v197_v39  ;;  %v348_v24 = vunpack.c.h.b16 %v197_v39 }
  0x7c   :  { %1655 = vmatpush.bf16.msrb.mxu2 %v2458_v5  ;;  %v333_v30 = vpack.c.b16 %v329_v29, %v327_v53  ;;  %v334_v45 = vpack.c.b16 %v330_v57, %v328_v54 }
  0x7d   :  { %1636 = vmatpush.bf16.msrb.mxu1 %v2450_v0  ;;  %1674 = vmatpush.bf16.msrb.mxu3 %v2466_v32  ;;  %v353_v58 = vpack.c.b16 %v349_v23, %v347_v22  ;;  %v354_v59 = vpack.c.b16 %v350_v28, %v348_v24 }
  0x7e   :  { %1618 = vmatpush.bf16.msrb.mxu0 %v2441_v11 }
  0x80   :  { %1656 = vmatpush.bf16.msrb.mxu2 %v2457_v40 }
  0x81   :  { %1637 = vmatpush.bf16.msrb.mxu1 %v2449_v42  ;;  %1675 = vmatpush.bf16.msrb.mxu3 %v2465_v46 }
  0x83   :  { %1619 = vmatmul.bf16.vlgmr.msrb.gmra.mxu0 %v331_v35  ;;  %1657 = vmatmul.bf16.vlgmr.msrb.gmra.mxu2 %v351_v16 }
  0x84   :  { %1638 = vmatmul.bf16.vlgmr.msrb.gmra.mxu1 %v332_v20 }
  0x86   :  { %1676 = vmatmul.bf16.vlgmr.msrb.gmra.mxu3 %v352_v44 }
  0x93   :  { %1624 = vmatmul.bf16.gmra.mxu0 %v333_v30  ;;  %1662 = vmatmul.bf16.gmra.mxu2 %v353_v58 }
  0x94   :  { %1643 = vmatmul.bf16.gmra.mxu1 %v334_v45 }
  0x96   :  { %1681 = vmatmul.bf16.gmra.mxu3 %v354_v59 }
  0x9f   :  { %v1411_v2 = vpop.f32.mrf.mxu1 }
  0xa0   :  { %v1392_v61 = vpop.f32.mrf.mxu0 }
  0xa1   :  { %v1412_v1 = vadd.f32 %v1411_v2, %v1392_v61 }
  0xa6   :  { %v1430_v4 = vpop.f32.mrf.mxu2 }
  0xa7   :  { %v1449_v5 = vpop.f32.mrf.mxu3  ;;  %v1431_v3 = vadd.f32 %v1430_v4, %v1412_v1  ;;  %v1413_v62 = vpop.f32.mrf.mxu1 }
  0xa8   :  { %v1394_v60 = vpop.f32.mrf.mxu0 }
  0xa9   :  { %v1414_v63 = vadd.f32 %v1413_v62, %v1394_v60  ;;  %v1450_v0 = vadd.f32 %v1449_v5, %v1431_v3 }
  0xae   :  { %v1432_v6 = vpop.f32.mrf.mxu2 }
  0xaf   :  { %v1451_v10 = vpop.f32.mrf.mxu3  ;;  %v1433_v36 = vadd.f32 %v1432_v6, %v1414_v63  ;;  %v1416_v40 = vpop.f32.mrf.mxu1 }
  0xb0   :  { %v1397_v32 = vpop.f32.mrf.mxu0 }
  0xb1   :  { %v1417_v38 = vadd.f32 %v1416_v40, %v1397_v32  ;;  %v1452_v41 = vadd.f32 %v1451_v10, %v1433_v36 }
  0xb6   :  { %v1435_v42 = vpop.f32.mrf.mxu2 }
  0xb7   :  { %v1454_v11 = vpop.f32.mrf.mxu3  ;;  %v1436_v37 = vadd.f32 %v1435_v42, %v1417_v38  ;;  %v1418_v46 = vpop.f32.mrf.mxu1 }
  0xb8   :  { %v1399_v12 = vpop.f32.mrf.mxu0 }
  0xb9   :  { %v1419_v47 = vadd.f32 %v1418_v46, %v1399_v12  ;;  %v1455_v48 = vadd.f32 %v1454_v11, %v1436_v37 }
  0xbe   :  { %v1437_v51 = vpop.f32.mrf.mxu2 }
  0xbf   :  { %v1456_v13 = vpop.f32.mrf.mxu3  ;;  %v1438_v14 = vadd.f32 %v1437_v51, %v1419_v47 }
  0xc0   :  { %v1468_v34 = vpop.f32.mrf.mxu0 }
  0xc1   :  { %v1487_v35 = vpop.f32.mrf.mxu1  ;;  %v1457_v20 = vadd.f32 %v1456_v13, %v1438_v14  ;;  %v1469_v39 = vadd.f32 %v1468_v34, %v1450_v0 }
  0xc3   :  { %v1488_v56 = vadd.f32 %v1487_v35, %v1469_v39 }
  0xc6   :  { %v1506_v16 = vpop.f32.mrf.mxu2 }
  0xc7   :  { %v1507_v29 = vadd.f32 %v1506_v16, %v1488_v56 }
  0xc8   :  { %v1470_v21 = vpop.f32.mrf.mxu0 }
  0xc9   :  { %v1525_v43 = vpop.f32.mrf.mxu3  ;;  %v1489_v17 = vpop.f32.mrf.mxu1  ;;  %v1471_v23 = vadd.f32 %v1470_v21, %v1452_v41 }
  0xca   :  { %v1526_v24 = vadd.f32 %v1525_v43, %v1507_v29 }
  0xcb   :  { %v1490_v28 = vadd.f32 %v1489_v17, %v1471_v23 }
  0xce   :  { %v1508_v25 = vpop.f32.mrf.mxu2 }
  0xcf   :  { %v1509_v58 = vadd.f32 %v1508_v25, %v1490_v28 }
  0xd0   :  { %v1473_v19 = vpop.f32.mrf.mxu0 }
  0xd1   :  { %v1527_v18 = vpop.f32.mrf.mxu3  ;;  %v1492_v26 = vpop.f32.mrf.mxu1  ;;  %v1474_v1 = vadd.f32 %v1473_v19, %v1455_v48 }
  0xd2   :  { %v1528_v5 = vadd.f32 %v1527_v18, %v1509_v58 }
  0xd3   :  { %v1493_v60 = vadd.f32 %v1492_v26, %v1474_v1 }
  0xd6   :  { %v1511_v31 = vpop.f32.mrf.mxu2 }
  0xd7   :  { %v1512_v0 = vadd.f32 %v1511_v31, %v1493_v60 }
  0xd8   :  { %v1475_v49 = vpop.f32.mrf.mxu0 }
  0xd9   :  { %v1530_v44 = vpop.f32.mrf.mxu3  ;;  %v1494_v50 = vpop.f32.mrf.mxu1  ;;  %v1476_v40 = vadd.f32 %v1475_v49, %v1457_v20 }
  0xda   :  { %v1531_v42 = vadd.f32 %v1530_v44, %v1512_v0 }
  0xdb   :  { %v1495_v37 = vadd.f32 %v1494_v50, %v1476_v40 }
  0xde   :  { %v1513_v52 = vpop.f32.mrf.mxu2 }
  0xdf   :  { %v1514_v48 = vadd.f32 %v1513_v52, %v1495_v37 }
  0xe0   :  { %v1544_v8 = vpop.f32.mrf.mxu0 }
  0xe1   :  { %v1532_v7 = vpop.f32.mrf.mxu3  ;;  %v1563_v9 = vpop.f32.mrf.mxu1  ;;  %v1545_v30 = vadd.f32 %v1544_v8, %v1526_v24 }
  0xe2   :  { %v1533_v17 = vadd.f32 %v1532_v7, %v1514_v48 }
  0xe3   :  { %v1564_v4 = vadd.f32 %v1563_v9, %v1545_v30 }
  0xe6   :  { %v1582_v27 = vpop.f32.mrf.mxu2 }
  0xe7   :  { %v1583_v3 = vadd.f32 %v1582_v27, %v1564_v4 }
  0xe8   :  { %v1546_v33 = vpop.f32.mrf.mxu0 }
  0xe9   :  { %v1601_v15 = vpop.f32.mrf.mxu3  ;;  %v1565_v55 = vpop.f32.mrf.mxu1  ;;  %v1547_v62 = vadd.f32 %v1546_v33, %v1528_v5 }
  0xea   :  { %v1602_v6 = vadd.f32 %v1601_v15, %v1583_v3 }
  0xeb   :  { %v1566_v38 = vadd.f32 %v1565_v55, %v1547_v62 }
  0xee   :  { %v1584_v53 = vpop.f32.mrf.mxu2 }
  0xef   :  { %v1585_v11 = vadd.f32 %v1584_v53, %v1566_v38 }
  0xf0   :  { %v1549_v57 = vpop.f32.mrf.mxu0 }
  0xf1   :  { %v1603_v54 = vpop.f32.mrf.mxu3  ;;  %v1568_v22 = vpop.f32.mrf.mxu1  ;;  %v1550_v12 = vadd.f32 %v1549_v57, %v1531_v42 }
  0xf2   :  { %v1604_v51 = vadd.f32 %v1603_v54, %v1585_v11 }
  0xf3   :  { %v1569_v16 = vadd.f32 %v1568_v22, %v1550_v12 }
  0xf6   :  { %v1587_v45 = vpop.f32.mrf.mxu2 }
  0xf7   :  { %v1588_v25 = vadd.f32 %v1587_v45, %v1569_v16 }
  0xf8   :  { %v1551_v61 = vpop.f32.mrf.mxu0 }
  0xf9   :  { %v1606_v59 = vpop.f32.mrf.mxu3  ;;  %v1570_v2 = vpop.f32.mrf.mxu1  ;;  %v1552_v18 = vadd.f32 %v1551_v61, %v1533_v17 }
  0xfa   :  { %v1607_v31 = vadd.f32 %v1606_v59, %v1588_v25 }
  0xfb   :  { %v1571_v52 = vadd.f32 %v1570_v2, %v1552_v18 }
  0xfe   :  { %v1589_v63 = vpop.f32.mrf.mxu2 }
  0xff   :  { %v1590_v15 = vadd.f32 %v1589_v63, %v1571_v52 }
 0x100   :  { %v1620_v36 = vpop.f32.mrf.mxu0 }
 0x101   :  { %v1608_v10 = vpop.f32.mrf.mxu3  ;;  %v1639_v32 = vpop.f32.mrf.mxu1  ;;  %v1621_v41 = vadd.f32 %v1620_v36, %v1602_v6 }
 0x102   :  { %v1609_v39 = vadd.f32 %v1608_v10, %v1590_v15 }
 0x103   :  { %v1640_v46 = vadd.f32 %v1639_v32, %v1621_v41 }
 0x106   :  { %v1658_v47 = vpop.f32.mrf.mxu2 }
 0x107   :  { %v1659_v13 = vadd.f32 %v1658_v47, %v1640_v46 }
 0x108   :  { %v1622_v34 = vpop.f32.mrf.mxu0 }
 0x109   :  { %v1677_v14 = vpop.f32.mrf.mxu3  ;;  %v1641_v35 = vpop.f32.mrf.mxu1  ;;  %v1623_v21 = vadd.f32 %v1622_v34, %v1604_v51 }
 0x10a   :  { %v1678_v43 = vadd.f32 %v1677_v14, %v1659_v13 }
 0x10b   :  { %v1642_v19 = vadd.f32 %v1641_v35, %v1623_v21 }
 0x10c   :  { %v1687_v20 = vmul.f32 %v1678_v43, %v1678_v43 }
 0x10e   :  { %1691 = vadd.xlane.f32.xlu0 %v1687_v20  ;;  %v1660_v26 = vpop.f32.mrf.mxu2 }
 0x10f   :  { %v1661_v44 = vadd.f32 %v1660_v26, %v1642_v19 }
 0x110   :  { %v1625_v50 = vpop.f32.mrf.mxu0 }
 0x111   :  { %v1679_v49 = vpop.f32.mrf.mxu3  ;;  %v1626_v9 = vadd.f32 %v1625_v50, %v1607_v31  ;;  %v1644_v27 = vpop.f32.mrf.mxu1 }
 0x112   :  { %v3169_v8 = vadd.f32 %v1679_v49, %v1661_v44 }
 0x113   :  { %v1645_v7 = vadd.f32 %v1644_v27, %v1626_v9 }
 0x114   :  { %v1688_v33 = vmul.f32 %v3169_v8, %v3169_v8 }
 0x116   :  { %1693 = vadd.xlane.f32.xlu0 %v1688_v33  ;;  %v1663_v55 = vpop.f32.mrf.mxu2 }
 0x117   :  { %v1664_v56 = vadd.f32 %v1663_v55, %v1645_v7 }
 0x118   :  { %v1627_v29 = vpop.f32.mrf.mxu0 }
 0x119   :  { %v1682_v53 = vpop.f32.mrf.mxu3  ;;  %v1628_v57 = vadd.f32 %v1627_v29, %v1609_v39  ;;  %v1646_v23 = vpop.f32.mrf.mxu1 }
 0x11a   :  { %v3173_v54 = vadd.f32 %v1682_v53, %v1664_v56 }
 0x11b   :  { %v1647_v24 = vadd.f32 %v1646_v23, %v1628_v57 }
 0x11c   :  { %v1689_v22 = vmul.f32 %v3173_v54, %v3173_v54 }
 0x11e   :  { %1695 = vadd.xlane.f32.xlu1 %v1689_v22  ;;  %v1665_v28 = vpop.f32.mrf.mxu2 }
 0x11f   :  { %v1666_v30 = vadd.f32 %v1665_v28, %v1647_v24 }
 0x121   :  { %v1684_v45 = vpop.f32.mrf.mxu3 }
 0x122   :  { %v3177_v58 = vadd.f32 %v1684_v45, %v1666_v30 }
 0x124   :  { %v1690_v59 = vmul.f32 %v3177_v58, %v3177_v58 }
 0x126   :  { %1697 = vadd.xlane.f32.xlu1 %v1690_v59 }
 0x181   :  { %v1692_v61 = vpop.xlane.xlu0 %1691 }
 0x182   :  { %v1699_v2 = vadd.f32 1e-12, %v1692_v61 }
 0x184   :  { %2476 = vrsqrt.f32 %v1699_v2  ;;  %vm1709_vm1 = vweird.f32 %v1699_v2 }
 0x189   :  { %v1694_v1 = vpop.xlane.xlu0 %1693 }
 0x18a   :  { %v2477_v4 = vpop.eup %2476  ;;  %v1700_v5 = vadd.f32 1e-12, %v1694_v1 }
 0x18b   :  { %v1704_v3 = vmul.f32 %v2477_v4, %v1699_v2  ;;  %vm1710_vm0 = vweird.f32 %v2477_v4 }
 0x18c   :  { %2478 = vrsqrt.f32 %v1700_v5  ;;  %vm1711_vm2 = vmor %vm1709_vm1, %vm1710_vm0  ;;  %vm1719_vm4 = vweird.f32 %v1700_v5 }
 0x18d   :  { %v1705_v60 = vmul.f32 %v2477_v4, %v1704_v3 }
 0x18f   :  { %v1706_v62 = vmul.f32 0.5, %v1705_v60 }
 0x191   :  { %v1707_v63 = vsub.f32 1.5, %v1706_v62  ;;  %v1696_v0 = vpop.xlane.xlu1 %1695 }
 0x192   :  { %v2479_v6 = vpop.eup %2478  ;;  %v1701_v10 = vadd.f32 1e-12, %v1696_v0 }
 0x193   :  { %v1714_v36 = vmul.f32 %v2479_v6, %v1700_v5  ;;  %v1708_v32 = vmul.f32 %v2477_v4, %v1707_v63  ;;  %vm1720_vm3 = vweird.f32 %v2479_v6 }
 0x194   :  { %2480 = vrsqrt.f32 %v1701_v10  ;;  %vm1721_vm5 = vmor %vm1719_vm4, %vm1720_vm3  ;;  %vm1729_vm7 = vweird.f32 %v1701_v10 }
 0x195   :  { %v1715_v40 = vmul.f32 %v2479_v6, %v1714_v36  ;;  %v1712_v38 = vsel %vm1711_vm2, %v2477_v4, %v1708_v32 }
 0x196   :  { %v1743_v41 = vmul.f32 %v1712_v38, %v1678_v43 }
 0x197   :  { %v1716_v42 = vmul.f32 0.5, %v1715_v40 }
 0x198   :  { %v3181_v11 = vmin.f32 %v1743_v41, 0.2 }
 0x199   :  { %v1717_v37 = vsub.f32 1.5, %v1716_v42  ;;  %v1698_v12 = vpop.xlane.xlu1 %1697 }
 0x19a   :  { %v2481_v46 = vpop.eup %2480  ;;  %v1702_v47 = vadd.f32 1e-12, %v1698_v12  ;;  %v1751_v48 = vmul.f32 %v3181_v11, %v3181_v11 }
 0x19b   :  { %v1724_v51 = vmul.f32 %v2481_v46, %v1701_v10  ;;  %v1718_v13 = vmul.f32 %v2479_v6, %v1717_v37  ;;  %vm1730_vm6 = vweird.f32 %v2481_v46 }
 0x19c   :  { %2482 = vrsqrt.f32 %v1702_v47  ;;  %1755 = vadd.xlane.f32.xlu2 %v1751_v48  ;;  %vm1731_vm8 = vmor %vm1729_vm7, %vm1730_vm6  ;;  %vm1739_vm10 = vweird.f32 %v1702_v47 }
 0x19d   :  { %v1725_v14 = vmul.f32 %v2481_v46, %v1724_v51  ;;  %v1722_v34 = vsel %vm1721_vm5, %v2479_v6, %v1718_v13 }
 0x19e   :  { %v1744_v35 = vmul.f32 %v1722_v34, %v3169_v8 }
 0x19f   :  { %v1726_v16 = vmul.f32 0.5, %v1725_v14 }
 0x1a0   :  { %v3186_v43 = vmin.f32 %v1744_v35, 0.2 }
 0x1a1   :  { %v1727_v21 = vsub.f32 1.5, %v1726_v16 }
 0x1a2   :  { %v2483_v17 = vpop.eup %2482  ;;  %v1752_v25 = vmul.f32 %v3186_v43, %v3186_v43 }
 0x1a3   :  { %v1734_v20 = vmul.f32 %v2483_v17, %v1702_v47  ;;  %v1728_v18 = vmul.f32 %v2481_v46, %v1727_v21  ;;  %vm1740_vm9 = vweird.f32 %v2483_v17 }
 0x1a4   :  { %1757 = vadd.xlane.f32.xlu2 %v1752_v25  ;;  %vm1741_vm11 = vmor %vm1739_vm10, %vm1740_vm9 }
 0x1a5   :  { %v1735_v19 = vmul.f32 %v2483_v17, %v1734_v20  ;;  %v1732_v26 = vsel %vm1731_vm8, %v2481_v46, %v1728_v18 }
 0x1a6   :  { %v1745_v31 = vmul.f32 %v1732_v26, %v3173_v54 }
 0x1a7   :  { %v1736_v44 = vmul.f32 0.5, %v1735_v19 }
 0x1a8   :  { %v1749_v49 = vmin.f32 %v1745_v31, 0.2 }
 0x1a9   :  { %v1737_v50 = vsub.f32 1.5, %v1736_v44 }
 0x1aa   :  { %v1753_v52 = vmul.f32 %v1749_v49, %v1749_v49 }
 0x1ab   :  { %v1738_v8 = vmul.f32 %v2483_v17, %v1737_v50 }
 0x1ac   :  { %1759 = vadd.xlane.f32.xlu0 %v1753_v52 }
 0x1ad   :  { %v1742_v9 = vsel %vm1741_vm11, %v2483_v17, %v1738_v8 }
 0x1ae   :  { %v1746_v27 = vmul.f32 %v1742_v9, %v3177_v58 }
 0x1b0   :  { %v3192_v15 = vmin.f32 %v1746_v27, 0.2 }
 0x1b2   :  { %v1754_v33 = vmul.f32 %v3192_v15, %v3192_v15 }
 0x1b4   :  { %1761 = vadd.xlane.f32.xlu1 %v1754_v33 }
 0x20f   :  { %v1756_v7 = vpop.xlane.xlu2 %1755 }
 0x210   :  { %v1763_v55 = vadd.f32 1e-12, %v1756_v7 }
 0x212   :  { %2484 = vrsqrt.f32 %v1763_v55  ;;  %vm1773_vm13 = vweird.f32 %v1763_v55 }
 0x217   :  { %v1758_v39 = vpop.xlane.xlu2 %1757 }
 0x218   :  { %v2485_v56 = vpop.eup %2484  ;;  %v1764_v53 = vadd.f32 1e-12, %v1758_v39 }
 0x219   :  { %v1768_v29 = vmul.f32 %v2485_v56, %v1763_v55  ;;  %vm1774_vm12 = vweird.f32 %v2485_v56 }
 0x21a   :  { %2486 = vrsqrt.f32 %v1764_v53  ;;  %vm1775_vm14 = vmor %vm1773_vm13, %vm1774_vm12  ;;  %vm1783_vm0 = vweird.f32 %v1764_v53 }
 0x21b   :  { %v1769_v54 = vmul.f32 %v2485_v56, %v1768_v29 }
 0x21d   :  { %v1770_v57 = vmul.f32 0.5, %v1769_v54 }
 0x21f   :  { %v1771_v22 = vsub.f32 1.5, %v1770_v57  ;;  %v1760_v23 = vpop.xlane.xlu0 %1759 }
 0x220   :  { %v2487_v24 = vpop.eup %2486  ;;  %v1765_v28 = vadd.f32 1e-12, %v1760_v23 }
 0x221   :  { %v1772_v30 = vmul.f32 %v2485_v56, %v1771_v22  ;;  %v1778_v45 = vmul.f32 %v2487_v24, %v1764_v53  ;;  %vm1784_vm15 = vweird.f32 %v2487_v24 }
 0x222   :  { %2488 = vrsqrt.f32 %v1765_v28  ;;  %vm1785_vm1 = vmor %vm1783_vm0, %vm1784_vm15  ;;  %vm1793_vm3 = vweird.f32 %v1765_v28 }
 0x223   :  { %v1776_v58 = vsel %vm1775_vm14, %v2485_v56, %v1772_v30  ;;  %v1779_v59 = vmul.f32 %v2487_v24, %v1778_v45 }
 0x224   :  { %v1807_v61 = vmul.f32 %v1776_v58, %v3181_v11 }
 0x225   :  { %v1780_v2 = vmul.f32 0.5, %v1779_v59 }
 0x226   :  { %1811 = vst [vmem:[#allocation2] sm:$0xff] %v1807_v61 }
 0x227   :  { %v1781_v1 = vsub.f32 1.5, %v1780_v2  ;;  %v1762_v4 = vpop.xlane.xlu1 %1761 }
 0x228   :  { %v2489_v5 = vpop.eup %2488  ;;  %v1766_v3 = vadd.f32 1e-12, %v1762_v4 }
 0x229   :  { %v1782_v60 = vmul.f32 %v2487_v24, %v1781_v1  ;;  %v1788_v62 = vmul.f32 %v2489_v5, %v1765_v28  ;;  %vm1794_vm2 = vweird.f32 %v2489_v5 }
 0x22a   :  { %2490 = vrsqrt.f32 %v1766_v3  ;;  %vm1795_vm4 = vmor %vm1793_vm3, %vm1794_vm2  ;;  %vm1803_vm6 = vweird.f32 %v1766_v3 }
 0x22b   :  { %v1786_v63 = vsel %vm1785_vm1, %v2487_v24, %v1782_v60  ;;  %v1789_v0 = vmul.f32 %v2489_v5, %v1788_v62 }
 0x22c   :  { %v1808_v6 = vmul.f32 %v1786_v63, %v3186_v43 }
 0x22d   :  { %v1790_v10 = vmul.f32 0.5, %v1789_v0 }
 0x22e   :  { %1812 = vst [vmem:[#allocation2 + $0x8] sm:$0xff] %v1808_v6 }
 0x22f   :  { %v1791_v36 = vsub.f32 1.5, %v1790_v10 }
 0x230   :  { %v2491_v32 = vpop.eup %2490 }
 0x231   :  { %v1792_v40 = vmul.f32 %v2489_v5, %v1791_v36  ;;  %v1798_v38 = vmul.f32 %v2491_v32, %v1766_v3  ;;  %vm1804_vm5 = vweird.f32 %v2491_v32 }
 0x232   :  { %vm1805_vm7 = vmor %vm1803_vm6, %vm1804_vm5 }
 0x233   :  { %v1796_v41 = vsel %vm1795_vm4, %v2489_v5, %v1792_v40  ;;  %v1799_v42 = vmul.f32 %v2491_v32, %v1798_v38 }
 0x234   :  { %v1809_v11 = vmul.f32 %v1796_v41, %v1749_v49 }
 0x235   :  { %v1800_v37 = vmul.f32 0.5, %v1799_v42 }
 0x236   :  { %1813 = vst [vmem:[#allocation2 + $0x10] sm:$0xff] %v1809_v11 }
 0x237   :  { %v1801_v12 = vsub.f32 1.5, %v1800_v37 }
 0x239   :  { %v1802_v46 = vmul.f32 %v2491_v32, %v1801_v12 }
 0x23b   :  { %v1806_v47 = vsel %vm1805_vm7, %v2491_v32, %v1802_v46 }
 0x23c   :  { %v1810_v48 = vmul.f32 %v1806_v47, %v3192_v15 }
 0x23e   :  { %1814 = vst [vmem:[#allocation2 + $0x18] sm:$0xff] %v1810_v48 }
 0x23f   :  { %1827 = dma.vmem_to_hbm [thread:$0]  %s1820_s16, 512, %s1822_s18, [#allocation3], %s2519_s19, %s2519_s19, %s2520_s20  }
 0x240   :  { %2516 = dma.done.wait [#allocation3], 512  }
 0x241   :  { %2517 = vsyncadd [#allocation3], 4294966784 }
 0x242   :  { %1832 = vsyncpa [#allocation3], 1 }

</bundles_post_ra>
